<compile_context>
chip_gen: v5e
topology: v5e:2x2
jax: 0.10.0
libtpu: 0.0.40
codegen_flags: <defaults>
</compile_context>

<pallas_src>
import functools

import jax
import jax.numpy as jnp
import numpy as np
from jax.experimental import pallas as pl
from jax.experimental.pallas import tpu as pltpu


PATCH = 8  # synthetic frozen-encoder patch size


# ----------------------------------------------------------------------------
# Single fused Pallas kernel: frozen encoder + MLP dynamics rollout + MSE loss
# ----------------------------------------------------------------------------

def _fused_forward_kernel(patches_ref, pool_ref, enc_w_ref, enc_b_ref,
                          w1_ref, b1_ref, w2_ref, b2_ref,
                          feats_ref, sim_ref, loss_ref,
                          *scratch, batch, n_past, rollout):
    B = batch
    L = enc_w_ref.shape[1]
    NT = n_past + rollout

    # ---- frozen encoder -----------------------------------------------------
    # Reassociated mean-pool:  (pool @ patches) @ enc_w  instead of
    # pool @ (patches @ enc_w).  mean(Wx) + b == (mean x) W + b, so this is exact up
    # to the (accepted) bf16 rounding of the pooled-patch intermediate.
    pooled = jnp.dot(pool_ref[...], patches_ref[...],
                     preferred_element_type=jnp.float32)                # (B*NT, Dpp)
    feats = jnp.dot(pooled.astype(jnp.bfloat16), enc_w_ref[...],
                    preferred_element_type=jnp.float32) + enc_b_ref[...]  # (B*NT, L)
    feats_ref[...] = feats                                              # lane-dense slab

    w1 = w1_ref[...]
    b1 = b1_ref[...]
    w2 = w2_ref[...]
    b2 = b2_ref[...]
    feats3 = feats.reshape(B, NT, L)                                    # batch-major view

    def mlp_step(frame_list):
        # torch.cat(prev_states, dim=-1) -> one (B, n_past*L) operand and a single
        # K = n_past*L MXU dot (one result pop on the MRF of v5e/v6e instead of
        # n_past small dots + n_past VPU accumulate-adds per rollout step).
        cat_in = jnp.concatenate(frame_list, axis=-1).astype(jnp.bfloat16)
        h = jnp.dot(cat_in, w1, preferred_element_type=jnp.float32) + b1
        h = jnp.maximum(h, 0.0)                                         # ReLU
        return jnp.dot(h.astype(jnp.bfloat16), w2,
                       preferred_element_type=jnp.float32) + b2         # (B, L) f32

    if rollout == 1:
        pred = mlp_step([feats3[:, f, :] for f in range(n_past)])
        sim_ref[...] = pred[jnp.newaxis]                                # (1, B, L)
        d = pred - feats3[:, n_past, :]
        loss_ref[...] = (jnp.sum(d * d) * (1.0 / (B * L))).reshape(1, 1)
    else:
        # full_rollout: sliding window kept in a VMEM ring buffer.  Rows [0, n_past)
        # hold the input-frame feats; each step appends its prediction at row
        # n_past + s, so per-step data movement is O(B) rows and no window array is
        # carried through the loop.
        ring_ref = scratch[0]                                           # (NT, B, L) f32
        for f in range(n_past):
            ring_ref[f] = feats3[:, f, :]

        @pl.loop(0, rollout)
        def _(s):
            pred = mlp_step([ring_ref[s + f] for f in range(n_past)])
            ring_ref[n_past + s] = pred                                 # slide window
            sim_ref[s] = pred

        sim = sim_ref[...]                                              # (rollout, B, L)
        obs = jnp.swapaxes(feats3[:, n_past:, :], 0, 1)                 # step-major
        d = sim - obs
        loss_ref[...] = (jnp.sum(d * d) * (1.0 / (rollout * B * L))).reshape(1, 1)


# ----------------------------------------------------------------------------
# Wrapper: patchify, trace-time constants, pallas_call, output assembly
# ----------------------------------------------------------------------------

def _patchify(frames):
    """(B, T, C, H, W) -> (B*T*P, C*PATCH*PATCH) rows, grouped per (batch, frame)."""
    Bn, T, C, H, W = frames.shape
    assert H % PATCH == 0 and W % PATCH == 0, "H and W must be multiples of PATCH"
    hp, wp = H // PATCH, W // PATCH
    x = frames.reshape(Bn, T, C, hp, PATCH, wp, PATCH)
    x = x.transpose(0, 1, 3, 5, 2, 4, 6)                 # (B, T, hp, wp, C, ph, pw)
    return x.reshape(Bn * T * hp * wp, C * PATCH * PATCH), hp * wp


def prepare_frozen_params(raw):
    """One-time prep of the FROZEN weights (pad + bf16 casts + bias reshapes).

    Hoisted out of the per-call forward: the pad/convert HBM traffic is comparable to
    the fused kernel's whole DMA volume, so paying it once (the weights never change)
    roughly halves per-forward HBM bytes and removes several tiny HLO launches.
    """
    Dp, L = raw["enc_w"].shape
    Hh = raw["mlp_w1"].shape[1]
    Dpp = max(128, ((Dp + 127) // 128) * 128)            # lane-multiple reduction dim
    return {
        "enc_w": jnp.pad(raw["enc_w"], ((0, Dpp - Dp), (0, 0))).astype(jnp.bfloat16),
        "enc_b": raw["enc_b"].reshape(1, L).astype(jnp.float32),
        "mlp_w1": raw["mlp_w1"].astype(jnp.bfloat16),
        "mlp_b1": raw["mlp_b1"].reshape(1, Hh).astype(jnp.float32),
        "mlp_w2": raw["mlp_w2"].astype(jnp.bfloat16),
        "mlp_b2": raw["mlp_b2"].reshape(1, L).astype(jnp.float32),
    }


def frozen_pretrained_encoder_forward(x, params, *, n_past=7, full_rollout=False):
    """Forward pass.  `params` must come from prepare_frozen_params()."""
    assert x.ndim == 5, "Expected (B, T, C, H, W)"
    B, T = x.shape[0], x.shape[1]
    Dpp, L = params["enc_w"].shape
    Hh = params["mlp_w1"].shape[1]
    assert params["mlp_w1"].shape[0] == n_past * L

    rollout = (T - n_past) if full_rollout else 1
    assert rollout > 0
    NT = n_past + rollout

    # Every frame touched by this forward pass (batch-major), as bf16 patch rows.
    frames = x[:, :NT]
    patches, P = _patchify(frames.astype(jnp.bfloat16))             # (B*NT*P, Dp) bf16
    NR, Dp = patches.shape
    NF = B * NT
    if Dp < Dpp:
        patches = jnp.pad(patches, ((0, 0), (0, Dpp - Dp)))          # exact zero-pad of K

    # Mean-pool matrix: trace-time numpy constant in bf16 (no runtime iota/compare
    # ops, half the DMA).  Row n averages the P patch rows of frame n; 1/P is exact
    # in bf16 for the power-of-two patch grid used here.
    pool_np = np.zeros((NF, NR), dtype=np.float32)
    pool_np[np.repeat(np.arange(NF), P), np.arange(NR)] = 1.0 / P
    pool = jnp.asarray(pool_np, dtype=jnp.bfloat16)

    # Advisory cost estimate -> lets XLA's latency-hiding scheduler overlap the
    # opaque custom call with the surrounding patchify / output-assembly ops.
    flops = (2 * NF * NR * Dpp + 2 * NF * Dpp * L
             + rollout * 2 * B * (n_past * L * Hh + Hh * L))
    bytes_accessed = (NR * Dpp * 2 + NF * NR * 2 + Dpp * L * 2
                      + n_past * L * Hh * 2 + Hh * L * 2
                      + (L + Hh + L) * 4
                      + NF * L * 4 + rollout * B * L * 4 + 4)

    scratch_shapes = []
    if rollout > 1:
        scratch_shapes.append(pltpu.VMEM((NT, B, L), jnp.float32))   # rollout ring buffer

    kernel = functools.partial(_fused_forward_kernel,
                               batch=B, n_past=n_past, rollout=rollout)

    # Gridless single fused call: all operands (~2.2 MiB) stay VMEM-resident for the
    # whole forward on every TPU generation, including v7x's 64 MiB VMEM.
    # v7x scaling notes: if B or NT grow, add a leading grid axis over batch/frames
    # with dimension_semantics=("parallel",) so megacore splits the work; if bf16 W1
    # ever approaches ~16-24 MiB, K-tile its reduction dim on an "arbitrary" grid
    # axis (f32 accumulator) rather than raising vmem_limit_bytes.
    feats, sim, loss = pl.pallas_call(
        kernel,
        out_shape=(
            jax.ShapeDtypeStruct((NF, L), jnp.float32),          # encoder feats (dense)
            jax.ShapeDtypeStruct((rollout, B, L), jnp.float32),  # simulated states
            jax.ShapeDtypeStruct((1, 1), jnp.float32),           # MSE loss
        ),
        scratch_shapes=scratch_shapes,
        compiler_params=pltpu.CompilerParams(vmem_limit_bytes=32 * 1024 * 1024),
        cost_estimate=pl.CostEstimate(flops=flops, transcendentals=0,
                                      bytes_accessed=bytes_accessed),
    )(patches, pool, params["enc_w"], params["enc_b"],
      params["mlp_w1"], params["mlp_b1"], params["mlp_w2"], params["mlp_b2"])

    # Batch-major feats slab -> pure reshape + slices, no post-kernel transposes.
    feats = feats.reshape(B, NT, L)
    input_states = feats[:, :n_past]                              # (B, n_past, L)
    observed_states = feats[:, n_past:]                           # (B, rollout, L)
    simulated_states = jnp.swapaxes(sim, 0, 1)                    # (B, rollout, L)
    assert observed_states.shape == simulated_states.shape
    loss = loss[0, 0]

    output = {
        "input_states": input_states,
        "observed_states": observed_states,
        "simulated_states": simulated_states,
        "loss": loss,
    }
    layers = {
        # cat([input_states, observed_states], 1) is exactly the feats slab -> reuse it.
        "encoder": feats,
        "dynamics": jnp.concatenate([input_states, simulated_states], axis=1),
    }
    if full_rollout:
        layers["inputs_test"] = frames                            # == x when full_rollout
    return output, layers


# ----------------------------------------------------------------------------
# Deterministic parameter init (synthetic; no checkpoint loading)
# ----------------------------------------------------------------------------

def init_params(key, *, latent_dim, n_past, patch_dim, hidden=1024):
    k = jax.random.split(key, 4)
    return {
        "enc_w": jax.random.normal(k[0], (patch_dim, latent_dim), jnp.float32)
                 / jnp.sqrt(jnp.float32(patch_dim)),
        "enc_b": 0.01 * jax.random.normal(k[1], (latent_dim,), jnp.float32),
        "mlp_w1": jax.random.normal(k[2], (latent_dim * n_past, hidden), jnp.float32)
                  / jnp.sqrt(jnp.float32(latent_dim * n_past)),
        "mlp_b1": jnp.zeros((hidden,), jnp.float32),
        "mlp_w2": jax.random.normal(k[3], (hidden, latent_dim), jnp.float32)
                  / jnp.sqrt(jnp.float32(hidden)),
        "mlp_b2": jnp.zeros((latent_dim,), jnp.float32),
    }


if __name__ == "__main__":
    B, T, C, H, W = 2, 8, 3, 16, 16          # T = n_past + 1
    N_PAST = 7
    LATENT = 128
    PATCH_DIM = C * PATCH * PATCH            # 192 (padded once to 256 in prep)

    key = jax.random.PRNGKey(0)
    k_x, k_p = jax.random.split(key)
    x = jax.random.normal(k_x, (B, T, C, H, W), jnp.float32)
    raw_params = init_params(k_p, latent_dim=LATENT, n_past=N_PAST, patch_dim=PATCH_DIM)

    # One-time prep of the frozen weights (pad + bf16 casts); never re-run per forward.
    params = prepare_frozen_params(raw_params)

    fwd = jax.jit(functools.partial(frozen_pretrained_encoder_forward,
                                    n_past=N_PAST, full_rollout=False))
    output, layers = fwd(x, params)
    jax.block_until_ready(output)
    jax.block_until_ready(layers)

    assert output["input_states"].shape == (B, N_PAST, LATENT)
    assert output["observed_states"].shape == (B, 1, LATENT)
    assert output["simulated_states"].shape == (B, 1, LATENT)
    assert output["loss"].shape == ()
    assert bool(jnp.isfinite(output["loss"]))
    assert layers["encoder"].shape == (B, N_PAST + 1, LATENT)
    assert layers["dynamics"].shape == (B, N_PAST + 1, LATENT)

    print("KERNEL_OK")
</pallas_src>

<mosaic_0001>
module attributes {stable_mosaic.version = 11 : i64} {
  func.func @_fused_forward_kernel(%arg0: memref<64x256xbf16, #tpu.memory_space<vmem>>, %arg1: memref<16x64xbf16, #tpu.memory_space<vmem>>, %arg2: memref<256x128xbf16, #tpu.memory_space<vmem>>, %arg3: memref<1x128xf32, #tpu.memory_space<vmem>>, %arg4: memref<896x1024xbf16, #tpu.memory_space<vmem>>, %arg5: memref<1x1024xf32, #tpu.memory_space<vmem>>, %arg6: memref<1024x128xbf16, #tpu.memory_space<vmem>>, %arg7: memref<1x128xf32, #tpu.memory_space<vmem>>, %arg8: memref<16x128xf32, #tpu.memory_space<vmem>>, %arg9: memref<1x2x128xf32, #tpu.memory_space<vmem>>, %arg10: memref<1x1xf32, #tpu.memory_space<vmem>>) attributes {dimension_semantics = [], scalar_prefetch = 0 : i64, scratch_operands = 0 : i64, tpu.core_type = #tpu.core_type<tc>} {
    %c0 = arith.constant 0 : index
    %c0_0 = arith.constant 0 : index
    %0 = vector.load %arg1[%c0, %c0_0] : memref<16x64xbf16, #tpu.memory_space<vmem>>, vector<16x64xbf16>
    %c0_1 = arith.constant 0 : index
    %c0_2 = arith.constant 0 : index
    %1 = vector.load %arg0[%c0_1, %c0_2] : memref<64x256xbf16, #tpu.memory_space<vmem>>, vector<64x256xbf16>
    %cst = arith.constant dense<0.000000e+00> : vector<16x256xf32>
    %2 = tpu.matmul %0, %1, %cst {dimension_numbers = #tpu.dot_dimension_numbers<[1], [0], [0], [1], [0, 0, 1, 1], [], []>} : vector<16x64xbf16>, vector<64x256xbf16>, vector<16x256xf32> -> vector<16x256xf32>
    %3 = arith.truncf %2 : vector<16x256xf32> to vector<16x256xbf16>
    %c0_3 = arith.constant 0 : index
    %c0_4 = arith.constant 0 : index
    %4 = vector.load %arg2[%c0_3, %c0_4] : memref<256x128xbf16, #tpu.memory_space<vmem>>, vector<256x128xbf16>
    %cst_5 = arith.constant dense<0.000000e+00> : vector<16x128xf32>
    %5 = tpu.matmul %3, %4, %cst_5 {dimension_numbers = #tpu.dot_dimension_numbers<[1], [0], [0], [1], [0, 0, 1, 1], [], []>} : vector<16x256xbf16>, vector<256x128xbf16>, vector<16x128xf32> -> vector<16x128xf32>
    %c0_6 = arith.constant 0 : index
    %c0_7 = arith.constant 0 : index
    %6 = vector.load %arg3[%c0_6, %c0_7] : memref<1x128xf32, #tpu.memory_space<vmem>>, vector<1x128xf32>
    %7 = vector.broadcast %6 : vector<1x128xf32> to vector<16x128xf32>
    %8 = arith.addf %5, %7 : vector<16x128xf32>
    %c0_8 = arith.constant 0 : index
    %c0_9 = arith.constant 0 : index
    %9 = vector.load %arg8[%c0_8, %c0_9] : memref<16x128xf32, #tpu.memory_space<vmem>>, vector<16x128xf32>
    tpu.vector_store %arg8[%c0_8, %c0_9], %8 {strides = array<i32>} : memref<16x128xf32, #tpu.memory_space<vmem>>, vector<16x128xf32>,
    %c0_10 = arith.constant 0 : index
    %c0_11 = arith.constant 0 : index
    %10 = vector.load %arg4[%c0_10, %c0_11] : memref<896x1024xbf16, #tpu.memory_space<vmem>>, vector<896x1024xbf16>
    %c0_12 = arith.constant 0 : index
    %c0_13 = arith.constant 0 : index
    %11 = vector.load %arg5[%c0_12, %c0_13] : memref<1x1024xf32, #tpu.memory_space<vmem>>, vector<1x1024xf32>
    %c0_14 = arith.constant 0 : index
    %c0_15 = arith.constant 0 : index
    %12 = vector.load %arg6[%c0_14, %c0_15] : memref<1024x128xbf16, #tpu.memory_space<vmem>>, vector<1024x128xbf16>
    %c0_16 = arith.constant 0 : index
    %c0_17 = arith.constant 0 : index
    %13 = vector.load %arg7[%c0_16, %c0_17] : memref<1x128xf32, #tpu.memory_space<vmem>>, vector<1x128xf32>
    %14 = vector.shape_cast %8 : vector<16x128xf32> to vector<2x8x128xf32>
    %15 = vector.extract_strided_slice %14 {offsets = [0, 0, 0], sizes = [2, 1, 128], strides = [1, 1, 1]} : vector<2x8x128xf32> to vector<2x1x128xf32>
    %16 = vector.shape_cast %15 : vector<2x1x128xf32> to vector<2x128xf32>
    %17 = vector.extract_strided_slice %14 {offsets = [0, 1, 0], sizes = [2, 1, 128], strides = [1, 1, 1]} : vector<2x8x128xf32> to vector<2x1x128xf32>
    %18 = vector.shape_cast %17 : vector<2x1x128xf32> to vector<2x128xf32>
    %19 = vector.extract_strided_slice %14 {offsets = [0, 2, 0], sizes = [2, 1, 128], strides = [1, 1, 1]} : vector<2x8x128xf32> to vector<2x1x128xf32>
    %20 = vector.shape_cast %19 : vector<2x1x128xf32> to vector<2x128xf32>
    %21 = vector.extract_strided_slice %14 {offsets = [0, 3, 0], sizes = [2, 1, 128], strides = [1, 1, 1]} : vector<2x8x128xf32> to vector<2x1x128xf32>
    %22 = vector.shape_cast %21 : vector<2x1x128xf32> to vector<2x128xf32>
    %23 = vector.extract_strided_slice %14 {offsets = [0, 4, 0], sizes = [2, 1, 128], strides = [1, 1, 1]} : vector<2x8x128xf32> to vector<2x1x128xf32>
    %24 = vector.shape_cast %23 : vector<2x1x128xf32> to vector<2x128xf32>
    %25 = vector.extract_strided_slice %14 {offsets = [0, 5, 0], sizes = [2, 1, 128], strides = [1, 1, 1]} : vector<2x8x128xf32> to vector<2x1x128xf32>
    %26 = vector.shape_cast %25 : vector<2x1x128xf32> to vector<2x128xf32>
    %27 = vector.extract_strided_slice %14 {offsets = [0, 6, 0], sizes = [2, 1, 128], strides = [1, 1, 1]} : vector<2x8x128xf32> to vector<2x1x128xf32>
    %28 = vector.shape_cast %27 : vector<2x1x128xf32> to vector<2x128xf32>
    %29 = tpu.concatenate %16, %18, %20, %22, %24, %26, %28 in 1 : vector<2x128xf32>, vector<2x128xf32>, vector<2x128xf32>, vector<2x128xf32>, vector<2x128xf32>, vector<2x128xf32>, vector<2x128xf32> -> vector<2x896xf32>
    %30 = arith.truncf %29 : vector<2x896xf32> to vector<2x896xbf16>
    %cst_18 = arith.constant dense<0.000000e+00> : vector<2x1024xf32>
    %31 = tpu.matmul %30, %10, %cst_18 {dimension_numbers = #tpu.dot_dimension_numbers<[1], [0], [0], [1], [0, 0, 1, 1], [], []>} : vector<2x896xbf16>, vector<896x1024xbf16>, vector<2x1024xf32> -> vector<2x1024xf32>
    %32 = vector.broadcast %11 : vector<1x1024xf32> to vector<2x1024xf32>
    %33 = arith.addf %31, %32 : vector<2x1024xf32>
    %cst_19 = arith.constant 0.000000e+00 : f32
    %34 = vector.broadcast %cst_19 : f32 to vector<2x1024xf32>
    %35 = arith.maximumf %33, %34 : vector<2x1024xf32>
    %36 = arith.truncf %35 : vector<2x1024xf32> to vector<2x1024xbf16>
    %cst_20 = arith.constant dense<0.000000e+00> : vector<2x128xf32>
    %37 = tpu.matmul %36, %12, %cst_20 {dimension_numbers = #tpu.dot_dimension_numbers<[1], [0], [0], [1], [0, 0, 1, 1], [], []>} : vector<2x1024xbf16>, vector<1024x128xbf16>, vector<2x128xf32> -> vector<2x128xf32>
    %38 = vector.broadcast %13 : vector<1x128xf32> to vector<2x128xf32>
    %39 = arith.addf %37, %38 : vector<2x128xf32>
    %40 = vector.shape_cast %39 : vector<2x128xf32> to vector<1x2x128xf32>
    %c0_21 = arith.constant 0 : index
    %c0_22 = arith.constant 0 : index
    %c0_23 = arith.constant 0 : index
    %41 = vector.load %arg9[%c0_21, %c0_22, %c0_23] : memref<1x2x128xf32, #tpu.memory_space<vmem>>, vector<1x2x128xf32>
    tpu.vector_store %arg9[%c0_21, %c0_22, %c0_23], %40 {strides = array<i32>} : memref<1x2x128xf32, #tpu.memory_space<vmem>>, vector<1x2x128xf32>,
    %42 = vector.extract_strided_slice %14 {offsets = [0, 7, 0], sizes = [2, 1, 128], strides = [1, 1, 1]} : vector<2x8x128xf32> to vector<2x1x128xf32>
    %43 = vector.shape_cast %42 : vector<2x1x128xf32> to vector<2x128xf32>
    %44 = arith.subf %39, %43 : vector<2x128xf32>
    %45 = arith.mulf %44, %44 : vector<2x128xf32>
    %46 = vector.shape_cast %45 : vector<2x128xf32> to vector<1x2x128xf32>
    %cst_24 = arith.constant dense<0.000000e+00> : vector<1xf32>
    %47 = vector.multi_reduction <add>, %46, %cst_24 [1, 2] : vector<1x2x128xf32> to vector<1xf32>
    %48 = vector.shape_cast %47 : vector<1xf32> to vector<1x1x1xf32>
    %49 = vector.extract %48[0, 0, 0] : f32 from vector<1x1x1xf32>
    %cst_25 = arith.constant 3.906250e-03 : f32
    %50 = arith.mulf %49, %cst_25 : f32
    %51 = vector.broadcast %50 : f32 to vector<1x1xf32>
    %c0_26 = arith.constant 0 : index
    %c0_27 = arith.constant 0 : index
    %52 = vector.load %arg10[%c0_26, %c0_27] : memref<1x1xf32, #tpu.memory_space<vmem>>, vector<1x1xf32>
    tpu.vector_store %arg10[%c0_26, %c0_27], %51 {strides = array<i32>} : memref<1x1xf32, #tpu.memory_space<vmem>>, vector<1x1xf32>,
    return
  }
}

</mosaic_0001>

<bundles_post_ra>
// kernel: frozen_pretrained_encoder_forward.1
= control target key start
LH: loop header
LB: loop body
LE: loop exit
PB: predicated region body
PF: predicated region fallthrough
CT: control target
= control target key end

     0   :  { %s10381_s0 = inlined_call_operand.vmem [shape: bf16[64,256], index: 0, kind: input, shape index: {}]   ;;  %s10382_s1 = inlined_call_operand.vmem [shape: bf16[16,64], index: 1, kind: input, shape index: {}]   ;;  %s10383_s2 = inlined_call_operand.vmem [shape: bf16[256,128], index: 2, kind: input, shape index: {}]   ;;  %s10384_s3 = inlined_call_operand.vmem [shape: f32[1,128], index: 3, kind: input, shape index: {}]   ;;  %s10385_s4 = inlined_call_operand.vmem [shape: bf16[896,1024], index: 4, kind: input, shape index: {}]   ;;  %s10386_s5 = inlined_call_operand.vmem [shape: f32[1,1024], index: 5, kind: input, shape index: {}]   ;;  %s10387_s6 = inlined_call_operand.vmem [shape: bf16[1024,128], index: 6, kind: input, shape index: {}]   ;;  %s10388_s7 = inlined_call_operand.vmem [shape: f32[1,128], index: 7, kind: input, shape index: {}]   ;;  %s10389_s8 = inlined_call_operand.vmem [shape: f32[16,128], index: 8, kind: output, shape index: {0}]   ;;  %s10390_s9 = inlined_call_operand.vmem [shape: f32[1,2,128], index: 9, kind: output, shape index: {1}]   ;;  %s10391_s10 = inlined_call_operand.hbm [shape: f32[1,1], index: 10, kind: output, shape index: {2}]  }
   0x1   :  { %v4467_v0 = vld [vmem:[%s10381_s0 + $0x30] sm:$0xf]  ;;  %v6595_v1 = vld [vmem:[%s10381_s0 + $0x34] sm:$0xf0]  ;;  %v6594_v2 = vld [vmem:[%s10381_s0 + $0x34] sm:$0xf] }
   0x2   :  { %v4468_v3 = vor.u32 %v6595_v1, %v4467_v0  ;;  %v4469_v4 = vld [vmem:[%s10381_s0 + $0x38] sm:$0xf0]  ;;  %v4459_v5 = vld [vmem:[%s10381_s0 + $0x20] sm:$0xf]  ;;  %v6593_v6 = vld [vmem:[%s10381_s0 + $0x24] sm:$0xf0] }
   0x3   :  { %v4472_v7 = vor.u32 %v6594_v2, %v4469_v4  ;;  %v6592_v8 = vld [vmem:[%s10381_s0 + $0x24] sm:$0xf]  ;;  %v4461_v9 = vld [vmem:[%s10381_s0 + $0x28] sm:$0xf0]  ;;  %v4460_v10 = vor.u32 %v6593_v6, %v4459_v5  ;;  %v4451_v12 = vld [vmem:[%s10381_s0 + $0x10] sm:$0xf] }
   0x4   :  { %97 = vmatpush.bf16.msra.mxu0 %v4468_v3  ;;  %v4464_v11 = vor.u32 %v6592_v8, %v4461_v9  ;;  %v6591_v13 = vld [vmem:[%s10381_s0 + $0x14] sm:$0xf0]  ;;  %v6590_v14 = vld [vmem:[%s10381_s0 + $0x14] sm:$0xf]  ;;  %v4453_v15 = vld [vmem:[%s10381_s0 + $0x18] sm:$0xf0] }
   0x5   :  { %111 = vmatpush.bf16.msra.mxu1 %v4472_v7  ;;  %v6603_v16 = vld [vmem:[%s10383_s2 + $0x38] sm:$0xff]  ;;  %v4452_v18 = vor.u32 %v6591_v13, %v4451_v12  ;;  %v4443_v19 = vld [vmem:[%s10381_s0] sm:$0xf]  ;;  %v6589_v20 = vld [vmem:[%s10381_s0 + $0x4] sm:$0xf0]  ;;  %v4456_v22 = vor.u32 %v6590_v14, %v4453_v15 }
   0x6   :  { %v6611_v17 = vld [vmem:[%s10383_s2 + $0x78] sm:$0xff]  ;;  %255 = vmatpush.bf16.msra.mxu2 %v6603_v16  ;;  %v6602_v21 = vld [vmem:[%s10383_s2 + $0x30] sm:$0xff]  ;;  %v6588_v23 = vld [vmem:[%s10381_s0 + $0x4] sm:$0xf] }
   0x7   :  { %v4445_v24 = vld [vmem:[%s10381_s0 + $0x8] sm:$0xf0]  ;;  %269 = vmatpush.bf16.msra.mxu3 %v6611_v17  ;;  %v6610_v25 = vld [vmem:[%s10383_s2 + $0x70] sm:$0xff] }
   0x8   :  { %98 = vmatpush.bf16.msra.mxu0 %v4460_v10 }
   0x9   :  { %112 = vmatpush.bf16.msra.mxu1 %v4464_v11 }
   0xa   :  { %16 = vsyncpa [#allocation3], 0  ;;  %v4444_v26 = vor.u32 %v6589_v20, %v4443_v19  ;;  %256 = vmatpush.bf16.msra.mxu2 %v6602_v21  ;;  %v6601_v27 = vld [vmem:[%s10383_s2 + $0x28] sm:$0xff]  ;;  %v4448_v28 = vor.u32 %v6588_v23, %v4445_v24  ;;  %v6587_v30 = vld [vmem:[%s10382_s1] sm:$0xff]  ;;  %vm89_vm0 = vcmask 523264   ;;  %vm866_vm1 = vcmask 1041409  }
   0xb   :  { %270 = vmatpush.bf16.msra.mxu3 %v6610_v25  ;;  %v6609_v29 = vld [vmem:[%s10383_s2 + $0x68] sm:$0xff]  ;;  %v6600_v31 = vld [vmem:[%s10383_s2 + $0x20] sm:$0xff]  ;;  %v6599_v33 = vld [vmem:[%s10383_s2 + $0x18] sm:$0xff]  ;;  %vm4398_vm2 = vcmask 1041408   ;;  %s7157_s16 = smov [#allocation2]   ;;  %vm4411_vm3 = vcmask 0  }
   0xc   :  { %99 = vmatpush.bf16.msra.mxu0 %v4452_v18  ;;  %v6608_v32 = vld [vmem:[%s10383_s2 + $0x60] sm:$0xff]  ;;  %v6607_v34 = vld [vmem:[%s10383_s2 + $0x58] sm:$0xff]  ;;  %v6598_v35 = vld [vmem:[%s10383_s2 + $0x10] sm:$0xff]  ;;  %s4422_s0 = sshll.u32 %s7157_s16, 4  ;;  %s4423_s0 = int_to_ptr.vmem [resolvable:$true] %s4422_s0 }
   0xd   :  { %113 = vmatpush.bf16.msra.mxu1 %v4456_v22  ;;  %v6606_v36 = vld [vmem:[%s10383_s2 + $0x50] sm:$0xff]  ;;  %v6597_v37 = vld [vmem:[%s10383_s2 + $0x8] sm:$0xff]  ;;  %v6596_v39 = vld [vmem:[%s10383_s2] sm:$0xff] }
   0xe   :  { %257 = vmatpush.bf16.msra.mxu2 %v6601_v27  ;;  %v6605_v38 = vld [vmem:[%s10383_s2 + $0x48] sm:$0xff]  ;;  %v6604_v40 = vld [vmem:[%s10383_s2 + $0x40] sm:$0xff] }
   0xf   :  { %271 = vmatpush.bf16.msra.mxu3 %v6609_v29  ;;  %v5021_v41 = vld [vmem:[%s10385_s4 + $0x3c0] sm:$0xf] }
  0x10   :  { %100 = vmatpush.bf16.msra.mxu0 %v4444_v26  ;;  %v6736_v42 = vld [vmem:[%s10385_s4 + $0x3dc] sm:$0xf0] }
  0x11   :  { %114 = vmatpush.bf16.msra.mxu1 %v4448_v28  ;;  %v4765_v43 = vld [vmem:[%s10385_s4 + $0x1c0] sm:$0xf]  ;;  %v5022_v44 = vor.u32 %v6736_v42, %v5021_v41 }
  0x12   :  { %258 = vmatpush.bf16.msra.mxu2 %v6600_v31  ;;  %v6672_v45 = vld [vmem:[%s10385_s4 + $0x1dc] sm:$0xf0] }
  0x13   :  { %4473 = vmatmul.msk.bf16.vlgmr.msra.gmra.mxu0 %vm89_vm0, %v6587_v30  ;;  %272 = vmatpush.bf16.msra.mxu3 %v6608_v32  ;;  %v5277_v46 = vld [vmem:[%s10385_s4 + $0x5c0] sm:$0xf]  ;;  %v4766_v48 = vor.u32 %v6672_v45, %v4765_v43 }
  0x14   :  { %4474 = vmatmul.msk.bf16.vlgmr.msra.gmra.mxu1 %vm89_vm0, %v6587_v30  ;;  %v6800_v47 = vld [vmem:[%s10385_s4 + $0x5dc] sm:$0xf0] }
  0x15   :  { %v5278_v49 = vor.u32 %v6800_v47, %v5277_v46  ;;  %v5533_v50 = vld [vmem:[%s10385_s4 + $0x7c0] sm:$0xf]  ;;  %3169 = vmatpush.bf16.msrb.mxu1 %v5022_v44  ;;  %3156 = vmatpush.bf16.msrb.mxu0 %v4766_v48 }
  0x16   :  { %259 = vmatpush.bf16.msra.mxu2 %v6599_v33  ;;  %v6864_v51 = vld [vmem:[%s10385_s4 + $0x7dc] sm:$0xf0] }
  0x17   :  { %273 = vmatpush.bf16.msra.mxu3 %v6607_v34  ;;  %v4989_v52 = vld [vmem:[%s10385_s4 + $0x380] sm:$0xf]  ;;  %v5534_v53 = vor.u32 %v6864_v51, %v5533_v50 }
  0x18   :  { %v6728_v54 = vld [vmem:[%s10385_s4 + $0x39c] sm:$0xf0] }
  0x19   :  { %v4733_v55 = vld [vmem:[%s10385_s4 + $0x180] sm:$0xf]  ;;  %v4990_v57 = vor.u32 %v6728_v54, %v4989_v52 }
  0x1a   :  { %260 = vmatpush.bf16.msra.mxu2 %v6598_v35  ;;  %v6664_v56 = vld [vmem:[%s10385_s4 + $0x19c] sm:$0xf0] }
  0x1b   :  { %274 = vmatpush.bf16.msra.mxu3 %v6606_v36  ;;  %v4734_v58 = vor.u32 %v6664_v56, %v4733_v55  ;;  %v5245_v59 = vld [vmem:[%s10385_s4 + $0x580] sm:$0xf]  ;;  %3170 = vmatpush.bf16.msrb.mxu1 %v4990_v57 }
  0x1c   :  { %v6792_v60 = vld [vmem:[%s10385_s4 + $0x59c] sm:$0xf0] }
  0x1d   :  { %v5501_v61 = vld [vmem:[%s10385_s4 + $0x780] sm:$0xf]  ;;  %v5246_v62 = vor.u32 %v6792_v60, %v5245_v59  ;;  %3157 = vmatpush.bf16.msrb.mxu0 %v4734_v58 }
  0x1e   :  { %261 = vmatpush.bf16.msra.mxu2 %v6597_v37  ;;  %v6856_v63 = vld [vmem:[%s10385_s4 + $0x79c] sm:$0xf0] }
  0x1f   :  { %275 = vmatpush.bf16.msra.mxu3 %v6605_v38  ;;  %v4957_v0 = vld [vmem:[%s10385_s4 + $0x340] sm:$0xf]  ;;  %v5502_v2 = vor.u32 %v6856_v63, %v5501_v61 }
  0x20   :  { %v6720_v1 = vld [vmem:[%s10385_s4 + $0x35c] sm:$0xf0] }
  0x21   :  { %v4701_v3 = vld [vmem:[%s10385_s4 + $0x140] sm:$0xf]  ;;  %v4958_v6 = vor.u32 %v6720_v1, %v4957_v0 }
  0x22   :  { %262 = vmatpush.bf16.msra.mxu2 %v6596_v39  ;;  %v6656_v4 = vld [vmem:[%s10385_s4 + $0x15c] sm:$0xf0] }
  0x23   :  { %276 = vmatpush.bf16.msra.mxu3 %v6604_v40  ;;  %v5213_v5 = vld [vmem:[%s10385_s4 + $0x540] sm:$0xf]  ;;  %v4702_v10 = vor.u32 %v6656_v4, %v4701_v3  ;;  %3171 = vmatpush.bf16.msrb.mxu1 %v4958_v6 }
  0x24   :  { %v6784_v7 = vld [vmem:[%s10385_s4 + $0x55c] sm:$0xf0] }
  0x25   :  { %v5469_v8 = vld [vmem:[%s10385_s4 + $0x740] sm:$0xf]  ;;  %v5214_v11 = vor.u32 %v6784_v7, %v5213_v5  ;;  %3158 = vmatpush.bf16.msrb.mxu0 %v4702_v10 }
  0x26   :  { %3182 = vmatpush.bf16.msrb.mxu2 %v5278_v49  ;;  %v6848_v9 = vld [vmem:[%s10385_s4 + $0x75c] sm:$0xf0] }
  0x27   :  { %3195 = vmatpush.bf16.msrb.mxu3 %v5534_v53  ;;  %v4925_v12 = vld [vmem:[%s10385_s4 + $0x300] sm:$0xf]  ;;  %v5470_v15 = vor.u32 %v6848_v9, %v5469_v8 }
  0x28   :  { %v6712_v13 = vld [vmem:[%s10385_s4 + $0x31c] sm:$0xf0] }
  0x29   :  { %v4669_v14 = vld [vmem:[%s10385_s4 + $0x100] sm:$0xf]  ;;  %v4926_v21 = vor.u32 %v6712_v13, %v4925_v12 }
  0x2a   :  { %3183 = vmatpush.bf16.msrb.mxu2 %v5246_v62  ;;  %v6648_v16 = vld [vmem:[%s10385_s4 + $0x11c] sm:$0xf0] }
  0x2b   :  { %3196 = vmatpush.bf16.msrb.mxu3 %v5502_v2  ;;  %v5181_v17 = vld [vmem:[%s10385_s4 + $0x500] sm:$0xf]  ;;  %v4670_v22 = vor.u32 %v6648_v16, %v4669_v14  ;;  %3172 = vmatpush.bf16.msrb.mxu1 %v4926_v21  ;;  %v6668_v16 = vld [vmem:[%s10385_s4 + $0x1c4] sm:$0xf] }
  0x2c   :  { %v6776_v18 = vld [vmem:[%s10385_s4 + $0x51c] sm:$0xf0] }
  0x2d   :  { %v5437_v19 = vld [vmem:[%s10385_s4 + $0x700] sm:$0xf]  ;;  %v5182_v23 = vor.u32 %v6776_v18, %v5181_v17  ;;  %3159 = vmatpush.bf16.msrb.mxu0 %v4670_v22  ;;  %v4767_v17 = vld [vmem:[%s10385_s4 + $0x1e0] sm:$0xf0] }
  0x2e   :  { %v6840_v20 = vld [vmem:[%s10385_s4 + $0x71c] sm:$0xf0]  ;;  %3184 = vmatpush.bf16.msrb.mxu2 %v5214_v11 }
  0x2f   :  { %v4893_v24 = vld [vmem:[%s10385_s4 + $0x2c0] sm:$0xf]  ;;  %3197 = vmatpush.bf16.msrb.mxu3 %v5470_v15  ;;  %v5438_v27 = vor.u32 %v6840_v20, %v5437_v19 }
  0x30   :  { %v6704_v25 = vld [vmem:[%s10385_s4 + $0x2dc] sm:$0xf0] }
  0x31   :  { %v4637_v26 = vld [vmem:[%s10385_s4 + $0xc0] sm:$0xf]  ;;  %v4894_v33 = vor.u32 %v6704_v25, %v4893_v24 }
  0x32   :  { %v6640_v28 = vld [vmem:[%s10385_s4 + $0xdc] sm:$0xf0]  ;;  %3185 = vmatpush.bf16.msrb.mxu2 %v5182_v23 }
  0x33   :  { %v5149_v29 = vld [vmem:[%s10385_s4 + $0x4c0] sm:$0xf]  ;;  %v4638_v34 = vor.u32 %v6640_v28, %v4637_v26  ;;  %3198 = vmatpush.bf16.msrb.mxu3 %v5438_v27  ;;  %3173 = vmatpush.bf16.msrb.mxu1 %v4894_v33  ;;  %v4770_v28 = vor.u32 %v6668_v16, %v4767_v17 }
  0x34   :  { %v6768_v30 = vld [vmem:[%s10385_s4 + $0x4dc] sm:$0xf0] }
  0x35   :  { %v5405_v31 = vld [vmem:[%s10385_s4 + $0x6c0] sm:$0xf]  ;;  %v5150_v35 = vor.u32 %v6768_v30, %v5149_v29  ;;  %3160 = vmatpush.bf16.msrb.mxu0 %v4638_v34  ;;  %v6660_v34 = vld [vmem:[%s10385_s4 + $0x184] sm:$0xf] }
  0x36   :  { %v6832_v32 = vld [vmem:[%s10385_s4 + $0x6dc] sm:$0xf0] }
  0x37   :  { %v4861_v36 = vld [vmem:[%s10385_s4 + $0x280] sm:$0xf]  ;;  %v5406_v39 = vor.u32 %v6832_v32, %v5405_v31  ;;  %3186 = vmatpush.bf16.msrb.mxu2 %v5150_v35  ;;  %v4735_v35 = vld [vmem:[%s10385_s4 + $0x1a0] sm:$0xf0] }
  0x38   :  { %v6696_v37 = vld [vmem:[%s10385_s4 + $0x29c] sm:$0xf0] }
  0x39   :  { %v4605_v38 = vld [vmem:[%s10385_s4 + $0x80] sm:$0xf]  ;;  %v4862_v45 = vor.u32 %v6696_v37, %v4861_v36  ;;  %3199 = vmatpush.bf16.msrb.mxu3 %v5406_v39 }
  0x3a   :  { %v6632_v40 = vld [vmem:[%s10385_s4 + $0x9c] sm:$0xf0] }
  0x3b   :  { %v5117_v41 = vld [vmem:[%s10385_s4 + $0x480] sm:$0xf]  ;;  %v4606_v47 = vor.u32 %v6632_v40, %v4605_v38  ;;  %3174 = vmatpush.bf16.msrb.mxu1 %v4862_v45  ;;  %v4738_v40 = vor.u32 %v6660_v34, %v4735_v35 }
  0x3c   :  { %v6760_v42 = vld [vmem:[%s10385_s4 + $0x49c] sm:$0xf0] }
  0x3d   :  { %v5373_v43 = vld [vmem:[%s10385_s4 + $0x680] sm:$0xf]  ;;  %v5118_v48 = vor.u32 %v6760_v42, %v5117_v41  ;;  %3161 = vmatpush.bf16.msrb.mxu0 %v4606_v47  ;;  %v4703_v47 = vld [vmem:[%s10385_s4 + $0x160] sm:$0xf0] }
  0x3e   :  { %v6824_v44 = vld [vmem:[%s10385_s4 + $0x69c] sm:$0xf0] }
  0x3f   :  { %v4829_v49 = vld [vmem:[%s10385_s4 + $0x240] sm:$0xf]  ;;  %v5374_v53 = vor.u32 %v6824_v44, %v5373_v43  ;;  %3187 = vmatpush.bf16.msrb.mxu2 %v5118_v48 }
  0x40   :  { %v6688_v50 = vld [vmem:[%s10385_s4 + $0x25c] sm:$0xf0] }
  0x41   :  { %v4573_v51 = vld [vmem:[%s10385_s4 + $0x40] sm:$0xf]  ;;  %v4830_v59 = vor.u32 %v6688_v50, %v4829_v49  ;;  %3200 = vmatpush.bf16.msrb.mxu3 %v5374_v53 }
  0x42   :  { %v6624_v54 = vld [vmem:[%s10385_s4 + $0x5c] sm:$0xf0] }
  0x43   :  { %v5085_v55 = vld [vmem:[%s10385_s4 + $0x440] sm:$0xf]  ;;  %v4574_v61 = vor.u32 %v6624_v54, %v4573_v51  ;;  %3175 = vmatpush.bf16.msrb.mxu1 %v4830_v59  ;;  %v6644_v59 = vld [vmem:[%s10385_s4 + $0x104] sm:$0xf] }
  0x44   :  { %v6752_v56 = vld [vmem:[%s10385_s4 + $0x45c] sm:$0xf0] }
  0x45   :  { %v5341_v57 = vld [vmem:[%s10385_s4 + $0x640] sm:$0xf]  ;;  %v5086_v62 = vor.u32 %v6752_v56, %v5085_v55  ;;  %3162 = vmatpush.bf16.msrb.mxu0 %v4574_v61 }
  0x46   :  { %v6816_v58 = vld [vmem:[%s10385_s4 + $0x65c] sm:$0xf0] }
  0x47   :  { %v4797_v60 = vld [vmem:[%s10385_s4 + $0x200] sm:$0xf]  ;;  %v5342_v2 = vor.u32 %v6816_v58, %v5341_v57  ;;  %3188 = vmatpush.bf16.msrb.mxu2 %v5086_v62 }
  0x48   :  { %v6680_v63 = vld [vmem:[%s10385_s4 + $0x21c] sm:$0xf0] }
  0x49   :  { %v6045_v0 = vld [vmem:[%s10385_s4 + $0xbc0] sm:$0xf]  ;;  %v4798_v9 = vor.u32 %v6680_v63, %v4797_v60  ;;  %3201 = vmatpush.bf16.msrb.mxu3 %v5342_v2  ;;  %v4671_v60 = vld [vmem:[%s10385_s4 + $0x120] sm:$0xf0] }
  0x4a   :  { %v6992_v1 = vld [vmem:[%s10385_s4 + $0xbdc] sm:$0xf0]  ;;  %v4674_v62 = vor.u32 %v6644_v59, %v4671_v60  ;;  %v5023_v60 = vld [vmem:[%s10385_s4 + $0x3e0] sm:$0xf0] }
  0x4b   :  { %v4541_v3 = vld [vmem:[%s10385_s4] sm:$0xf]  ;;  %v6046_v14 = vor.u32 %v6992_v1, %v6045_v0  ;;  %3176 = vmatpush.bf16.msrb.mxu1 %v4798_v9 }
  0x4c   :  { %v6616_v4 = vld [vmem:[%s10385_s4 + $0x1c] sm:$0xf0] }
  0x4d   :  { %v5053_v5 = vld [vmem:[%s10385_s4 + $0x400] sm:$0xf]  ;;  %v4542_v20 = vor.u32 %v6616_v4, %v4541_v3 }
  0x4e   :  { %v6744_v6 = vld [vmem:[%s10385_s4 + $0x41c] sm:$0xf0] }
  0x4f   :  { %v5309_v7 = vld [vmem:[%s10385_s4 + $0x600] sm:$0xf]  ;;  %v5054_v21 = vor.u32 %v6744_v6, %v5053_v5  ;;  %3221 = vmatpush.bf16.msra.mxu1 %v6046_v14  ;;  %3163 = vmatpush.bf16.msrb.mxu0 %v4542_v20  ;;  %v4607_v20 = vld [vmem:[%s10385_s4 + $0xa0] sm:$0xf0] }
  0x50   :  { %v6808_v8 = vld [vmem:[%s10385_s4 + $0x61c] sm:$0xf0] }
  0x51   :  { %v5789_v10 = vld [vmem:[%s10385_s4 + $0x9c0] sm:$0xf]  ;;  %v5310_v25 = vor.u32 %v6808_v8, %v5309_v7  ;;  %3189 = vmatpush.bf16.msrb.mxu2 %v5054_v21  ;;  %v6636_v7 = vld [vmem:[%s10385_s4 + $0xc4] sm:$0xf] }
  0x52   :  { %v6928_v11 = vld [vmem:[%s10385_s4 + $0x9dc] sm:$0xf0]  ;;  %v4639_v8 = vld [vmem:[%s10385_s4 + $0xe0] sm:$0xf0] }
  0x53   :  { %v6301_v12 = vld [vmem:[%s10385_s4 + $0xdc0] sm:$0xf]  ;;  %v5790_v26 = vor.u32 %v6928_v11, %v5789_v10  ;;  %3202 = vmatpush.bf16.msrb.mxu3 %v5310_v25  ;;  %v4642_v10 = vor.u32 %v6636_v7, %v4639_v8  ;;  %v5791_v7 = vld [vmem:[%s10385_s4 + $0x9e0] sm:$0xf0] }
  0x54   :  { %v7056_v15 = vld [vmem:[%s10385_s4 + $0xddc] sm:$0xf0] }
  0x55   :  { %v6013_v22 = vld [vmem:[%s10385_s4 + $0xb80] sm:$0xf]  ;;  %v6302_v27 = vor.u32 %v7056_v15, %v6301_v12  ;;  %3208 = vmatpush.bf16.msra.mxu0 %v5790_v26 }
  0x56   :  { %v6984_v23 = vld [vmem:[%s10385_s4 + $0xb9c] sm:$0xf0] }
  0x57   :  { %v5757_v29 = vld [vmem:[%s10385_s4 + $0x980] sm:$0xf]  ;;  %v6014_v32 = vor.u32 %v6984_v23, %v6013_v22 }
  0x58   :  { %v6920_v30 = vld [vmem:[%s10385_s4 + $0x99c] sm:$0xf0] }
  0x59   :  { %v6269_v31 = vld [vmem:[%s10385_s4 + $0xd80] sm:$0xf]  ;;  %v5758_v38 = vor.u32 %v6920_v30, %v5757_v29  ;;  %3222 = vmatpush.bf16.msra.mxu1 %v6014_v32  ;;  %v4575_v32 = vld [vmem:[%s10385_s4 + $0x60] sm:$0xf0] }
  0x5a   :  { %v7048_v33 = vld [vmem:[%s10385_s4 + $0xd9c] sm:$0xf0] }
  0x5b   :  { %v5981_v36 = vld [vmem:[%s10385_s4 + $0xb40] sm:$0xf]  ;;  %v6270_v39 = vor.u32 %v7048_v33, %v6269_v31  ;;  %3209 = vmatpush.bf16.msra.mxu0 %v5758_v38  ;;  %v6620_v31 = vld [vmem:[%s10385_s4 + $0x44] sm:$0xf] }
  0x5c   :  { %v6976_v37 = vld [vmem:[%s10385_s4 + $0xb5c] sm:$0xf0]  ;;  %v4578_v34 = vor.u32 %v6620_v31, %v4575_v32  ;;  %v6716_v32 = vld [vmem:[%s10385_s4 + $0x344] sm:$0xf] }
  0x5d   :  { %v5725_v41 = vld [vmem:[%s10385_s4 + $0x940] sm:$0xf]  ;;  %v5982_v44 = vor.u32 %v6976_v37, %v5981_v36 }
  0x5e   :  { %v6912_v42 = vld [vmem:[%s10385_s4 + $0x95c] sm:$0xf0] }
  0x5f   :  { %v6237_v43 = vld [vmem:[%s10385_s4 + $0xd40] sm:$0xf]  ;;  %v5726_v50 = vor.u32 %v6912_v42, %v5725_v41  ;;  %3223 = vmatpush.bf16.msra.mxu1 %v5982_v44  ;;  %v4543_v44 = vld [vmem:[%s10385_s4 + $0x20] sm:$0xf0] }
  0x60   :  { %v7040_v45 = vld [vmem:[%s10385_s4 + $0xd5c] sm:$0xf0] }
  0x61   :  { %v5949_v48 = vld [vmem:[%s10385_s4 + $0xb00] sm:$0xf]  ;;  %v6238_v51 = vor.u32 %v7040_v45, %v6237_v43  ;;  %3210 = vmatpush.bf16.msra.mxu0 %v5726_v50  ;;  %v6612_v43 = vld [vmem:[%s10385_s4 + $0x4] sm:$0xf] }
  0x62   :  { %v6968_v49 = vld [vmem:[%s10385_s4 + $0xb1c] sm:$0xf0] }
  0x63   :  { %v5950_v53 = vor.u32 %v6968_v49, %v5949_v48  ;;  %v5693_v54 = vld [vmem:[%s10385_s4 + $0x900] sm:$0xf] }
  0x64   :  { %v6904_v55 = vld [vmem:[%s10385_s4 + $0x91c] sm:$0xf0] }
  0x65   :  { %3224 = vmatpush.bf16.msra.mxu1 %v5950_v53  ;;  %v6205_v56 = vld [vmem:[%s10385_s4 + $0xd00] sm:$0xf]  ;;  %v5694_v57 = vor.u32 %v6904_v55, %v5693_v54  ;;  %v6796_v54 = vld [vmem:[%s10385_s4 + $0x5c4] sm:$0xf] }
  0x66   :  { %v7032_v58 = vld [vmem:[%s10385_s4 + $0xd1c] sm:$0xf0]  ;;  %v5279_v55 = vld [vmem:[%s10385_s4 + $0x5e0] sm:$0xf0] }
  0x67   :  { %v6206_v61 = vor.u32 %v7032_v58, %v6205_v56  ;;  %v5917_v63 = vld [vmem:[%s10385_s4 + $0xac0] sm:$0xf]  ;;  %3211 = vmatpush.bf16.msra.mxu0 %v5694_v57  ;;  %v6732_v57 = vld [vmem:[%s10385_s4 + $0x3c4] sm:$0xf] }
  0x68   :  { %v6960_v0 = vld [vmem:[%s10385_s4 + $0xadc] sm:$0xf0] }
  0x69   :  { %v5918_v1 = vor.u32 %v6960_v0, %v5917_v63  ;;  %v5661_v2 = vld [vmem:[%s10385_s4 + $0x8c0] sm:$0xf] }
  0x6a   :  { %v6896_v3 = vld [vmem:[%s10385_s4 + $0x8dc] sm:$0xf0] }
  0x6b   :  { %v6173_v4 = vld [vmem:[%s10385_s4 + $0xcc0] sm:$0xf]  ;;  %3225 = vmatpush.bf16.msra.mxu1 %v5918_v1  ;;  %v5662_v5 = vor.u32 %v6896_v3, %v5661_v2  ;;  %v5535_v1 = vld [vmem:[%s10385_s4 + $0x7e0] sm:$0xf0] }
  0x6c   :  { %v7024_v6 = vld [vmem:[%s10385_s4 + $0xcdc] sm:$0xf0]  ;;  %v6924_v2 = vld [vmem:[%s10385_s4 + $0x9c4] sm:$0xf] }
  0x6d   :  { %v6174_v9 = vor.u32 %v7024_v6, %v6173_v4  ;;  %v5885_v11 = vld [vmem:[%s10385_s4 + $0xa80] sm:$0xf]  ;;  %3212 = vmatpush.bf16.msra.mxu0 %v5662_v5 }
  0x6e   :  { %v6952_v12 = vld [vmem:[%s10385_s4 + $0xa9c] sm:$0xf0] }
  0x6f   :  { %v5629_v14 = vld [vmem:[%s10385_s4 + $0x880] sm:$0xf] }
  0x70   :  { %v6888_v15 = vld [vmem:[%s10385_s4 + $0x89c] sm:$0xf0] }
  0x71   :  { %v6141_v16 = vld [vmem:[%s10385_s4 + $0xc80] sm:$0xf]  ;;  %v5630_v17 = vor.u32 %v6888_v15, %v5629_v14 }
  0x72   :  { %v5853_v23 = vld [vmem:[%s10385_s4 + $0xa40] sm:$0xf] }
  0x73   :  { %3213 = vmatpush.bf16.msra.mxu0 %v5630_v17  ;;  %v5597_v26 = vld [vmem:[%s10385_s4 + $0x840] sm:$0xf] }
  0x74   :  { %v7008_v30 = vld [vmem:[%s10385_s4 + $0xc5c] sm:$0xf0] }
  0x75   :  { %v5821_v35 = vld [vmem:[%s10385_s4 + $0xa00] sm:$0xf] }
  0x76   :  { %v6936_v36 = vld [vmem:[%s10385_s4 + $0xa1c] sm:$0xf0] }
  0x77   :  { %v5822_v37 = vor.u32 %v6936_v36, %v5821_v35  ;;  %v5565_v38 = vld [vmem:[%s10385_s4 + $0x800] sm:$0xf]  ;;  %v5471_v36 = vld [vmem:[%s10385_s4 + $0x760] sm:$0xf0] }
  0x78   :  { %v7000_v42 = vld [vmem:[%s10385_s4 + $0xc1c] sm:$0xf0] }
  0x90   :  { %v102_v46 = vpop.f32.mrf.mxu0 }
  0x91   :  { %v116_v52 = vpop.f32.mrf.mxu1 }
  0x98   :  { %v104_v13 = vpop.f32.mrf.mxu0 }
  0x99   :  { %v118_v18 = vpop.f32.mrf.mxu1  ;;  %v121_v19 = vpack.c.bf16 %v104_v13, %v102_v46  ;;  %v6652_v46 = vld [vmem:[%s10385_s4 + $0x144] sm:$0xf]  ;;  %v5886_v13 = vor.u32 %v6952_v12, %v5885_v11 }
  0x9a   :  { %v122_v24 = vpack.c.bf16 %v118_v18, %v116_v52  ;;  %v4706_v52 = vor.u32 %v6652_v46, %v4703_v47  ;;  %v7016_v18 = vld [vmem:[%s10385_s4 + $0xc9c] sm:$0xf0]  ;;  %v4546_v46 = vor.u32 %v6612_v43, %v4543_v44  ;;  %v5247_v11 = vld [vmem:[%s10385_s4 + $0x5a0] sm:$0xf0] }
  0x9b   :  { %263 = vmatmul.bf16.vlgmr.msra.gmra.mxu2 %v121_v19  ;;  %3226 = vmatpush.bf16.msra.mxu1 %v5886_v13  ;;  %v6628_v19 = vld [vmem:[%s10385_s4 + $0x84] sm:$0xf]  ;;  %v6142_v21 = vor.u32 %v7016_v18, %v6141_v16  ;;  %v7127_v47 = vld [vmem:[%s10384_s3] ss:$0 sm:$0xff] }
  0x9c   :  { %277 = vmatmul.bf16.vlgmr.msra.gmra.mxu3 %v122_v24  ;;  %3234 = vmatpush.bf16.msra.mxu2 %v6302_v27  ;;  %v4610_v22 = vor.u32 %v6628_v19, %v4607_v20  ;;  %v6944_v24 = vld [vmem:[%s10385_s4 + $0xa5c] sm:$0xf0]  ;;  %v5794_v19 = vor.u32 %v6924_v2, %v5791_v7  ;;  %v6724_v20 = vld [vmem:[%s10385_s4 + $0x384] sm:$0xf] }
  0x9d   :  { %3247 = vmatpush.bf16.msra.mxu3 %v4770_v28  ;;  %v5854_v25 = vor.u32 %v6944_v24, %v5853_v23  ;;  %v6880_v27 = vld [vmem:[%s10385_s4 + $0x85c] sm:$0xf0]  ;;  %v5503_v24 = vld [vmem:[%s10385_s4 + $0x7a0] sm:$0xf0] }
  0x9e   :  { %v6109_v28 = vld [vmem:[%s10385_s4 + $0xc40] sm:$0xf]  ;;  %v5598_v29 = vor.u32 %v6880_v27, %v5597_v26  ;;  %v5759_v26 = vld [vmem:[%s10385_s4 + $0x9a0] sm:$0xf0] }
  0x9f   :  { %3227 = vmatpush.bf16.msra.mxu1 %v5854_v25  ;;  %v6110_v33 = vor.u32 %v7008_v30, %v6109_v28  ;;  %v6916_v25 = vld [vmem:[%s10385_s4 + $0x984] sm:$0xf] }
  0xa0   :  { %3235 = vmatpush.bf16.msra.mxu2 %v6270_v39  ;;  %3214 = vmatpush.bf16.msra.mxu0 %v5598_v29  ;;  %v6872_v39 = vld [vmem:[%s10385_s4 + $0x81c] sm:$0xf0]  ;;  %v6780_v27 = vld [vmem:[%s10385_s4 + $0x544] sm:$0xf]  ;;  %v5762_v31 = vor.u32 %v6916_v25, %v5759_v26 }
  0xa1   :  { %3248 = vmatpush.bf16.msra.mxu3 %v4738_v40  ;;  %v6077_v40 = vld [vmem:[%s10385_s4 + $0xc00] sm:$0xf]  ;;  %v5566_v41 = vor.u32 %v6872_v39, %v5565_v38  ;;  %v5215_v28 = vld [vmem:[%s10385_s4 + $0x560] sm:$0xf0] }
  0xa2   :  { %v6078_v45 = vor.u32 %v7000_v42, %v6077_v40  ;;  %v5218_v35 = vor.u32 %v6780_v27, %v5215_v28  ;;  %v5727_v38 = vld [vmem:[%s10385_s4 + $0x960] sm:$0xf0] }
  0xa3   :  { %3228 = vmatpush.bf16.msra.mxu1 %v5822_v37  ;;  %v6908_v37 = vld [vmem:[%s10385_s4 + $0x944] sm:$0xf] }
  0xa4   :  { %3236 = vmatpush.bf16.msra.mxu2 %v6238_v51  ;;  %3215 = vmatpush.bf16.msra.mxu0 %v5566_v41  ;;  %v6772_v39 = vld [vmem:[%s10385_s4 + $0x504] sm:$0xf] }
  0xa5   :  { %3249 = vmatpush.bf16.msra.mxu3 %v4706_v52  ;;  %v5183_v40 = vld [vmem:[%s10385_s4 + $0x520] sm:$0xf0] }
  0xa6   :  { %v6708_v44 = vld [vmem:[%s10385_s4 + $0x304] sm:$0xf] }
  0xa7   :  { %v5407_v7 = vld [vmem:[%s10385_s4 + $0x6e0] sm:$0xf0] }
  0xa8   :  { %3237 = vmatpush.bf16.msra.mxu2 %v6206_v61  ;;  %v6860_v61 = vld [vmem:[%s10385_s4 + $0x7c4] sm:$0xf] }
  0xa9   :  { %3250 = vmatpush.bf16.msra.mxu3 %v4674_v62  ;;  %v5282_v62 = vor.u32 %v6796_v54, %v5279_v55  ;;  %v5538_v15 = vor.u32 %v6860_v61, %v5535_v1  ;;  %v6900_v54 = vld [vmem:[%s10385_s4 + $0x904] sm:$0xf] }
  0xaa   :  { %v5695_v55 = vld [vmem:[%s10385_s4 + $0x920] sm:$0xf0] }
  0xab   :  { %v6764_v61 = vld [vmem:[%s10385_s4 + $0x4c4] sm:$0xf]  ;;  %v5698_v1 = vor.u32 %v6900_v54, %v5695_v55 }
  0xac   :  { %3238 = vmatpush.bf16.msra.mxu2 %v6174_v9  ;;  %v5026_v9 = vor.u32 %v6732_v57, %v5023_v60  ;;  %v6820_v25 = vld [vmem:[%s10385_s4 + $0x684] sm:$0xf] }
  0xad   :  { %3251 = vmatpush.bf16.msra.mxu3 %v4642_v10  ;;  %v6788_v10 = vld [vmem:[%s10385_s4 + $0x584] sm:$0xf] }
  0xae   :  { %v5250_v23 = vor.u32 %v6788_v10, %v5247_v11  ;;  %v6892_v10 = vld [vmem:[%s10385_s4 + $0x8c4] sm:$0xf] }
  0xaf   :  { %v5663_v11 = vld [vmem:[%s10385_s4 + $0x8e0] sm:$0xf0] }
  0xb0   :  { %3239 = vmatpush.bf16.msra.mxu2 %v6142_v21  ;;  %v4991_v21 = vld [vmem:[%s10385_s4 + $0x3a0] sm:$0xf0] }
  0xb1   :  { %3252 = vmatpush.bf16.msra.mxu3 %v4610_v22  ;;  %v6852_v22 = vld [vmem:[%s10385_s4 + $0x784] sm:$0xf]  ;;  %v4994_v29 = vor.u32 %v6724_v20, %v4991_v21 }
  0xb2   :  { %v5506_v30 = vor.u32 %v6852_v22, %v5503_v24  ;;  %v6692_v21 = vld [vmem:[%s10385_s4 + $0x284] sm:$0xf] }
  0xb3   :  { %v4863_v24 = vld [vmem:[%s10385_s4 + $0x2a0] sm:$0xf0] }
  0xb4   :  { %3240 = vmatpush.bf16.msra.mxu2 %v6110_v33  ;;  %v4959_v33 = vld [vmem:[%s10385_s4 + $0x360] sm:$0xf0] }
  0xb5   :  { %3253 = vmatpush.bf16.msra.mxu3 %v4578_v34  ;;  %v6844_v34 = vld [vmem:[%s10385_s4 + $0x744] sm:$0xf]  ;;  %v4962_v43 = vor.u32 %v6716_v32, %v4959_v33  ;;  %v4866_v32 = vor.u32 %v6692_v21, %v4863_v24 }
  0xb6   :  { %v5375_v26 = vld [vmem:[%s10385_s4 + $0x6a0] sm:$0xf0] }
  0xb7   :  { %v6884_v28 = vld [vmem:[%s10385_s4 + $0x884] sm:$0xf]  ;;  %v5378_v33 = vor.u32 %v6820_v25, %v5375_v26 }
  0xb8   :  { %3241 = vmatpush.bf16.msra.mxu2 %v6078_v45  ;;  %v4927_v45 = vld [vmem:[%s10385_s4 + $0x320] sm:$0xf0] }
  0xb9   :  { %3254 = vmatpush.bf16.msra.mxu3 %v4546_v46  ;;  %v5474_v46 = vor.u32 %v6844_v34, %v5471_v36  ;;  %v4930_v60 = vor.u32 %v6708_v44, %v4927_v45  ;;  %v6684_v34 = vld [vmem:[%s10385_s4 + $0x244] sm:$0xf] }
  0xba   :  { %v4831_v36 = vld [vmem:[%s10385_s4 + $0x260] sm:$0xf0] }
  0xbb   :  { %v7052_v44 = vld [vmem:[%s10385_s4 + $0xdc4] sm:$0xf] }
  0xbc   :  { %v6303_v45 = vld [vmem:[%s10385_s4 + $0xde0] sm:$0xf0] }
  0xbd   :  { %v5311_v54 = vld [vmem:[%s10385_s4 + $0x620] sm:$0xf0] }
  0xbe   :  { %v6868_v55 = vld [vmem:[%s10385_s4 + $0x804] sm:$0xf] }
  0xbf   :  { %v6239_v24 = vld [vmem:[%s10385_s4 + $0xd60] sm:$0xf0] }
 0x11e   :  { %v264_v48 = vpop.f32.mrf.mxu2 }
 0x11f   :  { %v265_v49 = vadd.f32 %v7127_v47, %v264_v48  ;;  %v278_v50 = vpop.f32.mrf.mxu3  ;;  %v6836_v48 = vld [vmem:[%s10385_s4 + $0x704] sm:$0xf] }
 0x121   :  { %v7699_v51 = vadd.f32 %v278_v50, %v265_v49  ;;  %v5439_v49 = vld [vmem:[%s10385_s4 + $0x720] sm:$0xf0] }
 0x123   :  { %283 = vst [vmem:[%s10389_s8] sm:$0xff] %v7699_v51  ;;  %v869_v59 = vrot.slane %v7699_v51, 1  ;;  %v872_v63 = vrot.slane %v7699_v51, 2  ;;  %v876_v0 = vrot.slane %v7699_v51, 3  ;;  %v4392_v41 = vrot.slane %v7699_v51, 7 }
 0x124   :  { %v884_v57 = vrot.slane %v7699_v51, 5 }
 0x126   :  { %v266_v52 = vpop.f32.mrf.mxu2 }
 0x127   :  { %v267_v53 = vadd.f32 %v7127_v47, %v266_v52  ;;  %v280_v56 = vpop.f32.mrf.mxu3  ;;  %v5730_v47 = vor.u32 %v6908_v37, %v5727_v38  ;;  %v6812_v37 = vld [vmem:[%s10385_s4 + $0x644] sm:$0xf] }
 0x128   :  { %v5343_v38 = vld [vmem:[%s10385_s4 + $0x660] sm:$0xf0] }
 0x129   :  { %v7714_v58 = vadd.f32 %v280_v56, %v267_v53  ;;  %v5186_v53 = vor.u32 %v6772_v39, %v5183_v40  ;;  %v6876_v40 = vld [vmem:[%s10385_s4 + $0x844] sm:$0xf] }
 0x12b   :  { %284 = vst [vmem:[%s10389_s8 + $0x8] sm:$0xff] %v7714_v58  ;;  %v870_v3 = vsel %vm866_vm1, %v7714_v58, %v869_v59  ;;  %v865_v4 = vrot.slane %v7714_v58, 7  ;;  %v873_v5 = vrot.slane %v7714_v58, 1  ;;  %v877_v6 = vrot.slane %v7714_v58, 2 }
 0x12c   :  { %v7743_v8 = vpack.c.bf16 %v870_v3, %v870_v3  ;;  %v4393_v42 = vrot.slane %v7714_v58, 6  ;;  %v885_v50 = vrot.slane %v7714_v58, 4  ;;  %v881_v56 = vrot.slane %v7714_v58, 3  ;;  %v6700_v3 = vld [vmem:[%s10385_s4 + $0x2c4] sm:$0xf] }
 0x12d   :  { %v867_v12 = vsel %vm866_vm1, %v865_v4, %v7699_v51  ;;  %v874_v13 = vsel %vm866_vm1, %v873_v5, %v872_v63  ;;  %v878_v14 = vsel %vm866_vm1, %v877_v6, %v876_v0  ;;  %v889_v59 = vrot.slane %v7714_v58, 5  ;;  %v4895_v5 = vld [vmem:[%s10385_s4 + $0x2e0] sm:$0xf0] }
 0x12e   :  { %3177 = vmatmul.bf16.vlgmr.msrb.gmra.mxu1 %v7743_v8  ;;  %v7756_v16 = vpack.c.bf16 %v867_v12, %v867_v12  ;;  %v7758_v17 = vpack.c.bf16 %v874_v13, %v874_v13  ;;  %v7760_v18 = vpack.c.bf16 %v878_v14, %v878_v14  ;;  %v7829_v52 = vsel %vm866_vm1, %v4393_v42, %v4392_v41  ;;  %v6828_v6 = vld [vmem:[%s10385_s4 + $0x6c4] sm:$0xf] }
 0x12f   :  { %3273 = vmatpush.bf16.msrb.mxu1 %v5282_v62  ;;  %v5151_v62 = vld [vmem:[%s10385_s4 + $0x4e0] sm:$0xf0]  ;;  %v880_v63 = vrot.slane %v7699_v51, 4  ;;  %v5442_v0 = vor.u32 %v6836_v48, %v5439_v49  ;;  %v886_v2 = vsel %vm866_vm1, %v885_v50, %v884_v57  ;;  %v888_v58 = vrot.slane %v7699_v51, 6 }
 0x130   :  { %3164 = vmatmul.bf16.vlgmr.msrb.gmra.mxu0 %v7756_v16  ;;  %3190 = vmatmul.bf16.vlgmr.msrb.gmra.mxu2 %v7758_v17  ;;  %v5154_v51 = vor.u32 %v6764_v61, %v5151_v62  ;;  %v7869_v12 = vpack.c.bf16 %v886_v2, %v886_v2  ;;  %v6756_v13 = vld [vmem:[%s10385_s4 + $0x484] sm:$0xf]  ;;  %v5410_v20 = vor.u32 %v6828_v6, %v5407_v7  ;;  %v4773_v61 = vld [vmem:[%s10385_s4 + $0x1c8] sm:$0xf] }
 0x131   :  { %3203 = vmatmul.bf16.vlgmr.msrb.gmra.mxu3 %v7760_v18  ;;  %3260 = vmatpush.bf16.msrb.mxu0 %v5026_v9  ;;  %v882_v4 = vsel %vm866_vm1, %v881_v56, %v880_v63  ;;  %v890_v9 = vsel %vm866_vm1, %v889_v59, %v888_v58  ;;  %v5119_v14 = vld [vmem:[%s10385_s4 + $0x4a0] sm:$0xf0]  ;;  %v6306_v62 = vor.u32 %v7052_v44, %v6303_v45  ;;  %v6673_v63 = vld [vmem:[%s10385_s4 + $0x1e4] sm:$0xf0] }
 0x132   :  { %3286 = vmatpush.bf16.msrb.mxu2 %v5538_v15  ;;  %3299 = vmatpush.bf16.msrb.mxu3 %v5794_v19  ;;  %v7877_v15 = vpack.c.bf16 %v882_v4, %v882_v4  ;;  %v4898_v19 = vor.u32 %v6700_v3, %v4895_v5  ;;  %v7883_v22 = vpack.c.bf16 %v890_v9, %v890_v9  ;;  %v5599_v41 = vld [vmem:[%s10385_s4 + $0x860] sm:$0xf0]  ;;  %v6713_v44 = vld [vmem:[%s10385_s4 + $0x324] sm:$0xf0] }
 0x133   :  { %3274 = vmatpush.bf16.msrb.mxu1 %v5250_v23  ;;  %v5666_v23 = vor.u32 %v6892_v10, %v5663_v11  ;;  %v5122_v27 = vor.u32 %v6756_v13, %v5119_v14  ;;  %v6740_v42 = vld [vmem:[%s10385_s4 + $0x404] sm:$0xf]  ;;  %v4774_v7 = vor.u32 %v6673_v63, %v4773_v61  ;;  %v4741_v11 = vld [vmem:[%s10385_s4 + $0x188] sm:$0xf] }
 0x134   :  { %v6676_v48 = vld [vmem:[%s10385_s4 + $0x204] sm:$0xf]  ;;  %v6665_v13 = vld [vmem:[%s10385_s4 + $0x1a4] sm:$0xf0] }
 0x135   :  { %3261 = vmatpush.bf16.msrb.mxu0 %v4994_v29  ;;  %v5631_v29 = vld [vmem:[%s10385_s4 + $0x8a0] sm:$0xf0]  ;;  %v4997_v14 = vld [vmem:[%s10385_s4 + $0x388] sm:$0xf]  ;;  %v4742_v25 = vor.u32 %v6665_v13, %v4741_v11 }
 0x136   :  { %3287 = vmatpush.bf16.msrb.mxu2 %v5506_v30  ;;  %3300 = vmatpush.bf16.msrb.mxu3 %v5762_v31  ;;  %v6748_v30 = vld [vmem:[%s10385_s4 + $0x444] sm:$0xf] }
 0x137   :  { %3275 = vmatpush.bf16.msrb.mxu1 %v5218_v35  ;;  %v5087_v31 = vld [vmem:[%s10385_s4 + $0x460] sm:$0xf0]  ;;  %v5634_v35 = vor.u32 %v6884_v28, %v5631_v29  ;;  %v4709_v29 = vld [vmem:[%s10385_s4 + $0x148] sm:$0xf] }
 0x138   :  { %v5090_v39 = vor.u32 %v6748_v30, %v5087_v31  ;;  %v4799_v49 = vld [vmem:[%s10385_s4 + $0x220] sm:$0xf0]  ;;  %v6657_v30 = vld [vmem:[%s10385_s4 + $0x164] sm:$0xf0] }
 0x139   :  { %3262 = vmatpush.bf16.msrb.mxu0 %v4962_v43  ;;  %v5055_v43 = vld [vmem:[%s10385_s4 + $0x420] sm:$0xf0]  ;;  %v4802_v2 = vor.u32 %v6676_v48, %v4799_v49  ;;  %v4965_v31 = vld [vmem:[%s10385_s4 + $0x348] sm:$0xf] }
 0x13a   :  { %3288 = vmatpush.bf16.msrb.mxu2 %v5474_v46  ;;  %3301 = vmatpush.bf16.msrb.mxu3 %v5730_v47  ;;  %v4834_v46 = vor.u32 %v6684_v34, %v4831_v36  ;;  %v5346_v47 = vor.u32 %v6812_v37, %v5343_v38  ;;  %v6804_v50 = vld [vmem:[%s10385_s4 + $0x604] sm:$0xf]  ;;  %v5058_v57 = vor.u32 %v6740_v42, %v5055_v43  ;;  %v6649_v42 = vld [vmem:[%s10385_s4 + $0x124] sm:$0xf0] }
 0x13b   :  { %3276 = vmatpush.bf16.msrb.mxu1 %v5186_v53  ;;  %v5602_v53 = vor.u32 %v6876_v40, %v5599_v41  ;;  %v5567_v56 = vld [vmem:[%s10385_s4 + $0x820] sm:$0xf0]  ;;  %v5314_v58 = vor.u32 %v6804_v50, %v5311_v54  ;;  %v4710_v37 = vor.u32 %v6657_v30, %v4709_v29  ;;  %v4677_v41 = vld [vmem:[%s10385_s4 + $0x108] sm:$0xf] }
 0x13c   :  { %v6988_v59 = vld [vmem:[%s10385_s4 + $0xbc4] sm:$0xf]  ;;  %v5570_v3 = vor.u32 %v6868_v55, %v5567_v56  ;;  %v4933_v43 = vld [vmem:[%s10385_s4 + $0x308] sm:$0xf]  ;;  %v4678_v49 = vor.u32 %v6649_v42, %v4677_v41 }
 0x13d   :  { %3263 = vmatpush.bf16.msrb.mxu0 %v4930_v60  ;;  %v6047_v60 = vld [vmem:[%s10385_s4 + $0xbe0] sm:$0xf0]  ;;  %v4934_v50 = vor.u32 %v6713_v44, %v4933_v43  ;;  %v4645_v55 = vld [vmem:[%s10385_s4 + $0xc8] sm:$0xf] }
 0x13e   :  { %3289 = vmatpush.bf16.msrb.mxu2 %v5442_v0  ;;  %3302 = vmatpush.bf16.msrb.mxu3 %v5698_v1  ;;  %v5029_v0 = vld [vmem:[%s10385_s4 + $0x3c8] sm:$0xf]  ;;  %v6050_v4 = vor.u32 %v6988_v59, %v6047_v60  ;;  %v7044_v5 = vld [vmem:[%s10385_s4 + $0xd84] sm:$0xf] }
 0x13f   :  { %3229 = vmatmul.bf16.vlgmr.msra.gmra.mxu1 %v7869_v12  ;;  %v6737_v1 = vld [vmem:[%s10385_s4 + $0x3e4] sm:$0xf0]  ;;  %v6271_v6 = vld [vmem:[%s10385_s4 + $0xda0] sm:$0xf0] }
 0x140   :  { %3277 = vmatpush.bf16.msrb.mxu1 %v5154_v51  ;;  %3216 = vmatmul.bf16.vlgmr.msra.gmra.mxu0 %v7877_v15  ;;  %v5030_v51 = vor.u32 %v6737_v1, %v5029_v0  ;;  %v6980_v9 = vld [vmem:[%s10385_s4 + $0xb84] sm:$0xf]  ;;  %v6641_v56 = vld [vmem:[%s10385_s4 + $0xe4] sm:$0xf0] }
 0x141   :  { %3242 = vmatmul.bf16.vlgmr.msra.gmra.mxu2 %v7883_v22  ;;  %3255 = vmatmul.bf16.vlgmr.msra.gmra.mxu3 %v7756_v16  ;;  %v6015_v10 = vld [vmem:[%s10385_s4 + $0xba0] sm:$0xf0]  ;;  %v6705_v59 = vld [vmem:[%s10385_s4 + $0x2e4] sm:$0xf0]  ;;  %v4646_v0 = vor.u32 %v6641_v56, %v4645_v55 }
 0x142   :  { %3264 = vmatpush.bf16.msrb.mxu0 %v4898_v19  ;;  %3290 = vmatpush.bf16.msrb.mxu2 %v5410_v20  ;;  %v6729_v19 = vld [vmem:[%s10385_s4 + $0x3a4] sm:$0xf0]  ;;  %v6274_v20 = vor.u32 %v7044_v5, %v6271_v6  ;;  %v6018_v21 = vor.u32 %v6980_v9, %v6015_v10  ;;  %v5983_v28 = vld [vmem:[%s10385_s4 + $0xb60] sm:$0xf0] }
 0x143   :  { %3303 = vmatpush.bf16.msrb.mxu3 %v5666_v23  ;;  %v7036_v23 = vld [vmem:[%s10385_s4 + $0xd44] sm:$0xf]  ;;  %v4998_v26 = vor.u32 %v6729_v19, %v4997_v14  ;;  %v4869_v5 = vld [vmem:[%s10385_s4 + $0x288] sm:$0xf] }
 0x144   :  { %3278 = vmatpush.bf16.msrb.mxu1 %v5122_v27  ;;  %v6972_v27 = vld [vmem:[%s10385_s4 + $0xb44] sm:$0xf]  ;;  %v6697_v6 = vld [vmem:[%s10385_s4 + $0x2a4] sm:$0xf0] }
 0x145   :  { %v5986_v34 = vor.u32 %v6972_v27, %v5983_v28  ;;  %v6207_v36 = vld [vmem:[%s10385_s4 + $0xd20] sm:$0xf0]  ;;  %v4870_v13 = vor.u32 %v6697_v6, %v4869_v5  ;;  %v5541_v29 = vld [vmem:[%s10385_s4 + $0x7c8] sm:$0xf] }
 0x146   :  { %3265 = vmatpush.bf16.msrb.mxu0 %v4866_v32  ;;  %3291 = vmatpush.bf16.msrb.mxu2 %v5378_v33  ;;  %v6721_v32 = vld [vmem:[%s10385_s4 + $0x364] sm:$0xf0]  ;;  %v6242_v33 = vor.u32 %v7036_v23, %v6239_v24  ;;  %v5951_v40 = vld [vmem:[%s10385_s4 + $0xb20] sm:$0xf0] }
 0x147   :  { %3304 = vmatpush.bf16.msrb.mxu3 %v5634_v35  ;;  %v7028_v35 = vld [vmem:[%s10385_s4 + $0xd04] sm:$0xf]  ;;  %v4966_v38 = vor.u32 %v6721_v32, %v4965_v31  ;;  %v4837_v23 = vld [vmem:[%s10385_s4 + $0x248] sm:$0xf] }
 0x148   :  { %3279 = vmatpush.bf16.msrb.mxu1 %v5090_v39  ;;  %v6964_v39 = vld [vmem:[%s10385_s4 + $0xb04] sm:$0xf]  ;;  %v6210_v45 = vor.u32 %v7028_v35, %v6207_v36  ;;  %v6689_v24 = vld [vmem:[%s10385_s4 + $0x264] sm:$0xf0] }
 0x149   :  { %v6175_v48 = vld [vmem:[%s10385_s4 + $0xce0] sm:$0xf0]  ;;  %v6865_v30 = vld [vmem:[%s10385_s4 + $0x7e4] sm:$0xf0]  ;;  %v4838_v32 = vor.u32 %v6689_v24, %v4837_v23 }
 0x14a   :  { %3266 = vmatpush.bf16.msrb.mxu0 %v4834_v46  ;;  %3292 = vmatpush.bf16.msrb.mxu2 %v5346_v47  ;;  %v5954_v46 = vor.u32 %v6964_v39, %v5951_v40  ;;  %v7020_v47 = vld [vmem:[%s10385_s4 + $0xcc4] sm:$0xf]  ;;  %v4549_v35 = vld [vmem:[%s10385_s4 + $0x8] sm:$0xf]  ;;  %v5542_v43 = vor.u32 %v6865_v30, %v5541_v29 }
 0x14b   :  { %3305 = vmatpush.bf16.msrb.mxu3 %v5602_v53  ;;  %v6956_v53 = vld [vmem:[%s10385_s4 + $0xac4] sm:$0xf]  ;;  %v6178_v60 = vor.u32 %v7020_v47, %v6175_v48  ;;  %v6617_v36 = vld [vmem:[%s10385_s4 + $0x24] sm:$0xf0] }
 0x14c   :  { %3280 = vmatpush.bf16.msrb.mxu1 %v5058_v57  ;;  %v5919_v54 = vld [vmem:[%s10385_s4 + $0xae0] sm:$0xf0]  ;;  %v4901_v57 = vld [vmem:[%s10385_s4 + $0x2c8] sm:$0xf]  ;;  %v4550_v48 = vor.u32 %v6617_v36, %v4549_v35 }
 0x14d   :  { %v5922_v61 = vor.u32 %v6956_v53, %v5919_v54  ;;  %v6143_v63 = vld [vmem:[%s10385_s4 + $0xca0] sm:$0xf0]  ;;  %v4902_v1 = vor.u32 %v6705_v59, %v4901_v57  ;;  %v5285_v40 = vld [vmem:[%s10385_s4 + $0x5c8] sm:$0xf] }
 0x14e   :  { %3267 = vmatpush.bf16.msrb.mxu0 %v4802_v2  ;;  %3293 = vmatpush.bf16.msrb.mxu2 %v5314_v58  ;;  %v6948_v2 = vld [vmem:[%s10385_s4 + $0xa84] sm:$0xf]  ;;  %v6801_v41 = vld [vmem:[%s10385_s4 + $0x5e4] sm:$0xf0] }
 0x14f   :  { %3306 = vmatpush.bf16.msrb.mxu3 %v5570_v3  ;;  %3281 = vmatmul.bf16.vlgmr.msrb.gmra.mxu1 %v7758_v17  ;;  %v5887_v58 = vld [vmem:[%s10385_s4 + $0xaa0] sm:$0xf0]  ;;  %v4613_v3 = vld [vmem:[%s10385_s4 + $0x88] sm:$0xf] }
 0x150   :  { %3325 = vmatpush.bf16.msra.mxu1 %v6306_v62  ;;  %v7012_v62 = vld [vmem:[%s10385_s4 + $0xc84] sm:$0xf]  ;;  %v5797_v42 = vld [vmem:[%s10385_s4 + $0x9c8] sm:$0xf] }
 0x151   :  { %3268 = vmatmul.bf16.vlgmr.msrb.gmra.mxu0 %v7743_v8  ;;  %3294 = vmatmul.bf16.vlgmr.msrb.gmra.mxu2 %v7760_v18  ;;  %v7004_v9 = vld [vmem:[%s10385_s4 + $0xc44] sm:$0xf]  ;;  %v6993_v47 = vld [vmem:[%s10385_s4 + $0xbe4] sm:$0xf0] }
 0x152   :  { %3312 = vmatpush.bf16.msra.mxu0 %v6050_v4  ;;  %3338 = vmatpush.bf16.msra.mxu2 %v4774_v7  ;;  %v6633_v4 = vld [vmem:[%s10385_s4 + $0xa4] sm:$0xf0]  ;;  %v6146_v7 = vor.u32 %v7012_v62, %v6143_v63  ;;  %v6111_v10 = vld [vmem:[%s10385_s4 + $0xc60] sm:$0xf0] }
 0x153   :  { %3351 = vmatpush.bf16.msra.mxu3 %v5030_v51  ;;  %v5890_v51 = vor.u32 %v6948_v2, %v5887_v58  ;;  %v4614_v11 = vor.u32 %v6633_v4, %v4613_v3  ;;  %v6940_v14 = vld [vmem:[%s10385_s4 + $0xa44] sm:$0xf]  ;;  %v5509_v53 = vld [vmem:[%s10385_s4 + $0x788] sm:$0xf] }
 0x154   :  { %3326 = vmatpush.bf16.msra.mxu1 %v6274_v20  ;;  %3307 = vmatmul.bf16.vlgmr.msrb.gmra.mxu3 %v7877_v15  ;;  %v5855_v19 = vld [vmem:[%s10385_s4 + $0xa60] sm:$0xf0]  ;;  %v4581_v20 = vld [vmem:[%s10385_s4 + $0x48] sm:$0xf] }
 0x155   :  { %v5858_v27 = vor.u32 %v6940_v14, %v5855_v19  ;;  %v6079_v28 = vld [vmem:[%s10385_s4 + $0xc20] sm:$0xf0]  ;;  %v6857_v54 = vld [vmem:[%s10385_s4 + $0x7a4] sm:$0xf0] }
 0x156   :  { %3313 = vmatpush.bf16.msra.mxu0 %v6018_v21  ;;  %3339 = vmatpush.bf16.msra.mxu2 %v4742_v25  ;;  %v6625_v21 = vld [vmem:[%s10385_s4 + $0x64] sm:$0xf0]  ;;  %v6114_v25 = vor.u32 %v7004_v9, %v6111_v10 }
 0x157   :  { %3352 = vmatpush.bf16.msra.mxu3 %v4998_v26  ;;  %v6996_v26 = vld [vmem:[%s10385_s4 + $0xc04] sm:$0xf]  ;;  %v4582_v31 = vor.u32 %v6625_v21, %v4581_v20  ;;  %v5253_v57 = vld [vmem:[%s10385_s4 + $0x588] sm:$0xf] }
 0x158   :  { %3327 = vmatpush.bf16.msra.mxu1 %v6242_v33  ;;  %v6932_v33 = vld [vmem:[%s10385_s4 + $0xa04] sm:$0xf]  ;;  %v6082_v39 = vor.u32 %v6996_v26, %v6079_v28  ;;  %v6793_v59 = vld [vmem:[%s10385_s4 + $0x5a4] sm:$0xf0] }
 0x159   :  { %v6021_v62 = vld [vmem:[%s10385_s4 + $0xb88] sm:$0xf] }
 0x15a   :  { %3314 = vmatpush.bf16.msra.mxu0 %v5986_v34  ;;  %3340 = vmatpush.bf16.msra.mxu2 %v4710_v37  ;;  %v5823_v34 = vld [vmem:[%s10385_s4 + $0xa20] sm:$0xf0]  ;;  %v4805_v37 = vld [vmem:[%s10385_s4 + $0x208] sm:$0xf] }
 0x15b   :  { %3353 = vmatpush.bf16.msra.mxu3 %v4966_v38  ;;  %v6681_v38 = vld [vmem:[%s10385_s4 + $0x224] sm:$0xf0]  ;;  %v5826_v44 = vor.u32 %v6932_v33, %v5823_v34 }
 0x15c   :  { %3328 = vmatpush.bf16.msra.mxu1 %v6210_v45  ;;  %v6929_v45 = vld [vmem:[%s10385_s4 + $0x9e4] sm:$0xf0] }
 0x15d   :  { %v5798_v55 = vor.u32 %v6929_v45, %v5797_v42  ;;  %v6985_v63 = vld [vmem:[%s10385_s4 + $0xba4] sm:$0xf0] }
 0x15e   :  { %3315 = vmatpush.bf16.msra.mxu0 %v5954_v46  ;;  %3341 = vmatpush.bf16.msra.mxu2 %v4678_v49  ;;  %v6053_v46 = vld [vmem:[%s10385_s4 + $0xbc8] sm:$0xf]  ;;  %v4806_v49 = vor.u32 %v6681_v38, %v4805_v37  ;;  %v6022_v4 = vor.u32 %v6985_v63, %v6021_v62 }
 0x15f   :  { %3354 = vmatpush.bf16.msra.mxu3 %v4934_v50  ;;  %v5286_v50 = vor.u32 %v6801_v41, %v5285_v40  ;;  %v6054_v56 = vor.u32 %v6993_v47, %v6053_v46  ;;  %v5477_v2 = vld [vmem:[%s10385_s4 + $0x748] sm:$0xf] }
 0x160   :  { %3329 = vmatpush.bf16.msra.mxu1 %v6178_v60  ;;  %v5765_v60 = vld [vmem:[%s10385_s4 + $0x988] sm:$0xf] }
 0x161   :  { %v6849_v58 = vld [vmem:[%s10385_s4 + $0x764] sm:$0xf0] }
 0x162   :  { %3316 = vmatpush.bf16.msra.mxu0 %v5922_v61  ;;  %3342 = vmatpush.bf16.msra.mxu2 %v4646_v0  ;;  %v6921_v61 = vld [vmem:[%s10385_s4 + $0x9a4] sm:$0xf0]  ;;  %v5510_v0 = vor.u32 %v6857_v54, %v5509_v53 }
 0x163   :  { %3355 = vmatpush.bf16.msra.mxu3 %v4902_v1  ;;  %v5254_v1 = vor.u32 %v6793_v59, %v5253_v57  ;;  %v5766_v3 = vor.u32 %v6921_v61, %v5765_v60  ;;  %v5221_v5 = vld [vmem:[%s10385_s4 + $0x548] sm:$0xf] }
 0x164   :  { %3330 = vmatpush.bf16.msra.mxu1 %v6146_v7  ;;  %v6785_v6 = vld [vmem:[%s10385_s4 + $0x564] sm:$0xf0] }
 0x165   :  { %v5733_v7 = vld [vmem:[%s10385_s4 + $0x948] sm:$0xf] }
 0x166   :  { %3317 = vmatpush.bf16.msra.mxu0 %v5890_v51  ;;  %3343 = vmatpush.bf16.msra.mxu2 %v4614_v11  ;;  %v6913_v51 = vld [vmem:[%s10385_s4 + $0x964] sm:$0xf0]  ;;  %v5478_v11 = vor.u32 %v6849_v58, %v5477_v2 }
 0x167   :  { %3356 = vmatpush.bf16.msra.mxu3 %v4870_v13  ;;  %v5989_v9 = vld [vmem:[%s10385_s4 + $0xb48] sm:$0xf]  ;;  %v5222_v13 = vor.u32 %v6785_v6, %v5221_v5  ;;  %v5734_v20 = vor.u32 %v6913_v51, %v5733_v7  ;;  %v6669_v7 = vld [vmem:[%s10385_s4 + $0x1cc] sm:$0xf] }
 0x168   :  { %3331 = vmatpush.bf16.msra.mxu1 %v6114_v25  ;;  %v6977_v10 = vld [vmem:[%s10385_s4 + $0xb64] sm:$0xf0]  ;;  %v4775_v51 = vld [vmem:[%s10385_s4 + $0x1e8] sm:$0xf0] }
 0x169   :  { %v5445_v14 = vld [vmem:[%s10385_s4 + $0x708] sm:$0xf]  ;;  %v5990_v21 = vor.u32 %v6977_v10, %v5989_v9 }
 0x16a   :  { %3318 = vmatpush.bf16.msra.mxu0 %v5858_v27  ;;  %3344 = vmatpush.bf16.msra.mxu2 %v4582_v31  ;;  %v6841_v19 = vld [vmem:[%s10385_s4 + $0x724] sm:$0xf0] }
 0x16b   :  { %3357 = vmatpush.bf16.msra.mxu3 %v4838_v32  ;;  %v5189_v23 = vld [vmem:[%s10385_s4 + $0x508] sm:$0xf]  ;;  %v5446_v29 = vor.u32 %v6841_v19, %v5445_v14 }
 0x16c   :  { %3332 = vmatpush.bf16.msra.mxu1 %v6082_v39  ;;  %v6777_v24 = vld [vmem:[%s10385_s4 + $0x524] sm:$0xf0] }
 0x16d   :  { %v5701_v25 = vld [vmem:[%s10385_s4 + $0x908] sm:$0xf]  ;;  %v5190_v30 = vor.u32 %v6777_v24, %v5189_v23 }
 0x16e   :  { %3319 = vmatpush.bf16.msra.mxu0 %v5826_v44  ;;  %3345 = vmatpush.bf16.msra.mxu2 %v4550_v48  ;;  %v6905_v26 = vld [vmem:[%s10385_s4 + $0x924] sm:$0xf0] }
 0x16f   :  { %3358 = vmatpush.bf16.msra.mxu3 %v4806_v49  ;;  %3333 = vmatmul.bf16.vlgmr.msra.gmra.mxu1 %v7883_v22  ;;  %v5957_v27 = vld [vmem:[%s10385_s4 + $0xb08] sm:$0xf]  ;;  %v5702_v33 = vor.u32 %v6905_v26, %v5701_v25  ;;  %v6733_v26 = vld [vmem:[%s10385_s4 + $0x3cc] sm:$0xf] }
 0x170   :  { %3377 = vmatpush.bf16.msrb.mxu1 %v5542_v43  ;;  %v6969_v28 = vld [vmem:[%s10385_s4 + $0xb24] sm:$0xf0] }
 0x171   :  { %3320 = vmatmul.bf16.vlgmr.msra.gmra.mxu0 %v7869_v12  ;;  %3346 = vmatmul.bf16.vlgmr.msra.gmra.mxu2 %v7756_v16  ;;  %v5413_v31 = vld [vmem:[%s10385_s4 + $0x6c8] sm:$0xf]  ;;  %v5958_v34 = vor.u32 %v6969_v28, %v5957_v27  ;;  %v4778_v27 = vor.u32 %v6669_v7, %v4775_v51 }
 0x172   :  { %3364 = vmatpush.bf16.msrb.mxu0 %v5286_v50  ;;  %3390 = vmatpush.bf16.msrb.mxu2 %v5798_v55  ;;  %v6833_v32 = vld [vmem:[%s10385_s4 + $0x6e4] sm:$0xf0] }
 0x173   :  { %3403 = vmatpush.bf16.msrb.mxu3 %v6054_v56  ;;  %v5157_v35 = vld [vmem:[%s10385_s4 + $0x4c8] sm:$0xf]  ;;  %v5414_v41 = vor.u32 %v6833_v32, %v5413_v31  ;;  %v5287_v31 = vld [vmem:[%s10385_s4 + $0x5e8] sm:$0xf0] }
 0x174   :  { %3359 = vmatmul.bf16.vlgmr.msra.gmra.mxu3 %v7743_v8  ;;  %3378 = vmatpush.bf16.msrb.mxu1 %v5510_v0  ;;  %v6769_v36 = vld [vmem:[%s10385_s4 + $0x4e4] sm:$0xf0] }
 0x175   :  { %v5669_v37 = vld [vmem:[%s10385_s4 + $0x8c8] sm:$0xf]  ;;  %v5158_v42 = vor.u32 %v6769_v36, %v5157_v35  ;;  %v6661_v35 = vld [vmem:[%s10385_s4 + $0x18c] sm:$0xf] }
 0x176   :  { %3365 = vmatpush.bf16.msrb.mxu0 %v5254_v1  ;;  %3391 = vmatpush.bf16.msrb.mxu2 %v5766_v3  ;;  %v6897_v38 = vld [vmem:[%s10385_s4 + $0x8e4] sm:$0xf0]  ;;  %v4743_v36 = vld [vmem:[%s10385_s4 + $0x1a8] sm:$0xf0] }
 0x177   :  { %3404 = vmatpush.bf16.msrb.mxu3 %v6022_v4  ;;  %v5925_v39 = vld [vmem:[%s10385_s4 + $0xac8] sm:$0xf]  ;;  %v5670_v45 = vor.u32 %v6897_v38, %v5669_v37 }
 0x178   :  { %3379 = vmatpush.bf16.msrb.mxu1 %v5478_v11  ;;  %v6961_v40 = vld [vmem:[%s10385_s4 + $0xae4] sm:$0xf0] }
 0x179   :  { %v5381_v43 = vld [vmem:[%s10385_s4 + $0x688] sm:$0xf]  ;;  %v5926_v46 = vor.u32 %v6961_v40, %v5925_v39 }
 0x17a   :  { %3366 = vmatpush.bf16.msrb.mxu0 %v5222_v13  ;;  %3392 = vmatpush.bf16.msrb.mxu2 %v5734_v20  ;;  %v6825_v44 = vld [vmem:[%s10385_s4 + $0x6a4] sm:$0xf0] }
 0x17b   :  { %3405 = vmatpush.bf16.msrb.mxu3 %v5990_v21  ;;  %v5125_v47 = vld [vmem:[%s10385_s4 + $0x488] sm:$0xf]  ;;  %v5382_v55 = vor.u32 %v6825_v44, %v5381_v43  ;;  %v6789_v43 = vld [vmem:[%s10385_s4 + $0x58c] sm:$0xf] }
 0x17c   :  { %3380 = vmatpush.bf16.msrb.mxu1 %v5446_v29  ;;  %v6761_v48 = vld [vmem:[%s10385_s4 + $0x4a4] sm:$0xf0]  ;;  %v5031_v29 = vld [vmem:[%s10385_s4 + $0x3e8] sm:$0xf0] }
 0x17d   :  { %v5637_v49 = vld [vmem:[%s10385_s4 + $0x888] sm:$0xf]  ;;  %v5126_v56 = vor.u32 %v6761_v48, %v5125_v47  ;;  %v5034_v37 = vor.u32 %v6733_v26, %v5031_v29  ;;  %v5255_v44 = vld [vmem:[%s10385_s4 + $0x5a8] sm:$0xf0] }
 0x17e   :  { %3367 = vmatpush.bf16.msrb.mxu0 %v5190_v30  ;;  %3393 = vmatpush.bf16.msrb.mxu2 %v5702_v33  ;;  %v6889_v50 = vld [vmem:[%s10385_s4 + $0x8a4] sm:$0xf0]  ;;  %v6797_v30 = vld [vmem:[%s10385_s4 + $0x5cc] sm:$0xf] }
 0x17f   :  { %3406 = vmatpush.bf16.msrb.mxu3 %v5958_v34  ;;  %v5893_v53 = vld [vmem:[%s10385_s4 + $0xa88] sm:$0xf]  ;;  %v5638_v60 = vor.u32 %v6889_v50, %v5637_v49  ;;  %v5290_v38 = vor.u32 %v6797_v30, %v5287_v31  ;;  %v6653_v47 = vld [vmem:[%s10385_s4 + $0x14c] sm:$0xf]  ;;  %v5258_v50 = vor.u32 %v6789_v43, %v5255_v44 }
 0x180   :  { %v6953_v54 = vld [vmem:[%s10385_s4 + $0xaa4] sm:$0xf0]  ;;  %3381 = vmatpush.bf16.msrb.mxu1 %v5414_v41  ;;  %v6725_v41 = vld [vmem:[%s10385_s4 + $0x38c] sm:$0xf] }
 0x181   :  { %v5349_v57 = vld [vmem:[%s10385_s4 + $0x648] sm:$0xf]  ;;  %v5894_v61 = vor.u32 %v6953_v54, %v5893_v53  ;;  %v4711_v48 = vld [vmem:[%s10385_s4 + $0x168] sm:$0xf0] }
 0x182   :  { %3368 = vmatpush.bf16.msrb.mxu0 %v5158_v42  ;;  %v6817_v59 = vld [vmem:[%s10385_s4 + $0x664] sm:$0xf0]  ;;  %3394 = vmatpush.bf16.msrb.mxu2 %v5670_v45  ;;  %v4999_v42 = vld [vmem:[%s10385_s4 + $0x3a8] sm:$0xf0]  ;;  %v4746_v45 = vor.u32 %v6661_v35, %v4743_v36 }
 0x183   :  { %3407 = vmatpush.bf16.msrb.mxu3 %v5926_v46  ;;  %v5093_v62 = vld [vmem:[%s10385_s4 + $0x448] sm:$0xf]  ;;  %v5350_v3 = vor.u32 %v6817_v59, %v5349_v57  ;;  %v5002_v49 = vor.u32 %v6725_v41, %v4999_v42  ;;  %v6781_v57 = vld [vmem:[%s10385_s4 + $0x54c] sm:$0xf] }
 0x184   :  { %v6753_v63 = vld [vmem:[%s10385_s4 + $0x464] sm:$0xf0]  ;;  %3382 = vmatpush.bf16.msrb.mxu1 %v5382_v55  ;;  %v6717_v55 = vld [vmem:[%s10385_s4 + $0x34c] sm:$0xf] }
 0x185   :  { %v5605_v0 = vld [vmem:[%s10385_s4 + $0x848] sm:$0xf]  ;;  %v5094_v5 = vor.u32 %v6753_v63, %v5093_v62  ;;  %v5223_v59 = vld [vmem:[%s10385_s4 + $0x568] sm:$0xf0] }
 0x186   :  { %v6881_v1 = vld [vmem:[%s10385_s4 + $0x864] sm:$0xf0]  ;;  %3369 = vmatpush.bf16.msrb.mxu0 %v5126_v56  ;;  %3395 = vmatpush.bf16.msrb.mxu2 %v5638_v60  ;;  %v4967_v56 = vld [vmem:[%s10385_s4 + $0x368] sm:$0xf0]  ;;  %v4714_v60 = vor.u32 %v6653_v47, %v4711_v48 }
 0x187   :  { %v5861_v2 = vld [vmem:[%s10385_s4 + $0xa48] sm:$0xf]  ;;  %3408 = vmatpush.bf16.msrb.mxu3 %v5894_v61  ;;  %v5606_v9 = vor.u32 %v6881_v1, %v5605_v0  ;;  %v6645_v62 = vld [vmem:[%s10385_s4 + $0x10c] sm:$0xf]  ;;  %v4970_v0 = vor.u32 %v6717_v55, %v4967_v56  ;;  %v5226_v1 = vor.u32 %v6781_v57, %v5223_v59 }
 0x188   :  { %v6945_v58 = vld [vmem:[%s10385_s4 + $0xa64] sm:$0xf0]  ;;  %3383 = vmatpush.bf16.msrb.mxu1 %v5350_v3  ;;  %v4679_v63 = vld [vmem:[%s10385_s4 + $0x128] sm:$0xf0] }
 0x189   :  { %v5317_v4 = vld [vmem:[%s10385_s4 + $0x608] sm:$0xf]  ;;  %v5862_v10 = vor.u32 %v6945_v58, %v5861_v2  ;;  %v6709_v3 = vld [vmem:[%s10385_s4 + $0x30c] sm:$0xf]  ;;  %v4682_v7 = vor.u32 %v6645_v62, %v4679_v63 }
 0x18a   :  { %v6809_v6 = vld [vmem:[%s10385_s4 + $0x624] sm:$0xf0]  ;;  %3370 = vmatpush.bf16.msrb.mxu0 %v5094_v5  ;;  %3396 = vmatpush.bf16.msrb.mxu2 %v5606_v9  ;;  %v6773_v5 = vld [vmem:[%s10385_s4 + $0x50c] sm:$0xf] }
 0x18b   :  { %v5061_v11 = vld [vmem:[%s10385_s4 + $0x408] sm:$0xf]  ;;  %v5318_v23 = vor.u32 %v6809_v6, %v5317_v4  ;;  %3409 = vmatpush.bf16.msrb.mxu3 %v5862_v10  ;;  %v4935_v4 = vld [vmem:[%s10385_s4 + $0x328] sm:$0xf0] }
 0x18c   :  { %v6745_v13 = vld [vmem:[%s10385_s4 + $0x424] sm:$0xf0]  ;;  %v5191_v6 = vld [vmem:[%s10385_s4 + $0x528] sm:$0xf0] }
 0x18d   :  { %v5573_v14 = vld [vmem:[%s10385_s4 + $0x808] sm:$0xf]  ;;  %v5062_v28 = vor.u32 %v6745_v13, %v5061_v11  ;;  %3384 = vmatpush.bf16.msrb.mxu1 %v5318_v23  ;;  %v6637_v9 = vld [vmem:[%s10385_s4 + $0xcc] sm:$0xf]  ;;  %v4938_v11 = vor.u32 %v6709_v3, %v4935_v4  ;;  %v5194_v13 = vor.u32 %v6773_v5, %v5191_v6 }
 0x18e   :  { %v6873_v19 = vld [vmem:[%s10385_s4 + $0x824] sm:$0xf0]  ;;  %v4647_v10 = vld [vmem:[%s10385_s4 + $0xe8] sm:$0xf0] }
 0x18f   :  { %v5829_v20 = vld [vmem:[%s10385_s4 + $0xa08] sm:$0xf]  ;;  %v5574_v32 = vor.u32 %v6873_v19, %v5573_v14  ;;  %3371 = vmatpush.bf16.msrb.mxu0 %v5062_v28  ;;  %v6765_v23 = vld [vmem:[%s10385_s4 + $0x4cc] sm:$0xf] }
 0x190   :  { %v6937_v21 = vld [vmem:[%s10385_s4 + $0xa24] sm:$0xf0]  ;;  %3385 = vmatmul.bf16.vlgmr.msrb.gmra.mxu1 %v7760_v18  ;;  %v4615_v28 = vld [vmem:[%s10385_s4 + $0xa8] sm:$0xf0] }
 0x191   :  { %v6309_v24 = vld [vmem:[%s10385_s4 + $0xdc8] sm:$0xf]  ;;  %v5830_v33 = vor.u32 %v6937_v21, %v5829_v20  ;;  %3429 = vmatpush.bf16.msra.mxu1 %v4778_v27  ;;  %3397 = vmatpush.bf16.msrb.mxu2 %v5574_v32  ;;  %v6701_v20 = vld [vmem:[%s10385_s4 + $0x2cc] sm:$0xf] }
 0x192   :  { %v7057_v25 = vld [vmem:[%s10385_s4 + $0xde4] sm:$0xf0]  ;;  %3372 = vmatmul.bf16.vlgmr.msrb.gmra.mxu0 %v7758_v17  ;;  %v4903_v21 = vld [vmem:[%s10385_s4 + $0x2e8] sm:$0xf0] }
 0x193   :  { %v6310_v34 = vor.u32 %v7057_v25, %v6309_v24  ;;  %v6277_v39 = vld [vmem:[%s10385_s4 + $0xd88] sm:$0xf]  ;;  %3410 = vmatpush.bf16.msrb.mxu3 %v5830_v33  ;;  %v5159_v24 = vld [vmem:[%s10385_s4 + $0x4e8] sm:$0xf0]  ;;  %v4650_v25 = vor.u32 %v6637_v9, %v4647_v10  ;;  %v4906_v29 = vor.u32 %v6701_v20, %v4903_v21 }
 0x194   :  { %v7049_v40 = vld [vmem:[%s10385_s4 + $0xda4] sm:$0xf0]  ;;  %3398 = vmatmul.bf16.vlgmr.msrb.gmra.mxu2 %v7877_v15  ;;  %v6629_v27 = vld [vmem:[%s10385_s4 + $0x8c] sm:$0xf]  ;;  %v5162_v30 = vor.u32 %v6765_v23, %v5159_v24 }
 0x195   :  { %3416 = vmatpush.bf16.msra.mxu0 %v6310_v34  ;;  %v6278_v46 = vor.u32 %v7049_v40, %v6277_v39  ;;  %3442 = vmatpush.bf16.msra.mxu2 %v5034_v37  ;;  %v6245_v53 = vld [vmem:[%s10385_s4 + $0xd48] sm:$0xf]  ;;  %v6693_v33 = vld [vmem:[%s10385_s4 + $0x28c] sm:$0xf]  ;;  %v4618_v37 = vor.u32 %v6629_v27, %v4615_v28 }
 0x196   :  { %v7041_v54 = vld [vmem:[%s10385_s4 + $0xd64] sm:$0xf0]  ;;  %3411 = vmatmul.bf16.vlgmr.msrb.gmra.mxu3 %v7869_v12  ;;  %3430 = vmatpush.bf16.msra.mxu1 %v4746_v45  ;;  %v4871_v34 = vld [vmem:[%s10385_s4 + $0x2a8] sm:$0xf0] }
 0x197   :  { %3455 = vmatpush.bf16.msra.mxu3 %v5290_v38  ;;  %v6246_v61 = vor.u32 %v7041_v54, %v6245_v53  ;;  %v6213_v2 = vld [vmem:[%s10385_s4 + $0xd08] sm:$0xf]  ;;  %v6757_v35 = vld [vmem:[%s10385_s4 + $0x48c] sm:$0xf]  ;;  %v4874_v41 = vor.u32 %v6693_v33, %v4871_v34 }
 0x198   :  { %v7033_v58 = vld [vmem:[%s10385_s4 + $0xd24] sm:$0xf0]  ;;  %v5127_v36 = vld [vmem:[%s10385_s4 + $0x4a8] sm:$0xf0] }
 0x199   :  { %3417 = vmatpush.bf16.msra.mxu0 %v6278_v46  ;;  %3443 = vmatpush.bf16.msra.mxu2 %v5002_v49  ;;  %v6214_v51 = vor.u32 %v7033_v58, %v6213_v2  ;;  %v6181_v14 = vld [vmem:[%s10385_s4 + $0xcc8] sm:$0xf]  ;;  %v6621_v39 = vld [vmem:[%s10385_s4 + $0x4c] sm:$0xf]  ;;  %v5130_v42 = vor.u32 %v6757_v35, %v5127_v36 }
 0x19a   :  { %3431 = vmatpush.bf16.msra.mxu1 %v4714_v60  ;;  %v7025_v19 = vld [vmem:[%s10385_s4 + $0xce4] sm:$0xf0]  ;;  %v4583_v40 = vld [vmem:[%s10385_s4 + $0x68] sm:$0xf0] }
 0x19b   :  { %3456 = vmatpush.bf16.msra.mxu3 %v5258_v50  ;;  %v6182_v26 = vor.u32 %v7025_v19, %v6181_v14  ;;  %v6149_v31 = vld [vmem:[%s10385_s4 + $0xc88] sm:$0xf]  ;;  %v6685_v45 = vld [vmem:[%s10385_s4 + $0x24c] sm:$0xf]  ;;  %v4586_v49 = vor.u32 %v6621_v39, %v4583_v40 }
 0x19c   :  { %v7017_v32 = vld [vmem:[%s10385_s4 + $0xca4] sm:$0xf0]  ;;  %v4839_v46 = vld [vmem:[%s10385_s4 + $0x268] sm:$0xf0] }
 0x19d   :  { %3418 = vmatpush.bf16.msra.mxu0 %v6246_v61  ;;  %3444 = vmatpush.bf16.msra.mxu2 %v4970_v0  ;;  %v6150_v38 = vor.u32 %v7017_v32, %v6149_v31  ;;  %v6117_v43 = vld [vmem:[%s10385_s4 + $0xc48] sm:$0xf]  ;;  %v6749_v47 = vld [vmem:[%s10385_s4 + $0x44c] sm:$0xf]  ;;  %v4842_v57 = vor.u32 %v6685_v45, %v4839_v46 }
 0x19e   :  { %3432 = vmatpush.bf16.msra.mxu1 %v4682_v7  ;;  %v7009_v44 = vld [vmem:[%s10385_s4 + $0xc64] sm:$0xf0]  ;;  %v5095_v48 = vld [vmem:[%s10385_s4 + $0x468] sm:$0xf0] }
 0x19f   :  { %3457 = vmatpush.bf16.msra.mxu3 %v5226_v1  ;;  %v6613_v50 = vld [vmem:[%s10385_s4 + $0xc] sm:$0xf]  ;;  %v6118_v53 = vor.u32 %v7009_v44, %v6117_v43  ;;  %v5098_v59 = vor.u32 %v6749_v47, %v5095_v48  ;;  %v6085_v60 = vld [vmem:[%s10385_s4 + $0xc08] sm:$0xf] }
 0x1a0   :  { %v4551_v54 = vld [vmem:[%s10385_s4 + $0x28] sm:$0xf0]  ;;  %v7001_v61 = vld [vmem:[%s10385_s4 + $0xc24] sm:$0xf0] }
 0x1a1   :  { %3419 = vmatpush.bf16.msra.mxu0 %v6214_v51  ;;  %3445 = vmatpush.bf16.msra.mxu2 %v4938_v11  ;;  %v6925_v55 = vld [vmem:[%s10385_s4 + $0x9cc] sm:$0xf]  ;;  %v4554_v2 = vor.u32 %v6613_v50, %v4551_v54  ;;  %v6086_v6 = vor.u32 %v7001_v61, %v6085_v60 }
 0x1a2   :  { %3433 = vmatpush.bf16.msra.mxu1 %v4650_v25  ;;  %v5799_v56 = vld [vmem:[%s10385_s4 + $0x9e8] sm:$0xf0] }
 0x1a3   :  { %3458 = vmatpush.bf16.msra.mxu3 %v5194_v13  ;;  %v6677_v62 = vld [vmem:[%s10385_s4 + $0x20c] sm:$0xf]  ;;  %v5802_v5 = vor.u32 %v6925_v55, %v5799_v56 }
 0x1a4   :  { %v4807_v63 = vld [vmem:[%s10385_s4 + $0x228] sm:$0xf0] }
 0x1a5   :  { %3420 = vmatpush.bf16.msra.mxu0 %v6182_v26  ;;  %3446 = vmatpush.bf16.msra.mxu2 %v4906_v29  ;;  %v6741_v0 = vld [vmem:[%s10385_s4 + $0x40c] sm:$0xf]  ;;  %v4810_v10 = vor.u32 %v6677_v62, %v4807_v63  ;;  %v8590_v29 = vld [vmem:[%s10386_s5] sm:$0xff] }
 0x1a6   :  { %3434 = vmatpush.bf16.msra.mxu1 %v4618_v37  ;;  %v5063_v1 = vld [vmem:[%s10385_s4 + $0x428] sm:$0xf0]  ;;  %v900_v39 = vperm.slane %v8590_v29, 0 }
 0x1a7   :  { %3459 = vmatpush.bf16.msra.mxu3 %v5162_v30  ;;  %v6861_v58 = vld [vmem:[%s10385_s4 + $0x7cc] sm:$0xf]  ;;  %v5066_v11 = vor.u32 %v6741_v0, %v5063_v1 }
 0x1a8   :  { %v5543_v3 = vld [vmem:[%s10385_s4 + $0x7e8] sm:$0xf0] }
 0x1a9   :  { %3421 = vmatpush.bf16.msra.mxu0 %v6150_v38  ;;  %3447 = vmatpush.bf16.msra.mxu2 %v4874_v41  ;;  %v6989_v4 = vld [vmem:[%s10385_s4 + $0xbcc] sm:$0xf]  ;;  %v5546_v13 = vor.u32 %v6861_v58, %v5543_v3 }
 0x1aa   :  { %3435 = vmatpush.bf16.msra.mxu1 %v4586_v49  ;;  %v6055_v7 = vld [vmem:[%s10385_s4 + $0xbe8] sm:$0xf0] }
 0x1ab   :  { %3460 = vmatpush.bf16.msra.mxu3 %v5130_v42  ;;  %v7053_v51 = vld [vmem:[%s10385_s4 + $0xdcc] sm:$0xf]  ;;  %v6058_v21 = vor.u32 %v6989_v4, %v6055_v7  ;;  %v3178_v40 = vpop.f32.mrf.mxu1 }
 0x1ac   :  { %v6311_v9 = vld [vmem:[%s10385_s4 + $0xde8] sm:$0xf0] }
 0x1ad   :  { %3422 = vmatpush.bf16.msra.mxu0 %v6118_v53  ;;  %3448 = vmatpush.bf16.msra.mxu2 %v4842_v57  ;;  %v6917_v14 = vld [vmem:[%s10385_s4 + $0x98c] sm:$0xf]  ;;  %v6314_v23 = vor.u32 %v7053_v51, %v6311_v9  ;;  %v3165_v46 = vpop.f32.mrf.mxu0 }
 0x1ae   :  { %v5767_v19 = vld [vmem:[%s10385_s4 + $0x9a8] sm:$0xf0]  ;;  %3436 = vmatpush.bf16.msra.mxu1 %v4554_v2  ;;  %v3166_v53 = vadd.f32 %v3165_v46, %v900_v39 }
 0x1af   :  { %3461 = vmatpush.bf16.msra.mxu3 %v5098_v59  ;;  %v6853_v20 = vld [vmem:[%s10385_s4 + $0x78c] sm:$0xf]  ;;  %v5770_v30 = vor.u32 %v6917_v14, %v5767_v19 }
 0x1b0   :  { %v5511_v24 = vld [vmem:[%s10385_s4 + $0x7a8] sm:$0xf0]  ;;  %v3179_v62 = vadd.f32 %v3178_v40, %v3166_v53 }
 0x1b1   :  { %v6981_v25 = vld [vmem:[%s10385_s4 + $0xb8c] sm:$0xf]  ;;  %3423 = vmatpush.bf16.msra.mxu0 %v6086_v6  ;;  %3449 = vmatpush.bf16.msra.mxu2 %v4810_v10  ;;  %v5514_v31 = vor.u32 %v6853_v20, %v5511_v24 }
 0x1b2   :  { %v6023_v26 = vld [vmem:[%s10385_s4 + $0xba8] sm:$0xf0]  ;;  %3481 = vmatpush.bf16.msrb.mxu1 %v5802_v5 }
 0x1b3   :  { %v7045_v27 = vld [vmem:[%s10385_s4 + $0xd8c] sm:$0xf]  ;;  %3462 = vmatpush.bf16.msra.mxu3 %v5066_v11  ;;  %3437 = vmatmul.bf16.vlgmr.msra.gmra.mxu1 %v7756_v16  ;;  %v6026_v35 = vor.u32 %v6981_v25, %v6023_v26  ;;  %v3180_v6 = vpop.f32.mrf.mxu1  ;;  %v3191_v7 = vpop.f32.mrf.mxu2 }
 0x1b4   :  { %v6279_v28 = vld [vmem:[%s10385_s4 + $0xda8] sm:$0xf0]  ;;  %3424 = vmatmul.bf16.vlgmr.msra.gmra.mxu0 %v7883_v22  ;;  %3450 = vmatmul.bf16.vlgmr.msra.gmra.mxu2 %v7743_v8  ;;  %v3204_v14 = vpop.f32.mrf.mxu3  ;;  %v5293_v6 = vld [vmem:[%s10385_s4 + $0x5d0] sm:$0xf] }
 0x1b5   :  { %3468 = vmatpush.bf16.msrb.mxu0 %v5546_v13  ;;  %v6909_v32 = vld [vmem:[%s10385_s4 + $0x94c] sm:$0xf]  ;;  %3494 = vmatpush.bf16.msrb.mxu2 %v6058_v21  ;;  %v6282_v36 = vor.u32 %v7045_v27, %v6279_v28  ;;  %v3192_v13 = vadd.f32 %v3191_v7, %v3179_v62  ;;  %v3167_v20 = vpop.f32.mrf.mxu0 }
 0x1b6   :  { %v5735_v33 = vld [vmem:[%s10385_s4 + $0x968] sm:$0xf0]  ;;  %3463 = vmatmul.bf16.vlgmr.msra.gmra.mxu3 %v7758_v17  ;;  %3482 = vmatpush.bf16.msrb.mxu1 %v5770_v30 }
 0x1b7   :  { %v6845_v34 = vld [vmem:[%s10385_s4 + $0x74c] sm:$0xf]  ;;  %3507 = vmatpush.bf16.msrb.mxu3 %v6314_v23  ;;  %v5738_v44 = vor.u32 %v6909_v32, %v5735_v33  ;;  %v3205_v24 = vadd.f32 %v3204_v14, %v3192_v13  ;;  %v6866_v13 = vld [vmem:[%s10385_s4 + $0x7ec] sm:$0xf0] }
 0x1b8   :  { %v5479_v37 = vld [vmem:[%s10385_s4 + $0x768] sm:$0xf0] }
 0x1b9   :  { %v6973_v38 = vld [vmem:[%s10385_s4 + $0xb4c] sm:$0xf]  ;;  %3469 = vmatpush.bf16.msrb.mxu0 %v5514_v31  ;;  %v5482_v45 = vor.u32 %v6845_v34, %v5479_v37  ;;  %3495 = vmatpush.bf16.msrb.mxu2 %v6026_v35 }
 0x1ba   :  { %v5991_v41 = vld [vmem:[%s10385_s4 + $0xb68] sm:$0xf0]  ;;  %3483 = vmatpush.bf16.msrb.mxu1 %v5738_v44 }
 0x1bb   :  { %v7037_v42 = vld [vmem:[%s10385_s4 + $0xd4c] sm:$0xf]  ;;  %3508 = vmatpush.bf16.msrb.mxu3 %v6282_v36  ;;  %v5994_v49 = vor.u32 %v6973_v38, %v5991_v41 }
 0x1bc   :  { %v6247_v43 = vld [vmem:[%s10385_s4 + $0xd68] sm:$0xf0] }
 0x1bd   :  { %v6901_v47 = vld [vmem:[%s10385_s4 + $0x90c] sm:$0xf]  ;;  %v6250_v50 = vor.u32 %v7037_v42, %v6247_v43  ;;  %3470 = vmatpush.bf16.msrb.mxu0 %v5482_v45  ;;  %3496 = vmatpush.bf16.msrb.mxu2 %v5994_v49  ;;  %v3193_v43 = vpop.f32.mrf.mxu2  ;;  %v3230_v49 = vpop.f32.mrf.mxu1 }
 0x1be   :  { %v5703_v48 = vld [vmem:[%s10385_s4 + $0x928] sm:$0xf0] }
 0x1bf   :  { %v6837_v54 = vld [vmem:[%s10385_s4 + $0x70c] sm:$0xf]  ;;  %v5706_v61 = vor.u32 %v6901_v47, %v5703_v48  ;;  %3509 = vmatpush.bf16.msrb.mxu3 %v6250_v50  ;;  %v3206_v48 = vpop.f32.mrf.mxu3 }
 0x1c0   :  { %v5447_v55 = vld [vmem:[%s10385_s4 + $0x728] sm:$0xf0]  ;;  %v6786_v48 = vld [vmem:[%s10385_s4 + $0x56c] sm:$0xf0] }
 0x1c1   :  { %v6965_v56 = vld [vmem:[%s10385_s4 + $0xb0c] sm:$0xf]  ;;  %v5450_v63 = vor.u32 %v6837_v54, %v5447_v55  ;;  %3484 = vmatpush.bf16.msrb.mxu1 %v5706_v61  ;;  %v3217_v54 = vpop.f32.mrf.mxu0 }
 0x1c2   :  { %v5959_v57 = vld [vmem:[%s10385_s4 + $0xb28] sm:$0xf0]  ;;  %v3218_v61 = vadd.f32 %v3217_v54, %v3205_v24 }
 0x1c3   :  { %v7029_v59 = vld [vmem:[%s10385_s4 + $0xd0c] sm:$0xf]  ;;  %v5962_v2 = vor.u32 %v6965_v56, %v5959_v57  ;;  %3471 = vmatpush.bf16.msrb.mxu0 %v5450_v63  ;;  %v5037_v56 = vld [vmem:[%s10385_s4 + $0x3d0] sm:$0xf] }
 0x1c4   :  { %v6215_v60 = vld [vmem:[%s10385_s4 + $0xd28] sm:$0xf0]  ;;  %v6738_v57 = vld [vmem:[%s10385_s4 + $0x3ec] sm:$0xf0]  ;;  %v3231_v7 = vadd.f32 %v3230_v49, %v3218_v61 }
 0x1c5   :  { %v6893_v0 = vld [vmem:[%s10385_s4 + $0x8cc] sm:$0xf]  ;;  %v6218_v58 = vor.u32 %v7029_v59, %v6215_v60  ;;  %3497 = vmatpush.bf16.msrb.mxu2 %v5962_v2  ;;  %v5485_v49 = vld [vmem:[%s10385_s4 + $0x750] sm:$0xf] }
 0x1c6   :  { %v5671_v1 = vld [vmem:[%s10385_s4 + $0x8e8] sm:$0xf0]  ;;  %v4685_v61 = vld [vmem:[%s10385_s4 + $0x110] sm:$0xf] }
 0x1c7   :  { %v6829_v3 = vld [vmem:[%s10385_s4 + $0x6cc] sm:$0xf]  ;;  %v5674_v11 = vor.u32 %v6893_v0, %v5671_v1  ;;  %3510 = vmatpush.bf16.msrb.mxu3 %v6218_v58 }
 0x1c8   :  { %v5415_v4 = vld [vmem:[%s10385_s4 + $0x6e8] sm:$0xf0] }
 0x1c9   :  { %v6957_v5 = vld [vmem:[%s10385_s4 + $0xacc] sm:$0xf]  ;;  %v5418_v19 = vor.u32 %v6829_v3, %v5415_v4  ;;  %3485 = vmatpush.bf16.msrb.mxu1 %v5674_v11  ;;  %v4781_v4 = vld [vmem:[%s10385_s4 + $0x1d0] sm:$0xf] }
 0x1ca   :  { %v5927_v51 = vld [vmem:[%s10385_s4 + $0xae8] sm:$0xf0]  ;;  %v5549_v11 = vld [vmem:[%s10385_s4 + $0x7d0] sm:$0xf] }
 0x1cb   :  { %v7021_v9 = vld [vmem:[%s10385_s4 + $0xccc] sm:$0xf]  ;;  %v5930_v25 = vor.u32 %v6957_v5, %v5927_v51  ;;  %3472 = vmatpush.bf16.msrb.mxu0 %v5418_v19  ;;  %v6674_v5 = vld [vmem:[%s10385_s4 + $0x1ec] sm:$0xf0]  ;;  %v5038_v51 = vor.u32 %v6738_v57, %v5037_v56 }
 0x1cc   :  { %v6183_v10 = vld [vmem:[%s10385_s4 + $0xce8] sm:$0xf0]  ;;  %v4782_v20 = vor.u32 %v6674_v5, %v4781_v4  ;;  %v6714_v56 = vld [vmem:[%s10385_s4 + $0x32c] sm:$0xf0] }
 0x1cd   :  { %v6885_v21 = vld [vmem:[%s10385_s4 + $0x88c] sm:$0xf]  ;;  %v6186_v26 = vor.u32 %v7021_v9, %v6183_v10  ;;  %3498 = vmatpush.bf16.msrb.mxu2 %v5930_v25  ;;  %v6802_v10 = vld [vmem:[%s10385_s4 + $0x5ec] sm:$0xf0]  ;;  %v5550_v25 = vor.u32 %v6866_v13, %v5549_v11 }
 0x1ce   :  { %v5639_v23 = vld [vmem:[%s10385_s4 + $0x8a8] sm:$0xf0]  ;;  %v5294_v24 = vor.u32 %v6802_v10, %v5293_v6  ;;  %v6706_v10 = vld [vmem:[%s10385_s4 + $0x2ec] sm:$0xf0] }
 0x1cf   :  { %v6821_v27 = vld [vmem:[%s10385_s4 + $0x68c] sm:$0xf]  ;;  %v5642_v34 = vor.u32 %v6885_v21, %v5639_v23  ;;  %3511 = vmatpush.bf16.msrb.mxu3 %v6186_v26  ;;  %v5005_v21 = vld [vmem:[%s10385_s4 + $0x390] sm:$0xf]  ;;  %v3232_v26 = vpop.f32.mrf.mxu1 }
 0x1d0   :  { %v5383_v28 = vld [vmem:[%s10385_s4 + $0x6a8] sm:$0xf0]  ;;  %v6730_v23 = vld [vmem:[%s10385_s4 + $0x3ac] sm:$0xf0] }
 0x1d1   :  { %v6949_v30 = vld [vmem:[%s10385_s4 + $0xa8c] sm:$0xf]  ;;  %v5386_v35 = vor.u32 %v6821_v27, %v5383_v28  ;;  %3486 = vmatpush.bf16.msrb.mxu1 %v5642_v34  ;;  %v3243_v27 = vpop.f32.mrf.mxu2  ;;  %v4749_v28 = vld [vmem:[%s10385_s4 + $0x190] sm:$0xf]  ;;  %v3219_v34 = vpop.f32.mrf.mxu0 }
 0x1d2   :  { %v5895_v31 = vld [vmem:[%s10385_s4 + $0xaa8] sm:$0xf0]  ;;  %v4621_v34 = vld [vmem:[%s10385_s4 + $0x90] sm:$0xf] }
 0x1d3   :  { %v7013_v32 = vld [vmem:[%s10385_s4 + $0xc8c] sm:$0xf]  ;;  %v5898_v38 = vor.u32 %v6949_v30, %v5895_v31  ;;  %3473 = vmatpush.bf16.msrb.mxu0 %v5386_v35  ;;  %v6666_v30 = vld [vmem:[%s10385_s4 + $0x1ac] sm:$0xf0] }
 0x1d4   :  { %v6151_v33 = vld [vmem:[%s10385_s4 + $0xca8] sm:$0xf0]  ;;  %v5261_v31 = vld [vmem:[%s10385_s4 + $0x590] sm:$0xf] }
 0x1d5   :  { %v6877_v36 = vld [vmem:[%s10385_s4 + $0x84c] sm:$0xf]  ;;  %v6154_v39 = vor.u32 %v7013_v32, %v6151_v33  ;;  %3499 = vmatpush.bf16.msrb.mxu2 %v5898_v38  ;;  %v8780_v32 = vadd.f32 %v3243_v27, %v3231_v7  ;;  %v3256_v33 = vpop.f32.mrf.mxu3  ;;  %v6794_v35 = vld [vmem:[%s10385_s4 + $0x5ac] sm:$0xf0]  ;;  %v5006_v38 = vor.u32 %v6730_v23, %v5005_v21 }
 0x1d6   :  { %v5607_v37 = vld [vmem:[%s10385_s4 + $0x868] sm:$0xf0]  ;;  %v5262_v43 = vor.u32 %v6794_v35, %v5261_v31  ;;  %v6770_v21 = vld [vmem:[%s10385_s4 + $0x4ec] sm:$0xf0] }
 0x1d7   :  { %v6813_v40 = vld [vmem:[%s10385_s4 + $0x64c] sm:$0xf]  ;;  %v5610_v47 = vor.u32 %v6877_v36, %v5607_v37  ;;  %3512 = vmatpush.bf16.msrb.mxu3 %v6154_v39  ;;  %v5517_v36 = vld [vmem:[%s10385_s4 + $0x790] sm:$0xf]  ;;  %v901_v39 = vperm.slane %v8590_v29, 1  ;;  %v3282_v4 = vpop.f32.mrf.mxu1 }
 0x1d8   :  { %v5351_v41 = vld [vmem:[%s10385_s4 + $0x668] sm:$0xf0]  ;;  %v6858_v37 = vld [vmem:[%s10385_s4 + $0x7ac] sm:$0xf0] }
 0x1d9   :  { %v6941_v42 = vld [vmem:[%s10385_s4 + $0xa4c] sm:$0xf]  ;;  %v5354_v53 = vor.u32 %v6813_v40, %v5351_v41  ;;  %3487 = vmatpush.bf16.msrb.mxu1 %v5610_v47  ;;  %v4750_v40 = vor.u32 %v6666_v30, %v4749_v28  ;;  %v4973_v41 = vld [vmem:[%s10385_s4 + $0x350] sm:$0xf]  ;;  %v3269_v6 = vpop.f32.mrf.mxu0 }
 0x1da   :  { %v5863_v44 = vld [vmem:[%s10385_s4 + $0xa68] sm:$0xf0]  ;;  %v5229_v47 = vld [vmem:[%s10385_s4 + $0x550] sm:$0xf] }
 0x1db   :  { %v7005_v45 = vld [vmem:[%s10385_s4 + $0xc4c] sm:$0xf]  ;;  %v5866_v59 = vor.u32 %v6941_v42, %v5863_v44  ;;  %3474 = vmatpush.bf16.msrb.mxu0 %v5354_v53  ;;  %v6722_v42 = vld [vmem:[%s10385_s4 + $0x36c] sm:$0xf0]  ;;  %v5518_v44 = vor.u32 %v6858_v37, %v5517_v36  ;;  %v5230_v57 = vor.u32 %v6786_v48, %v5229_v47 }
 0x1dc   :  { %v6119_v46 = vld [vmem:[%s10385_s4 + $0xc68] sm:$0xf0]  ;;  %v4974_v53 = vor.u32 %v6722_v42, %v4973_v41  ;;  %v5421_v23 = vld [vmem:[%s10385_s4 + $0x6d0] sm:$0xf] }
 0x1dd   :  { %v6869_v50 = vld [vmem:[%s10385_s4 + $0x80c] sm:$0xf]  ;;  %v6122_v60 = vor.u32 %v7005_v45, %v6119_v46  ;;  %3500 = vmatpush.bf16.msrb.mxu2 %v5866_v59  ;;  %v4717_v45 = vld [vmem:[%s10385_s4 + $0x150] sm:$0xf] }
 0x1de   :  { %v5575_v55 = vld [vmem:[%s10385_s4 + $0x828] sm:$0xf0]  ;;  %v6658_v46 = vld [vmem:[%s10385_s4 + $0x16c] sm:$0xf0] }
 0x1df   :  { %v6805_v62 = vld [vmem:[%s10385_s4 + $0x60c] sm:$0xf]  ;;  %v5578_v3 = vor.u32 %v6869_v50, %v5575_v55  ;;  %3513 = vmatpush.bf16.msrb.mxu3 %v6122_v60  ;;  %v6850_v50 = vld [vmem:[%s10385_s4 + $0x76c] sm:$0xf0]  ;;  %v4718_v54 = vor.u32 %v6658_v46, %v4717_v45  ;;  %v3245_v60 = vpop.f32.mrf.mxu2  ;;  %v3284_v41 = vpop.f32.mrf.mxu1 }
 0x1e0   :  { %v5319_v63 = vld [vmem:[%s10385_s4 + $0x628] sm:$0xf0]  ;;  %v4941_v55 = vld [vmem:[%s10385_s4 + $0x310] sm:$0xf]  ;;  %v5486_v59 = vor.u32 %v6850_v50, %v5485_v49  ;;  %v4751_v41 = vld [vmem:[%s10385_s4 + $0x1b0] sm:$0xf0] }
 0x1e1   :  { %v6933_v0 = vld [vmem:[%s10385_s4 + $0xa0c] sm:$0xf]  ;;  %v5322_v9 = vor.u32 %v6805_v62, %v5319_v63  ;;  %3488 = vmatpush.bf16.msrb.mxu1 %v5578_v3  ;;  %v6650_v62 = vld [vmem:[%s10385_s4 + $0x12c] sm:$0xf0]  ;;  %v4942_v5 = vor.u32 %v6714_v56, %v4941_v55  ;;  %v3271_v45 = vpop.f32.mrf.mxu0 }
 0x1e2   :  { %v5831_v1 = vld [vmem:[%s10385_s4 + $0xa28] sm:$0xf0]  ;;  %v5197_v63 = vld [vmem:[%s10385_s4 + $0x510] sm:$0xf] }
 0x1e3   :  { %v6997_v2 = vld [vmem:[%s10385_s4 + $0xc0c] sm:$0xf]  ;;  %v5834_v14 = vor.u32 %v6933_v0, %v5831_v1  ;;  %3475 = vmatpush.bf16.msrb.mxu0 %v5322_v9  ;;  %v3257_v0 = vadd.f32 %v3256_v33, %v901_v39  ;;  %v3258_v1 = vpop.f32.mrf.mxu3  ;;  %v6842_v3 = vld [vmem:[%s10385_s4 + $0x72c] sm:$0xf0] }
 0x1e4   :  { %v6087_v58 = vld [vmem:[%s10385_s4 + $0xc28] sm:$0xf0]  ;;  %3489 = vmatmul.bf16.vlgmr.msrb.gmra.mxu1 %v7877_v15  ;;  %v4909_v9 = vld [vmem:[%s10385_s4 + $0x2d0] sm:$0xf] }
 0x1e5   :  { %v6090_v19 = vor.u32 %v6997_v2, %v6087_v58  ;;  %3533 = vmatpush.bf16.msra.mxu1 %v5038_v51  ;;  %3501 = vmatpush.bf16.msrb.mxu2 %v5834_v14  ;;  %v6778_v2 = vld [vmem:[%s10385_s4 + $0x52c] sm:$0xf0]  ;;  %v3270_v7 = vadd.f32 %v3269_v6, %v3257_v0  ;;  %v4686_v51 = vor.u32 %v6650_v62, %v4685_v61 }
 0x1e6   :  { %3476 = vmatmul.bf16.vlgmr.msrb.gmra.mxu0 %v7760_v18  ;;  %v5453_v58 = vld [vmem:[%s10385_s4 + $0x710] sm:$0xf]  ;;  %v5198_v11 = vor.u32 %v6778_v2, %v5197_v63  ;;  %v4910_v26 = vor.u32 %v6706_v10, %v4909_v9 }
 0x1e7   :  { %3514 = vmatpush.bf16.msrb.mxu3 %v6090_v19  ;;  %3520 = vmatpush.bf16.msra.mxu0 %v4782_v20  ;;  %v5454_v13 = vor.u32 %v6842_v3, %v5453_v58  ;;  %v4653_v14 = vld [vmem:[%s10385_s4 + $0xd0] sm:$0xf]  ;;  %v3295_v37 = vpop.f32.mrf.mxu2 }
 0x1e8   :  { %3502 = vmatmul.bf16.vlgmr.msrb.gmra.mxu2 %v7869_v12  ;;  %v6642_v19 = vld [vmem:[%s10385_s4 + $0xec] sm:$0xf0] }
 0x1e9   :  { %3546 = vmatpush.bf16.msra.mxu2 %v5294_v24  ;;  %3534 = vmatpush.bf16.msra.mxu1 %v5006_v38  ;;  %v5165_v20 = vld [vmem:[%s10385_s4 + $0x4d0] sm:$0xf]  ;;  %v4654_v27 = vor.u32 %v6642_v19, %v4653_v14 }
 0x1ea   :  { %3515 = vmatmul.bf16.vlgmr.msrb.gmra.mxu3 %v7883_v22  ;;  %v6834_v24 = vld [vmem:[%s10385_s4 + $0x6ec] sm:$0xf0]  ;;  %v5166_v31 = vor.u32 %v6770_v21, %v5165_v20 }
 0x1eb   :  { %3559 = vmatpush.bf16.msra.mxu3 %v5550_v25  ;;  %3521 = vmatpush.bf16.msra.mxu0 %v4750_v40  ;;  %v3283_v25 = vadd.f32 %v3282_v4, %v3270_v7  ;;  %v4877_v28 = vld [vmem:[%s10385_s4 + $0x290] sm:$0xf]  ;;  %v5422_v33 = vor.u32 %v6834_v24, %v5421_v23 }
 0x1ec   :  { %v6698_v30 = vld [vmem:[%s10385_s4 + $0x2ac] sm:$0xf0] }
 0x1ed   :  { %3547 = vmatpush.bf16.msra.mxu2 %v5262_v43  ;;  %3535 = vmatpush.bf16.msra.mxu1 %v4974_v53  ;;  %v6634_v35 = vld [vmem:[%s10385_s4 + $0xac] sm:$0xf0]  ;;  %v3296_v42 = vadd.f32 %v3295_v37, %v3283_v25  ;;  %v3308_v43 = vpop.f32.mrf.mxu3  ;;  %v6670_v25 = vld [vmem:[%s10385_s4 + $0x1d4] sm:$0xf] }
 0x1ee   :  { %v5133_v36 = vld [vmem:[%s10385_s4 + $0x490] sm:$0xf]  ;;  %v4622_v46 = vor.u32 %v6634_v35, %v4621_v34 }
 0x1ef   :  { %3560 = vmatpush.bf16.msra.mxu3 %v5518_v44  ;;  %3522 = vmatpush.bf16.msra.mxu0 %v4718_v54  ;;  %v6762_v38 = vld [vmem:[%s10385_s4 + $0x4ac] sm:$0xf0]  ;;  %v4878_v44 = vor.u32 %v6698_v30, %v4877_v28  ;;  %v8898_v49 = vadd.f32 %v3308_v43, %v3296_v42  ;;  %v3297_v7 = vpop.f32.mrf.mxu2 }
 0x1f0   :  { %v5389_v39 = vld [vmem:[%s10385_s4 + $0x690] sm:$0xf]  ;;  %v5134_v50 = vor.u32 %v6762_v38, %v5133_v36  ;;  %v3321_v7 = vpop.f32.mrf.mxu0 }
 0x1f1   :  { %3548 = vmatpush.bf16.msra.mxu2 %v5230_v57  ;;  %3536 = vmatpush.bf16.msra.mxu1 %v4942_v5  ;;  %v6826_v40 = vld [vmem:[%s10385_s4 + $0x6ac] sm:$0xf0] }
 0x1f2   :  { %v4845_v47 = vld [vmem:[%s10385_s4 + $0x250] sm:$0xf]  ;;  %v5390_v53 = vor.u32 %v6826_v40, %v5389_v39  ;;  %v6662_v40 = vld [vmem:[%s10385_s4 + $0x194] sm:$0xf] }
 0x1f3   :  { %3561 = vmatpush.bf16.msra.mxu3 %v5486_v59  ;;  %3523 = vmatpush.bf16.msra.mxu0 %v4686_v51  ;;  %v6690_v48 = vld [vmem:[%s10385_s4 + $0x26c] sm:$0xf0] }
 0x1f4   :  { %v4589_v54 = vld [vmem:[%s10385_s4 + $0x50] sm:$0xf]  ;;  %v4846_v61 = vor.u32 %v6690_v48, %v4845_v47  ;;  %v4754_v47 = vor.u32 %v6662_v40, %v4751_v41 }
 0x1f5   :  { %3549 = vmatpush.bf16.msra.mxu2 %v5198_v11  ;;  %3537 = vmatpush.bf16.msra.mxu1 %v4910_v26  ;;  %v6626_v55 = vld [vmem:[%s10385_s4 + $0x6c] sm:$0xf0]  ;;  %v3310_v11 = vpop.f32.mrf.mxu3  ;;  %v4783_v26 = vld [vmem:[%s10385_s4 + $0x1f0] sm:$0xf0] }
 0x1f6   :  { %v5101_v56 = vld [vmem:[%s10385_s4 + $0x450] sm:$0xf]  ;;  %v4590_v63 = vor.u32 %v6626_v55, %v4589_v54  ;;  %v4786_v35 = vor.u32 %v6670_v25, %v4783_v26  ;;  %v6654_v55 = vld [vmem:[%s10385_s4 + $0x154] sm:$0xf]  ;;  %v902_v26 = vperm.slane %v8590_v29, 2 }
 0x1f7   :  { %3562 = vmatpush.bf16.msra.mxu3 %v5454_v13  ;;  %3524 = vmatpush.bf16.msra.mxu0 %v4654_v27  ;;  %v6754_v57 = vld [vmem:[%s10385_s4 + $0x46c] sm:$0xf0]  ;;  %v4655_v25 = vld [vmem:[%s10385_s4 + $0xf0] sm:$0xf0] }
 0x1f8   :  { %v5357_v59 = vld [vmem:[%s10385_s4 + $0x650] sm:$0xf]  ;;  %v5102_v58 = vor.u32 %v6754_v57, %v5101_v56  ;;  %v4719_v56 = vld [vmem:[%s10385_s4 + $0x170] sm:$0xf0] }
 0x1f9   :  { %3550 = vmatpush.bf16.msra.mxu2 %v5166_v31  ;;  %v6818_v60 = vld [vmem:[%s10385_s4 + $0x66c] sm:$0xf0]  ;;  %3538 = vmatpush.bf16.msra.mxu1 %v4878_v44 }
 0x1fa   :  { %v4813_v62 = vld [vmem:[%s10385_s4 + $0x210] sm:$0xf]  ;;  %v5358_v3 = vor.u32 %v6818_v60, %v5357_v59 }
 0x1fb   :  { %3563 = vmatpush.bf16.msra.mxu3 %v5422_v33  ;;  %3525 = vmatpush.bf16.msra.mxu0 %v4622_v46  ;;  %v6682_v0 = vld [vmem:[%s10385_s4 + $0x22c] sm:$0xf0] }
 0x1fc   :  { %v6061_v1 = vld [vmem:[%s10385_s4 + $0xbd0] sm:$0xf]  ;;  %v4814_v13 = vor.u32 %v6682_v0, %v4813_v62  ;;  %v3334_v0 = vpop.f32.mrf.mxu1 }
 0x1fd   :  { %v6994_v2 = vld [vmem:[%s10385_s4 + $0xbec] sm:$0xf0]  ;;  %3551 = vmatpush.bf16.msra.mxu2 %v5134_v50  ;;  %3539 = vmatpush.bf16.msra.mxu1 %v4846_v61  ;;  %v3360_v40 = vpop.f32.mrf.mxu3 }
 0x1fe   :  { %v4557_v4 = vld [vmem:[%s10385_s4 + $0x10] sm:$0xf]  ;;  %v6062_v21 = vor.u32 %v6994_v2, %v6061_v1 }
 0x1ff   :  { %3564 = vmatpush.bf16.msra.mxu3 %v5390_v53  ;;  %v6618_v5 = vld [vmem:[%s10385_s4 + $0x2c] sm:$0xf0]  ;;  %3526 = vmatpush.bf16.msra.mxu0 %v4590_v63  ;;  %v4722_v63 = vor.u32 %v6654_v55, %v4719_v56 }
 0x200   :  { %v5069_v6 = vld [vmem:[%s10385_s4 + $0x410] sm:$0xf]  ;;  %v4558_v23 = vor.u32 %v6618_v5, %v4557_v4  ;;  %v6646_v4 = vld [vmem:[%s10385_s4 + $0x114] sm:$0xf] }
 0x201   :  { %v6746_v51 = vld [vmem:[%s10385_s4 + $0x42c] sm:$0xf0]  ;;  %3552 = vmatpush.bf16.msra.mxu2 %v5102_v58  ;;  %3540 = vmatpush.bf16.msra.mxu1 %v4814_v13  ;;  %v4687_v5 = vld [vmem:[%s10385_s4 + $0x130] sm:$0xf0] }
 0x202   :  { %v5325_v9 = vld [vmem:[%s10385_s4 + $0x610] sm:$0xf]  ;;  %v5070_v27 = vor.u32 %v6746_v51, %v5069_v6  ;;  %v3322_v51 = vadd.f32 %v3321_v7, %v8898_v49 }
 0x203   :  { %v6810_v10 = vld [vmem:[%s10385_s4 + $0x62c] sm:$0xf0]  ;;  %3565 = vmatpush.bf16.msra.mxu3 %v5358_v3  ;;  %3527 = vmatpush.bf16.msra.mxu0 %v4558_v23 }
 0x204   :  { %v5805_v14 = vld [vmem:[%s10385_s4 + $0x9d0] sm:$0xf]  ;;  %v5326_v28 = vor.u32 %v6810_v10, %v5325_v9  ;;  %3541 = vmatmul.bf16.vlgmr.msra.gmra.mxu1 %v7743_v8  ;;  %v9061_v23 = vadd.f32 %v3334_v0, %v3322_v51 }
 0x205   :  { %v6930_v19 = vld [vmem:[%s10385_s4 + $0x9ec] sm:$0xf0]  ;;  %3585 = vmatpush.bf16.msrb.mxu1 %v6062_v21  ;;  %3553 = vmatpush.bf16.msra.mxu2 %v5070_v27 }
 0x206   :  { %v6317_v20 = vld [vmem:[%s10385_s4 + $0xdd0] sm:$0xf]  ;;  %v5806_v30 = vor.u32 %v6930_v19, %v5805_v14  ;;  %3528 = vmatmul.bf16.vlgmr.msra.gmra.mxu0 %v7756_v16  ;;  %v4690_v19 = vor.u32 %v6646_v4, %v4687_v5 }
 0x207   :  { %v7058_v24 = vld [vmem:[%s10385_s4 + $0xdec] sm:$0xf0]  ;;  %3566 = vmatpush.bf16.msra.mxu3 %v5326_v28 }
 0x208   :  { %v6029_v31 = vld [vmem:[%s10385_s4 + $0xb90] sm:$0xf]  ;;  %v6318_v34 = vor.u32 %v7058_v24, %v6317_v20  ;;  %3572 = vmatpush.bf16.msrb.mxu0 %v5806_v30  ;;  %3554 = vmatmul.bf16.vlgmr.msra.gmra.mxu2 %v7758_v17  ;;  %v6638_v24 = vld [vmem:[%s10385_s4 + $0xd4] sm:$0xf] }
 0x209   :  { %v6986_v33 = vld [vmem:[%s10385_s4 + $0xbac] sm:$0xf0] }
 0x20a   :  { %v5773_v36 = vld [vmem:[%s10385_s4 + $0x990] sm:$0xf]  ;;  %v6030_v42 = vor.u32 %v6986_v33, %v6029_v31  ;;  %3598 = vmatpush.bf16.msrb.mxu2 %v6318_v34  ;;  %3567 = vmatmul.bf16.vlgmr.msra.gmra.mxu3 %v7760_v18  ;;  %v4658_v34 = vor.u32 %v6638_v24, %v4655_v25  ;;  %v5551_v25 = vld [vmem:[%s10385_s4 + $0x7f0] sm:$0xf0] }
 0x20b   :  { %v6922_v37 = vld [vmem:[%s10385_s4 + $0x9ac] sm:$0xf0]  ;;  %3611 = vmatpush.bf16.msrb.mxu3 %v4786_v35  ;;  %v3336_v35 = vpop.f32.mrf.mxu1 }
 0x20c   :  { %v6285_v38 = vld [vmem:[%s10385_s4 + $0xd90] sm:$0xf]  ;;  %v5774_v43 = vor.u32 %v6922_v37, %v5773_v36  ;;  %3586 = vmatpush.bf16.msrb.mxu1 %v6030_v42  ;;  %v3347_v36 = vpop.f32.mrf.mxu2  ;;  %v6630_v42 = vld [vmem:[%s10385_s4 + $0x94] sm:$0xf] }
 0x20d   :  { %v7050_v39 = vld [vmem:[%s10385_s4 + $0xdac] sm:$0xf0] }
 0x20e   :  { %v5997_v44 = vld [vmem:[%s10385_s4 + $0xb50] sm:$0xf]  ;;  %v6286_v46 = vor.u32 %v7050_v39, %v6285_v38  ;;  %3573 = vmatpush.bf16.msrb.mxu0 %v5774_v43  ;;  %v3348_v39 = vadd.f32 %v3347_v36, %v902_v26  ;;  %v4623_v43 = vld [vmem:[%s10385_s4 + $0xb0] sm:$0xf0] }
 0x20f   :  { %v6978_v45 = vld [vmem:[%s10385_s4 + $0xb6c] sm:$0xf0]  ;;  %3612 = vmatpush.bf16.msrb.mxu3 %v4754_v47  ;;  %v6926_v26 = vld [vmem:[%s10385_s4 + $0x9d4] sm:$0xf] }
 0x210   :  { %v5741_v48 = vld [vmem:[%s10385_s4 + $0x950] sm:$0xf]  ;;  %v5998_v57 = vor.u32 %v6978_v45, %v5997_v44  ;;  %3599 = vmatpush.bf16.msrb.mxu2 %v6286_v46  ;;  %v3323_v45 = vpop.f32.mrf.mxu0  ;;  %v9094_v46 = vadd.f32 %v3360_v40, %v3348_v39  ;;  %v5519_v39 = vld [vmem:[%s10385_s4 + $0x7b0] sm:$0xf0] }
 0x211   :  { %v6914_v50 = vld [vmem:[%s10385_s4 + $0x96c] sm:$0xf0]  ;;  %v6918_v40 = vld [vmem:[%s10385_s4 + $0x994] sm:$0xf] }
 0x212   :  { %v6253_v53 = vld [vmem:[%s10385_s4 + $0xd50] sm:$0xf]  ;;  %v5742_v59 = vor.u32 %v6914_v50, %v5741_v48  ;;  %3587 = vmatpush.bf16.msrb.mxu1 %v5998_v57  ;;  %v5231_v45 = vld [vmem:[%s10385_s4 + $0x570] sm:$0xf0] }
 0x213   :  { %v7042_v54 = vld [vmem:[%s10385_s4 + $0xd6c] sm:$0xf0]  ;;  %3613 = vmatpush.bf16.msrb.mxu3 %v4722_v63 }
 0x214   :  { %v5965_v60 = vld [vmem:[%s10385_s4 + $0xb10] sm:$0xf]  ;;  %v6254_v62 = vor.u32 %v7042_v54, %v6253_v53  ;;  %3574 = vmatpush.bf16.msrb.mxu0 %v5742_v59  ;;  %v4626_v54 = vor.u32 %v6630_v42, %v4623_v43  ;;  %v3349_v5 = vpop.f32.mrf.mxu2 }
 0x215   :  { %v6970_v61 = vld [vmem:[%s10385_s4 + $0xb2c] sm:$0xf0]  ;;  %v6902_v5 = vld [vmem:[%s10385_s4 + $0x914] sm:$0xf] }
 0x216   :  { %v5709_v1 = vld [vmem:[%s10385_s4 + $0x910] sm:$0xf]  ;;  %v5966_v6 = vor.u32 %v6970_v61, %v5965_v60  ;;  %3600 = vmatpush.bf16.msrb.mxu2 %v6254_v62  ;;  %v6622_v60 = vld [vmem:[%s10385_s4 + $0x54] sm:$0xf] }
 0x217   :  { %v6906_v2 = vld [vmem:[%s10385_s4 + $0x92c] sm:$0xf0]  ;;  %3614 = vmatpush.bf16.msrb.mxu3 %v4690_v19  ;;  %v4591_v61 = vld [vmem:[%s10385_s4 + $0x70] sm:$0xf0] }
 0x218   :  { %v6221_v58 = vld [vmem:[%s10385_s4 + $0xd10] sm:$0xf]  ;;  %v5710_v9 = vor.u32 %v6906_v2, %v5709_v1  ;;  %3588 = vmatpush.bf16.msrb.mxu1 %v5966_v6  ;;  %v6798_v2 = vld [vmem:[%s10385_s4 + $0x5d4] sm:$0xf]  ;;  %v4594_v4 = vor.u32 %v6622_v60, %v4591_v61 }
 0x219   :  { %v7034_v3 = vld [vmem:[%s10385_s4 + $0xd2c] sm:$0xf0]  ;;  %v6734_v19 = vld [vmem:[%s10385_s4 + $0x3d4] sm:$0xf] }
 0x21a   :  { %v5933_v10 = vld [vmem:[%s10385_s4 + $0xad0] sm:$0xf]  ;;  %v6222_v14 = vor.u32 %v7034_v3, %v6221_v58  ;;  %3575 = vmatpush.bf16.msrb.mxu0 %v5710_v9  ;;  %v5295_v58 = vld [vmem:[%s10385_s4 + $0x5f0] sm:$0xf0]  ;;  %v3362_v9 = vpop.f32.mrf.mxu3 }
 0x21b   :  { %v6962_v11 = vld [vmem:[%s10385_s4 + $0xaec] sm:$0xf0]  ;;  %3615 = vmatpush.bf16.msrb.mxu3 %v4658_v34  ;;  %v5263_v34 = vld [vmem:[%s10385_s4 + $0x5b0] sm:$0xf0] }
 0x21c   :  { %v5677_v13 = vld [vmem:[%s10385_s4 + $0x8d0] sm:$0xf]  ;;  %v5934_v27 = vor.u32 %v6962_v11, %v5933_v10  ;;  %3601 = vmatpush.bf16.msrb.mxu2 %v6222_v14  ;;  %v6614_v11 = vld [vmem:[%s10385_s4 + $0x14] sm:$0xf] }
 0x21d   :  { %v6898_v49 = vld [vmem:[%s10385_s4 + $0x8ec] sm:$0xf0]  ;;  %v6774_v61 = vld [vmem:[%s10385_s4 + $0x514] sm:$0xf] }
 0x21e   :  { %v6189_v20 = vld [vmem:[%s10385_s4 + $0xcd0] sm:$0xf]  ;;  %v5678_v28 = vor.u32 %v6898_v49, %v5677_v13  ;;  %3589 = vmatpush.bf16.msrb.mxu1 %v5934_v27  ;;  %v4559_v13 = vld [vmem:[%s10385_s4 + $0x30] sm:$0xf0] }
 0x21f   :  { %v7026_v21 = vld [vmem:[%s10385_s4 + $0xcec] sm:$0xf0]  ;;  %3616 = vmatpush.bf16.msrb.mxu3 %v4626_v54  ;;  %v5039_v49 = vld [vmem:[%s10385_s4 + $0x3f0] sm:$0xf0] }
 0x220   :  { %v5901_v30 = vld [vmem:[%s10385_s4 + $0xa90] sm:$0xf]  ;;  %v6190_v33 = vor.u32 %v7026_v21, %v6189_v20  ;;  %3576 = vmatpush.bf16.msrb.mxu0 %v5678_v28  ;;  %v6862_v20 = vld [vmem:[%s10385_s4 + $0x7d4] sm:$0xf]  ;;  %v5298_v21 = vor.u32 %v6798_v2, %v5295_v58 }
 0x221   :  { %v6954_v31 = vld [vmem:[%s10385_s4 + $0xaac] sm:$0xf0]  ;;  %v5807_v27 = vld [vmem:[%s10385_s4 + $0x9f0] sm:$0xf0]  ;;  %v5554_v35 = vor.u32 %v6862_v20, %v5551_v25 }
 0x222   :  { %v5645_v29 = vld [vmem:[%s10385_s4 + $0x890] sm:$0xf]  ;;  %v5902_v44 = vor.u32 %v6954_v31, %v5901_v30  ;;  %3602 = vmatpush.bf16.msrb.mxu2 %v6190_v33  ;;  %v4562_v30 = vor.u32 %v6614_v11, %v4559_v13  ;;  %v5042_v31 = vor.u32 %v6734_v19, %v5039_v49  ;;  %v6790_v33 = vld [vmem:[%s10385_s4 + $0x594] sm:$0xf]  ;;  %v5810_v36 = vor.u32 %v6926_v26, %v5807_v27 }
 0x223   :  { %v6890_v37 = vld [vmem:[%s10385_s4 + $0x8ac] sm:$0xf0]  ;;  %3617 = vmatpush.bf16.msrb.mxu3 %v4594_v4  ;;  %v5266_v42 = vor.u32 %v6790_v33, %v5263_v34  ;;  %v6846_v54 = vld [vmem:[%s10385_s4 + $0x754] sm:$0xf] }
 0x224   :  { %v6157_v38 = vld [vmem:[%s10385_s4 + $0xc90] sm:$0xf]  ;;  %v5646_v47 = vor.u32 %v6890_v37, %v5645_v29  ;;  %3590 = vmatpush.bf16.msrb.mxu1 %v5902_v44  ;;  %v6726_v29 = vld [vmem:[%s10385_s4 + $0x394] sm:$0xf] }
 0x225   :  { %v7018_v41 = vld [vmem:[%s10385_s4 + $0xcac] sm:$0xf0]  ;;  %v5007_v37 = vld [vmem:[%s10385_s4 + $0x3b0] sm:$0xf0] }
 0x226   :  { %v5869_v48 = vld [vmem:[%s10385_s4 + $0xa50] sm:$0xf]  ;;  %v6158_v53 = vor.u32 %v7018_v41, %v6157_v38  ;;  %3577 = vmatpush.bf16.msrb.mxu0 %v5646_v47  ;;  %v6854_v38 = vld [vmem:[%s10385_s4 + $0x794] sm:$0xf]  ;;  %v5010_v43 = vor.u32 %v6726_v29, %v5007_v37 }
 0x227   :  { %v6946_v50 = vld [vmem:[%s10385_s4 + $0xa6c] sm:$0xf0]  ;;  %v5775_v41 = vld [vmem:[%s10385_s4 + $0x9b0] sm:$0xf0]  ;;  %3618 = vmatpush.bf16.msrb.mxu3 %v4562_v30  ;;  %v5522_v47 = vor.u32 %v6854_v38, %v5519_v39 }
 0x228   :  { %v5613_v55 = vld [vmem:[%s10385_s4 + $0x850] sm:$0xf]  ;;  %v5870_v62 = vor.u32 %v6946_v50, %v5869_v48  ;;  %3603 = vmatpush.bf16.msrb.mxu2 %v6158_v53  ;;  %v6782_v44 = vld [vmem:[%s10385_s4 + $0x554] sm:$0xf]  ;;  %v5778_v48 = vor.u32 %v6918_v40, %v5775_v41  ;;  %v3412_v40 = vpop.f32.mrf.mxu3 }
 0x229   :  { %v6882_v56 = vld [vmem:[%s10385_s4 + $0x86c] sm:$0xf0]  ;;  %v6718_v50 = vld [vmem:[%s10385_s4 + $0x354] sm:$0xf] }
 0x22a   :  { %v6125_v57 = vld [vmem:[%s10385_s4 + $0xc50] sm:$0xf]  ;;  %v5614_v0 = vor.u32 %v6882_v56, %v5613_v55  ;;  %3591 = vmatpush.bf16.msrb.mxu1 %v5870_v62  ;;  %v4975_v53 = vld [vmem:[%s10385_s4 + $0x370] sm:$0xf0]  ;;  %3619 = vmatmul.bf16.vlgmr.msrb.gmra.mxu3 %v7756_v16 }
 0x22b   :  { %v7010_v59 = vld [vmem:[%s10385_s4 + $0xc6c] sm:$0xf0]  ;;  %3663 = vmatpush.bf16.msra.mxu3 %v5810_v36  ;;  %v5487_v55 = vld [vmem:[%s10385_s4 + $0x770] sm:$0xf0]  ;;  %v4978_v60 = vor.u32 %v6718_v50, %v4975_v53  ;;  %v3399_v36 = vpop.f32.mrf.mxu2 }
 0x22c   :  { %v5837_v63 = vld [vmem:[%s10385_s4 + $0xa10] sm:$0xf]  ;;  %v6126_v3 = vor.u32 %v7010_v59, %v6125_v57  ;;  %3578 = vmatpush.bf16.msrb.mxu0 %v5614_v0  ;;  %v6910_v56 = vld [vmem:[%s10385_s4 + $0x954] sm:$0xf]  ;;  %v5234_v59 = vor.u32 %v6782_v44, %v5231_v45 }
 0x22d   :  { %v6938_v1 = vld [vmem:[%s10385_s4 + $0xa2c] sm:$0xf0]  ;;  %v5743_v57 = vld [vmem:[%s10385_s4 + $0x970] sm:$0xf0] }
 0x22e   :  { %v5581_v6 = vld [vmem:[%s10385_s4 + $0x810] sm:$0xf]  ;;  %v5838_v14 = vor.u32 %v6938_v1, %v5837_v63  ;;  %3604 = vmatpush.bf16.msrb.mxu2 %v6126_v3  ;;  %v5199_v62 = vld [vmem:[%s10385_s4 + $0x530] sm:$0xf0]  ;;  %v5490_v63 = vor.u32 %v6846_v54, %v5487_v55  ;;  %v5746_v0 = vor.u32 %v6910_v56, %v5743_v57  ;;  %v3386_v1 = vpop.f32.mrf.mxu1 }
 0x22f   :  { %v6874_v7 = vld [vmem:[%s10385_s4 + $0x82c] sm:$0xf0]  ;;  %3664 = vmatpush.bf16.msra.mxu3 %v5778_v48  ;;  %v6710_v2 = vld [vmem:[%s10385_s4 + $0x314] sm:$0xf] }
 0x230   :  { %v6093_v51 = vld [vmem:[%s10385_s4 + $0xc10] sm:$0xf]  ;;  %v5582_v24 = vor.u32 %v6874_v7, %v5581_v6  ;;  %3592 = vmatpush.bf16.msrb.mxu1 %v5838_v14  ;;  %v4943_v58 = vld [vmem:[%s10385_s4 + $0x330] sm:$0xf0]  ;;  %v5202_v7 = vor.u32 %v6774_v61, %v5199_v62 }
 0x231   :  { %v7002_v10 = vld [vmem:[%s10385_s4 + $0xc2c] sm:$0xf0]  ;;  %v6838_v3 = vld [vmem:[%s10385_s4 + $0x714] sm:$0xf] }
 0x232   :  { %v6094_v28 = vor.u32 %v7002_v10, %v6093_v51  ;;  %3579 = vmatpush.bf16.msrb.mxu0 %v5582_v24  ;;  %v5455_v4 = vld [vmem:[%s10385_s4 + $0x730] sm:$0xf0]  ;;  %v3373_v51 = vpop.f32.mrf.mxu0  ;;  %v4946_v10 = vor.u32 %v6710_v2, %v4943_v58 }
 0x233   :  { %3593 = vmatmul.bf16.vlgmr.msrb.gmra.mxu1 %v7869_v12  ;;  %v5711_v6 = vld [vmem:[%s10385_s4 + $0x930] sm:$0xf0]  ;;  %v3374_v9 = vadd.f32 %v3373_v51, %v9094_v46  ;;  %3665 = vmatpush.bf16.msra.mxu3 %v5746_v0  ;;  %v5458_v14 = vor.u32 %v6838_v3, %v5455_v4 }
 0x234   :  { %3637 = vmatpush.bf16.msra.mxu1 %v5298_v21  ;;  %3605 = vmatpush.bf16.msrb.mxu2 %v6094_v28  ;;  %v6766_v11 = vld [vmem:[%s10385_s4 + $0x4d4] sm:$0xf]  ;;  %v5714_v19 = vor.u32 %v6902_v5, %v5711_v6  ;;  %v3401_v6 = vpop.f32.mrf.mxu2 }
 0x235   :  { %3580 = vmatmul.bf16.vlgmr.msrb.gmra.mxu0 %v7877_v15  ;;  %v5167_v13 = vld [vmem:[%s10385_s4 + $0x4f0] sm:$0xf0]  ;;  %v3387_v26 = vadd.f32 %v3386_v1, %v3374_v9  ;;  %v4949_v6 = vld [vmem:[%s10385_s4 + $0x318] sm:$0xf] }
 0x236   :  { %3624 = vmatpush.bf16.msra.mxu0 %v5042_v31  ;;  %v6702_v49 = vld [vmem:[%s10385_s4 + $0x2d4] sm:$0xf]  ;;  %v5170_v27 = vor.u32 %v6766_v11, %v5167_v13 }
 0x237   :  { %3606 = vmatmul.bf16.vlgmr.msrb.gmra.mxu2 %v7883_v22  ;;  %v4911_v46 = vld [vmem:[%s10385_s4 + $0x2f0] sm:$0xf0]  ;;  %3666 = vmatpush.bf16.msra.mxu3 %v5714_v19  ;;  %v3400_v39 = vadd.f32 %v3399_v36, %v3387_v26  ;;  %v5045_v26 = vld [vmem:[%s10385_s4 + $0x3d8] sm:$0xf] }
 0x238   :  { %3650 = vmatpush.bf16.msra.mxu2 %v5554_v35  ;;  %3638 = vmatpush.bf16.msra.mxu1 %v5266_v42  ;;  %v6830_v20 = vld [vmem:[%s10385_s4 + $0x6d4] sm:$0xf]  ;;  %v4914_v28 = vor.u32 %v6702_v49, %v4911_v46  ;;  %v3388_v35 = vpop.f32.mrf.mxu1 }
 0x239   :  { %v5423_v21 = vld [vmem:[%s10385_s4 + $0x6f0] sm:$0xf0] }
 0x23a   :  { %3625 = vmatpush.bf16.msra.mxu0 %v5010_v43  ;;  %v6894_v24 = vld [vmem:[%s10385_s4 + $0x8d4] sm:$0xf]  ;;  %v5426_v33 = vor.u32 %v6830_v20, %v5423_v21  ;;  %v3375_v45 = vpop.f32.mrf.mxu0  ;;  %v4789_v20 = vld [vmem:[%s10385_s4 + $0x1d8] sm:$0xf] }
 0x23b   :  { %v5679_v25 = vld [vmem:[%s10385_s4 + $0x8f0] sm:$0xf0] }
 0x23c   :  { %3651 = vmatpush.bf16.msra.mxu2 %v5522_v47  ;;  %3639 = vmatpush.bf16.msra.mxu1 %v5234_v59  ;;  %v6758_v30 = vld [vmem:[%s10385_s4 + $0x494] sm:$0xf]  ;;  %v5682_v34 = vor.u32 %v6894_v24, %v5679_v25  ;;  %v9293_v47 = vadd.f32 %v3412_v40, %v3400_v39  ;;  %v6675_v25 = vld [vmem:[%s10385_s4 + $0x1f4] sm:$0xf0] }
 0x23d   :  { %v5135_v31 = vld [vmem:[%s10385_s4 + $0x4b0] sm:$0xf0]  ;;  %v4790_v35 = vor.u32 %v6675_v25, %v4789_v20  ;;  %v6667_v39 = vld [vmem:[%s10385_s4 + $0x1b4] sm:$0xf0] }
 0x23e   :  { %3626 = vmatpush.bf16.msra.mxu0 %v4978_v60  ;;  %v6694_v29 = vld [vmem:[%s10385_s4 + $0x294] sm:$0xf]  ;;  %v5138_v44 = vor.u32 %v6758_v30, %v5135_v31  ;;  %3667 = vmatpush.bf16.msra.mxu3 %v5682_v34  ;;  %v5013_v40 = vld [vmem:[%s10385_s4 + $0x398] sm:$0xf] }
 0x23f   :  { %v4879_v37 = vld [vmem:[%s10385_s4 + $0x2b0] sm:$0xf0]  ;;  %v6643_v25 = vld [vmem:[%s10385_s4 + $0xf4] sm:$0xf0] }
 0x240   :  { %3652 = vmatpush.bf16.msra.mxu2 %v5490_v63  ;;  %3640 = vmatpush.bf16.msra.mxu1 %v5202_v7  ;;  %v6822_v38 = vld [vmem:[%s10385_s4 + $0x694] sm:$0xf]  ;;  %v4882_v48 = vor.u32 %v6694_v29, %v4879_v37 }
 0x241   :  { %v5391_v41 = vld [vmem:[%s10385_s4 + $0x6b0] sm:$0xf0] }
 0x242   :  { %3627 = vmatpush.bf16.msra.mxu0 %v4946_v10  ;;  %v6886_v42 = vld [vmem:[%s10385_s4 + $0x894] sm:$0xf]  ;;  %v5394_v54 = vor.u32 %v6822_v38, %v5391_v41  ;;  %v3414_v10 = vpop.f32.mrf.mxu3  ;;  %v4757_v38 = vld [vmem:[%s10385_s4 + $0x198] sm:$0xf] }
 0x243   :  { %v5647_v43 = vld [vmem:[%s10385_s4 + $0x8b0] sm:$0xf0]  ;;  %v6731_v41 = vld [vmem:[%s10385_s4 + $0x3b4] sm:$0xf0]  ;;  %v9446_v10 = vld [vmem:[%s10386_s5] sm:$0xff] }
 0x244   :  { %3653 = vmatpush.bf16.msra.mxu2 %v5458_v14  ;;  %3641 = vmatpush.bf16.msra.mxu1 %v5170_v27  ;;  %v6750_v50 = vld [vmem:[%s10385_s4 + $0x454] sm:$0xf]  ;;  %v5650_v55 = vor.u32 %v6886_v42, %v5647_v43  ;;  %v6739_v27 = vld [vmem:[%s10385_s4 + $0x3f4] sm:$0xf0] }
 0x245   :  { %v5103_v53 = vld [vmem:[%s10385_s4 + $0x470] sm:$0xf0]  ;;  %v5046_v36 = vor.u32 %v6739_v27, %v5045_v26  ;;  %v4917_v26 = vld [vmem:[%s10385_s4 + $0x2d8] sm:$0xf] }
 0x246   :  { %3628 = vmatpush.bf16.msra.mxu0 %v4914_v28  ;;  %v6686_v56 = vld [vmem:[%s10385_s4 + $0x254] sm:$0xf]  ;;  %v5106_v63 = vor.u32 %v6750_v50, %v5103_v53  ;;  %3668 = vmatpush.bf16.msra.mxu3 %v5650_v55  ;;  %v5014_v50 = vor.u32 %v6731_v41, %v5013_v40  ;;  %v4725_v55 = vld [vmem:[%s10385_s4 + $0x158] sm:$0xf] }
 0x247   :  { %v4847_v57 = vld [vmem:[%s10385_s4 + $0x270] sm:$0xf0]  ;;  %v6707_v27 = vld [vmem:[%s10385_s4 + $0x2f4] sm:$0xf0] }
 0x248   :  { %3654 = vmatpush.bf16.msra.mxu2 %v5426_v33  ;;  %v6814_v59 = vld [vmem:[%s10385_s4 + $0x654] sm:$0xf]  ;;  %3642 = vmatpush.bf16.msra.mxu1 %v5138_v44  ;;  %v4850_v1 = vor.u32 %v6686_v56, %v4847_v57  ;;  %v6659_v56 = vld [vmem:[%s10385_s4 + $0x174] sm:$0xf0] }
 0x249   :  { %v5359_v60 = vld [vmem:[%s10385_s4 + $0x670] sm:$0xf0]  ;;  %v4981_v57 = vld [vmem:[%s10385_s4 + $0x358] sm:$0xf] }
 0x24a   :  { %v6878_v61 = vld [vmem:[%s10385_s4 + $0x854] sm:$0xf]  ;;  %3629 = vmatpush.bf16.msra.mxu0 %v4882_v48  ;;  %v5362_v4 = vor.u32 %v6814_v59, %v5359_v60  ;;  %v4758_v48 = vor.u32 %v6667_v39, %v4757_v38  ;;  %v6723_v59 = vld [vmem:[%s10385_s4 + $0x374] sm:$0xf0] }
 0x24b   :  { %v5615_v62 = vld [vmem:[%s10385_s4 + $0x870] sm:$0xf0]  ;;  %v4629_v40 = vld [vmem:[%s10385_s4 + $0x98] sm:$0xf] }
 0x24c   :  { %v6742_v0 = vld [vmem:[%s10385_s4 + $0x414] sm:$0xf]  ;;  %3655 = vmatpush.bf16.msra.mxu2 %v5394_v54  ;;  %v5618_v5 = vor.u32 %v6878_v61, %v5615_v62  ;;  %3643 = vmatpush.bf16.msra.mxu1 %v5106_v63 }
 0x24d   :  { %v5071_v2 = vld [vmem:[%s10385_s4 + $0x430] sm:$0xf0] }
 0x24e   :  { %v7054_v58 = vld [vmem:[%s10385_s4 + $0xdd4] sm:$0xf]  ;;  %v5074_v19 = vor.u32 %v6742_v0, %v5071_v2  ;;  %3630 = vmatpush.bf16.msra.mxu0 %v4850_v1  ;;  %3669 = vmatpush.bf16.msra.mxu3 %v5618_v5  ;;  %v4726_v0 = vor.u32 %v6659_v56, %v4725_v55  ;;  %v4982_v1 = vor.u32 %v6723_v59, %v4981_v57  ;;  %v3438_v2 = vpop.f32.mrf.mxu1  ;;  %v6651_v5 = vld [vmem:[%s10385_s4 + $0x134] sm:$0xf0] }
 0x24f   :  { %v6319_v3 = vld [vmem:[%s10385_s4 + $0xdf0] sm:$0xf0] }
 0x250   :  { %v6678_v7 = vld [vmem:[%s10385_s4 + $0x214] sm:$0xf]  ;;  %v6322_v21 = vor.u32 %v7054_v58, %v6319_v3  ;;  %3656 = vmatpush.bf16.msra.mxu2 %v5362_v4  ;;  %3644 = vmatpush.bf16.msra.mxu1 %v5074_v19  ;;  %v4693_v4 = vld [vmem:[%s10385_s4 + $0x118] sm:$0xf] }
 0x251   :  { %v4815_v51 = vld [vmem:[%s10385_s4 + $0x230] sm:$0xf0] }
 0x252   :  { %v6806_v9 = vld [vmem:[%s10385_s4 + $0x614] sm:$0xf]  ;;  %v4818_v24 = vor.u32 %v6678_v7, %v4815_v51  ;;  %v6715_v7 = vld [vmem:[%s10385_s4 + $0x334] sm:$0xf0] }
 0x253   :  { %v5327_v11 = vld [vmem:[%s10385_s4 + $0x630] sm:$0xf0]  ;;  %3645 = vmatmul.bf16.vlgmr.msra.gmra.mxu1 %v7758_v17  ;;  %v4950_v20 = vor.u32 %v6715_v7, %v4949_v6  ;;  %v6867_v6 = vld [vmem:[%s10385_s4 + $0x7f4] sm:$0xf0] }
 0x254   :  { %v6870_v13 = vld [vmem:[%s10385_s4 + $0x814] sm:$0xf]  ;;  %v5330_v28 = vor.u32 %v6806_v9, %v5327_v11  ;;  %3689 = vmatpush.bf16.msrb.mxu1 %v6322_v21  ;;  %3631 = vmatpush.bf16.msra.mxu0 %v4818_v24  ;;  %v3425_v9 = vpop.f32.mrf.mxu0  ;;  %v903_v11 = vperm.slane %v9446_v10, 3  ;;  %v4661_v24 = vld [vmem:[%s10385_s4 + $0xd8] sm:$0xf] }
 0x255   :  { %v5583_v14 = vld [vmem:[%s10385_s4 + $0x830] sm:$0xf0] }
 0x256   :  { %v6990_v49 = vld [vmem:[%s10385_s4 + $0xbd4] sm:$0xf]  ;;  %v5586_v30 = vor.u32 %v6870_v13, %v5583_v14  ;;  %3657 = vmatpush.bf16.msra.mxu2 %v5330_v28  ;;  %v9450_v13 = vadd.f32 %v3425_v9, %v9293_v47 }
 0x257   :  { %v6063_v46 = vld [vmem:[%s10385_s4 + $0xbf0] sm:$0xf0]  ;;  %3632 = vmatmul.bf16.vlgmr.msra.gmra.mxu0 %v7743_v8 }
 0x258   :  { %v6066_v31 = vor.u32 %v6990_v49, %v6063_v46  ;;  %v7046_v33 = vld [vmem:[%s10385_s4 + $0xd94] sm:$0xf]  ;;  %3670 = vmatpush.bf16.msra.mxu3 %v5586_v30  ;;  %v4694_v46 = vor.u32 %v6651_v5, %v4693_v4  ;;  %v3439_v30 = vadd.f32 %v3438_v2, %v903_v11  ;;  %v5557_v5 = vld [vmem:[%s10385_s4 + $0x7d8] sm:$0xf] }
 0x259   :  { %v6287_v34 = vld [vmem:[%s10385_s4 + $0xdb0] sm:$0xf0]  ;;  %3658 = vmatmul.bf16.vlgmr.msra.gmra.mxu2 %v7760_v18 }
 0x25a   :  { %v6982_v29 = vld [vmem:[%s10385_s4 + $0xb94] sm:$0xf]  ;;  %v6290_v42 = vor.u32 %v7046_v33, %v6287_v34  ;;  %3676 = vmatpush.bf16.msrb.mxu0 %v6066_v31  ;;  %3702 = vmatpush.bf16.msrb.mxu2 %v4790_v35  ;;  %v4662_v35 = vor.u32 %v6643_v25, %v4661_v24  ;;  %v5301_v24 = vld [vmem:[%s10385_s4 + $0x5d8] sm:$0xf] }
 0x25b   :  { %v6031_v37 = vld [vmem:[%s10385_s4 + $0xbb0] sm:$0xf0]  ;;  %3671 = vmatmul.bf16.vlgmr.msra.gmra.mxu3 %v7877_v15  ;;  %v6803_v25 = vld [vmem:[%s10385_s4 + $0x5f4] sm:$0xf0] }
 0x25c   :  { %v6034_v43 = vor.u32 %v6982_v29, %v6031_v37  ;;  %v7038_v44 = vld [vmem:[%s10385_s4 + $0xd54] sm:$0xf]  ;;  %3715 = vmatpush.bf16.msrb.mxu3 %v5046_v36  ;;  %3690 = vmatpush.bf16.msrb.mxu1 %v6290_v42  ;;  %v4918_v36 = vor.u32 %v6707_v27, %v4917_v26  ;;  %v3440_v29 = vpop.f32.mrf.mxu1  ;;  %v3451_v37 = vpop.f32.mrf.mxu2  ;;  %v5813_v26 = vld [vmem:[%s10385_s4 + $0x9d8] sm:$0xf]  ;;  %v5558_v27 = vor.u32 %v6867_v6, %v5557_v5 }
 0x25d   :  { %v6255_v45 = vld [vmem:[%s10385_s4 + $0xd70] sm:$0xf0]  ;;  %v3452_v41 = vadd.f32 %v3451_v37, %v3439_v30  ;;  %v3464_v42 = vpop.f32.mrf.mxu3  ;;  %v6931_v30 = vld [vmem:[%s10385_s4 + $0x9f4] sm:$0xf0] }
 0x25e   :  { %v6974_v53 = vld [vmem:[%s10385_s4 + $0xb54] sm:$0xf]  ;;  %v6258_v60 = vor.u32 %v7038_v44, %v6255_v45  ;;  %3677 = vmatpush.bf16.msrb.mxu0 %v6034_v43  ;;  %3703 = vmatpush.bf16.msrb.mxu2 %v4758_v48  ;;  %v6635_v43 = vld [vmem:[%s10385_s4 + $0xb4] sm:$0xf0] }
 0x25f   :  { %v5999_v54 = vld [vmem:[%s10385_s4 + $0xb70] sm:$0xf0]  ;;  %v4885_v44 = vld [vmem:[%s10385_s4 + $0x298] sm:$0xf]  ;;  %v4630_v57 = vor.u32 %v6635_v43, %v4629_v40 }
 0x260   :  { %v6002_v61 = vor.u32 %v6974_v53, %v5999_v54  ;;  %v7030_v62 = vld [vmem:[%s10385_s4 + $0xd14] sm:$0xf]  ;;  %3716 = vmatpush.bf16.msrb.mxu3 %v5014_v50  ;;  %3691 = vmatpush.bf16.msrb.mxu1 %v6258_v60  ;;  %v6699_v45 = vld [vmem:[%s10385_s4 + $0x2b4] sm:$0xf0]  ;;  %v3427_v50 = vpop.f32.mrf.mxu0  ;;  %v9500_v53 = vadd.f32 %v3464_v42, %v3452_v41 }
 0x261   :  { %v6223_v63 = vld [vmem:[%s10385_s4 + $0xd30] sm:$0xf0]  ;;  %v4886_v59 = vor.u32 %v6699_v45, %v4885_v44  ;;  %v5525_v29 = vld [vmem:[%s10385_s4 + $0x798] sm:$0xf] }
 0x262   :  { %v6966_v58 = vld [vmem:[%s10385_s4 + $0xb14] sm:$0xf]  ;;  %v6226_v51 = vor.u32 %v7030_v62, %v6223_v63  ;;  %3678 = vmatpush.bf16.msrb.mxu0 %v6002_v61  ;;  %3704 = vmatpush.bf16.msrb.mxu2 %v4726_v0  ;;  %v4597_v62 = vld [vmem:[%s10385_s4 + $0x58] sm:$0xf] }
 0x263   :  { %v5967_v3 = vld [vmem:[%s10385_s4 + $0xb30] sm:$0xf0]  ;;  %v6627_v63 = vld [vmem:[%s10385_s4 + $0x74] sm:$0xf0] }
 0x264   :  { %v5970_v14 = vor.u32 %v6966_v58, %v5967_v3  ;;  %v7022_v19 = vld [vmem:[%s10385_s4 + $0xcd4] sm:$0xf]  ;;  %3717 = vmatpush.bf16.msrb.mxu3 %v4982_v1  ;;  %3692 = vmatpush.bf16.msrb.mxu1 %v6226_v51  ;;  %v4853_v0 = vld [vmem:[%s10385_s4 + $0x258] sm:$0xf]  ;;  %v4598_v7 = vor.u32 %v6627_v63, %v4597_v62  ;;  %v3453_v9 = vpop.f32.mrf.mxu2  ;;  %v3490_v6 = vpop.f32.mrf.mxu1 }
 0x265   :  { %v6191_v49 = vld [vmem:[%s10385_s4 + $0xcf0] sm:$0xf0]  ;;  %v6691_v1 = vld [vmem:[%s10385_s4 + $0x274] sm:$0xf0] }
 0x266   :  { %v6958_v21 = vld [vmem:[%s10385_s4 + $0xad4] sm:$0xf]  ;;  %v6194_v28 = vor.u32 %v7022_v19, %v6191_v49  ;;  %3679 = vmatpush.bf16.msrb.mxu0 %v5970_v14  ;;  %3705 = vmatpush.bf16.msrb.mxu2 %v4694_v46  ;;  %v4854_v51 = vor.u32 %v6691_v1, %v4853_v0  ;;  %v4565_v19 = vld [vmem:[%s10385_s4 + $0x18] sm:$0xf]  ;;  %v3466_v49 = vpop.f32.mrf.mxu3 }
 0x267   :  { %v5935_v47 = vld [vmem:[%s10385_s4 + $0xaf0] sm:$0xf0]  ;;  %v6619_v46 = vld [vmem:[%s10385_s4 + $0x34] sm:$0xf0] }
 0x268   :  { %v5938_v31 = vor.u32 %v6958_v21, %v5935_v47  ;;  %v7014_v33 = vld [vmem:[%s10385_s4 + $0xc94] sm:$0xf]  ;;  %3718 = vmatpush.bf16.msrb.mxu3 %v4950_v20  ;;  %3693 = vmatpush.bf16.msrb.mxu1 %v6194_v28  ;;  %v4821_v20 = vld [vmem:[%s10385_s4 + $0x218] sm:$0xf] }
 0x269   :  { %v6159_v34 = vld [vmem:[%s10385_s4 + $0xcb0] sm:$0xf0]  ;;  %v6683_v21 = vld [vmem:[%s10385_s4 + $0x234] sm:$0xf0] }
 0x26a   :  { %v6950_v38 = vld [vmem:[%s10385_s4 + $0xa94] sm:$0xf]  ;;  %v6162_v48 = vor.u32 %v7014_v33, %v6159_v34  ;;  %3680 = vmatpush.bf16.msrb.mxu0 %v5938_v31  ;;  %3706 = vmatpush.bf16.msrb.mxu2 %v4662_v35  ;;  %v6069_v31 = vld [vmem:[%s10385_s4 + $0xbd8] sm:$0xf]  ;;  %v4566_v34 = vor.u32 %v6619_v46, %v4565_v19  ;;  %v4822_v35 = vor.u32 %v6683_v21, %v4821_v20  ;;  %v3477_v46 = vpop.f32.mrf.mxu0 }
 0x26b   :  { %v5903_v39 = vld [vmem:[%s10385_s4 + $0xab0] sm:$0xf0]  ;;  %v6995_v33 = vld [vmem:[%s10385_s4 + $0xbf4] sm:$0xf0]  ;;  %v3478_v20 = vadd.f32 %v3477_v46, %v9500_v53 }
 0x26c   :  { %v5906_v54 = vor.u32 %v6950_v38, %v5903_v39  ;;  %v7006_v55 = vld [vmem:[%s10385_s4 + $0xc54] sm:$0xf]  ;;  %3719 = vmatpush.bf16.msrb.mxu3 %v4918_v36  ;;  %3694 = vmatpush.bf16.msrb.mxu1 %v6162_v48  ;;  %v5302_v36 = vor.u32 %v6803_v25, %v5301_v24  ;;  %v6859_v37 = vld [vmem:[%s10385_s4 + $0x7b4] sm:$0xf0]  ;;  %v5814_v38 = vor.u32 %v6931_v30, %v5813_v26 }
 0x26d   :  { %v6127_v56 = vld [vmem:[%s10385_s4 + $0xc70] sm:$0xf0]  ;;  %v6070_v39 = vor.u32 %v6995_v33, %v6069_v31  ;;  %v5269_v40 = vld [vmem:[%s10385_s4 + $0x598] sm:$0xf]  ;;  %v5526_v48 = vor.u32 %v6859_v37, %v5525_v29 }
 0x26e   :  { %v6942_v60 = vld [vmem:[%s10385_s4 + $0xa54] sm:$0xf]  ;;  %v6130_v2 = vor.u32 %v7006_v55, %v6127_v56  ;;  %3681 = vmatpush.bf16.msrb.mxu0 %v5906_v54  ;;  %3707 = vmatpush.bf16.msrb.mxu2 %v4630_v57  ;;  %v6795_v41 = vld [vmem:[%s10385_s4 + $0x5b4] sm:$0xf0] }
 0x26f   :  { %v5871_v61 = vld [vmem:[%s10385_s4 + $0xa70] sm:$0xf0]  ;;  %v5781_v42 = vld [vmem:[%s10385_s4 + $0x998] sm:$0xf]  ;;  %v5270_v50 = vor.u32 %v6795_v41, %v5269_v40  ;;  %v3492_v40 = vpop.f32.mrf.mxu1  ;;  %v3503_v41 = vpop.f32.mrf.mxu2 }
 0x270   :  { %v6998_v58 = vld [vmem:[%s10385_s4 + $0xc14] sm:$0xf]  ;;  %v5874_v3 = vor.u32 %v6942_v60, %v5871_v61  ;;  %3720 = vmatpush.bf16.msrb.mxu3 %v4886_v59  ;;  %3695 = vmatpush.bf16.msrb.mxu1 %v6130_v2  ;;  %v6923_v43 = vld [vmem:[%s10385_s4 + $0x9b4] sm:$0xf0]  ;;  %v6663_v40 = vld [vmem:[%s10385_s4 + $0x19c] sm:$0xf] }
 0x271   :  { %v6095_v4 = vld [vmem:[%s10385_s4 + $0xc30] sm:$0xf0]  ;;  %v6037_v44 = vld [vmem:[%s10385_s4 + $0xb98] sm:$0xf]  ;;  %v5782_v56 = vor.u32 %v6923_v43, %v5781_v42 }
 0x272   :  { %v6934_v11 = vld [vmem:[%s10385_s4 + $0xa14] sm:$0xf]  ;;  %v6098_v47 = vor.u32 %v6998_v58, %v6095_v4  ;;  %3682 = vmatpush.bf16.msrb.mxu0 %v5874_v3  ;;  %3708 = vmatpush.bf16.msrb.mxu2 %v4598_v7  ;;  %v6987_v45 = vld [vmem:[%s10385_s4 + $0xbb4] sm:$0xf0] }
 0x273   :  { %v5839_v14 = vld [vmem:[%s10385_s4 + $0xa30] sm:$0xf0]  ;;  %v5493_v54 = vld [vmem:[%s10385_s4 + $0x758] sm:$0xf]  ;;  %v6038_v57 = vor.u32 %v6987_v45, %v6037_v44 }
 0x274   :  { %v5842_v28 = vor.u32 %v6934_v11, %v5839_v14  ;;  %3721 = vmatpush.bf16.msrb.mxu3 %v4854_v51  ;;  %3696 = vmatpush.bf16.msrb.mxu1 %v6098_v47  ;;  %v6851_v55 = vld [vmem:[%s10385_s4 + $0x774] sm:$0xf0] }
 0x275   :  { %v5237_v59 = vld [vmem:[%s10385_s4 + $0x558] sm:$0xf]  ;;  %v5494_v1 = vor.u32 %v6851_v55, %v5493_v54 }
 0x276   :  { %3683 = vmatpush.bf16.msrb.mxu0 %v5842_v28  ;;  %3709 = vmatpush.bf16.msrb.mxu2 %v4566_v34  ;;  %v6787_v60 = vld [vmem:[%s10385_s4 + $0x574] sm:$0xf0]  ;;  %v3491_v34 = vadd.f32 %v3490_v6, %v3478_v20 }
 0x277   :  { %3697 = vmatmul.bf16.vlgmr.msrb.gmra.mxu1 %v7883_v22  ;;  %v5749_v61 = vld [vmem:[%s10385_s4 + $0x958] sm:$0xf]  ;;  %v5238_v2 = vor.u32 %v6787_v60, %v5237_v59  ;;  %v3505_v46 = vpop.f32.mrf.mxu2 }
 0x278   :  { %3741 = vmatpush.bf16.msra.mxu1 %v5558_v27  ;;  %3722 = vmatpush.bf16.msrb.mxu3 %v4822_v35  ;;  %v6915_v62 = vld [vmem:[%s10385_s4 + $0x974] sm:$0xf0]  ;;  %v3504_v45 = vadd.f32 %v3503_v41, %v3491_v34  ;;  %v4759_v41 = vld [vmem:[%s10385_s4 + $0x1b8] sm:$0xf0] }
 0x279   :  { %3684 = vmatmul.bf16.vlgmr.msrb.gmra.mxu0 %v7869_v12  ;;  %3710 = vmatmul.bf16.vlgmr.msrb.gmra.mxu2 %v7756_v16  ;;  %v6005_v63 = vld [vmem:[%s10385_s4 + $0xb58] sm:$0xf]  ;;  %v5750_v4 = vor.u32 %v6915_v62, %v5749_v61 }
 0x27a   :  { %3728 = vmatpush.bf16.msra.mxu0 %v5302_v36  ;;  %3754 = vmatpush.bf16.msra.mxu2 %v5814_v38  ;;  %v6979_v0 = vld [vmem:[%s10385_s4 + $0xb74] sm:$0xf0] }
 0x27b   :  { %3723 = vmatmul.bf16.vlgmr.msrb.gmra.mxu3 %v7743_v8  ;;  %v5461_v58 = vld [vmem:[%s10385_s4 + $0x718] sm:$0xf]  ;;  %v6006_v5 = vor.u32 %v6979_v0, %v6005_v63 }
 0x27c   :  { %3767 = vmatpush.bf16.msra.mxu3 %v6070_v39  ;;  %3742 = vmatpush.bf16.msra.mxu1 %v5526_v48  ;;  %v6843_v3 = vld [vmem:[%s10385_s4 + $0x734] sm:$0xf0]  ;;  %v3516_v48 = vpop.f32.mrf.mxu3 }
 0x27d   :  { %v5205_v7 = vld [vmem:[%s10385_s4 + $0x518] sm:$0xf]  ;;  %v5462_v49 = vor.u32 %v6843_v3, %v5461_v58  ;;  %v9699_v59 = vadd.f32 %v3516_v48, %v3504_v45  ;;  %v6727_v48 = vld [vmem:[%s10385_s4 + $0x39c] sm:$0xf] }
 0x27e   :  { %3729 = vmatpush.bf16.msra.mxu0 %v5270_v50  ;;  %3755 = vmatpush.bf16.msra.mxu2 %v5782_v56  ;;  %v6779_v51 = vld [vmem:[%s10385_s4 + $0x534] sm:$0xf0] }
 0x27f   :  { %v5717_v9 = vld [vmem:[%s10385_s4 + $0x918] sm:$0xf]  ;;  %v5206_v21 = vor.u32 %v6779_v51, %v5205_v7 }
 0x280   :  { %3768 = vmatpush.bf16.msra.mxu3 %v6038_v57  ;;  %v6907_v11 = vld [vmem:[%s10385_s4 + $0x934] sm:$0xf0]  ;;  %3743 = vmatpush.bf16.msra.mxu1 %v5494_v1  ;;  %v3479_v57 = vpop.f32.mrf.mxu0 }
 0x281   :  { %v5973_v14 = vld [vmem:[%s10385_s4 + $0xb18] sm:$0xf]  ;;  %v5718_v25 = vor.u32 %v6907_v11, %v5717_v9  ;;  %v6671_v11 = vld [vmem:[%s10385_s4 + $0x1dc] sm:$0xf] }
 0x282   :  { %v6971_v19 = vld [vmem:[%s10385_s4 + $0xb34] sm:$0xf0]  ;;  %3730 = vmatpush.bf16.msra.mxu0 %v5238_v2  ;;  %3756 = vmatpush.bf16.msra.mxu2 %v5750_v4 }
 0x283   :  { %v5429_v47 = vld [vmem:[%s10385_s4 + $0x6d8] sm:$0xf]  ;;  %v5974_v26 = vor.u32 %v6971_v19, %v5973_v14  ;;  %v4791_v14 = vld [vmem:[%s10385_s4 + $0x1f8] sm:$0xf0] }
 0x284   :  { %v6835_v24 = vld [vmem:[%s10385_s4 + $0x6f4] sm:$0xf0]  ;;  %3769 = vmatpush.bf16.msra.mxu3 %v6006_v5  ;;  %3744 = vmatpush.bf16.msra.mxu1 %v5462_v49 }
 0x285   :  { %v5173_v27 = vld [vmem:[%s10385_s4 + $0x4d8] sm:$0xf]  ;;  %v5430_v35 = vor.u32 %v6835_v24, %v5429_v47  ;;  %v3518_v24 = vpop.f32.mrf.mxu3 }
 0x286   :  { %v6771_v53 = vld [vmem:[%s10385_s4 + $0x4f4] sm:$0xf0]  ;;  %3731 = vmatpush.bf16.msra.mxu0 %v5206_v21  ;;  %3757 = vmatpush.bf16.msra.mxu2 %v5718_v25 }
 0x287   :  { %v5685_v28 = vld [vmem:[%s10385_s4 + $0x8d8] sm:$0xf]  ;;  %v5174_v36 = vor.u32 %v6771_v53, %v5173_v27 }
 0x288   :  { %v6899_v30 = vld [vmem:[%s10385_s4 + $0x8f4] sm:$0xf0]  ;;  %3770 = vmatpush.bf16.msra.mxu3 %v5974_v26  ;;  %3745 = vmatpush.bf16.msra.mxu1 %v5430_v35  ;;  %v5047_v35 = vld [vmem:[%s10385_s4 + $0x3f8] sm:$0xf0] }
 0x289   :  { %v5941_v31 = vld [vmem:[%s10385_s4 + $0xad8] sm:$0xf]  ;;  %v5686_v38 = vor.u32 %v6899_v30, %v5685_v28 }
 0x28a   :  { %v6963_v33 = vld [vmem:[%s10385_s4 + $0xaf4] sm:$0xf0]  ;;  %3732 = vmatpush.bf16.msra.mxu0 %v5174_v36  ;;  %v6799_v36 = vld [vmem:[%s10385_s4 + $0x5dc] sm:$0xf] }
 0x28b   :  { %v5397_v29 = vld [vmem:[%s10385_s4 + $0x698] sm:$0xf]  ;;  %v5942_v39 = vor.u32 %v6963_v33, %v5941_v31  ;;  %3758 = vmatpush.bf16.msra.mxu2 %v5686_v38  ;;  %v6735_v31 = vld [vmem:[%s10385_s4 + $0x3dc] sm:$0xf]  ;;  %v4794_v33 = vor.u32 %v6671_v11, %v4791_v14 }
 0x28c   :  { %v6827_v37 = vld [vmem:[%s10385_s4 + $0x6b4] sm:$0xf0] }
 0x28d   :  { %v5141_v42 = vld [vmem:[%s10385_s4 + $0x498] sm:$0xf]  ;;  %v5398_v56 = vor.u32 %v6827_v37, %v5397_v29  ;;  %3771 = vmatpush.bf16.msra.mxu3 %v5942_v39  ;;  %v5303_v29 = vld [vmem:[%s10385_s4 + $0x5f8] sm:$0xf0] }
 0x28e   :  { %v6763_v43 = vld [vmem:[%s10385_s4 + $0x4b4] sm:$0xf0] }
 0x28f   :  { %v5653_v44 = vld [vmem:[%s10385_s4 + $0x898] sm:$0xf]  ;;  %v5142_v60 = vor.u32 %v6763_v43, %v5141_v42  ;;  %3746 = vmatpush.bf16.msra.mxu1 %v5398_v56  ;;  %v5050_v42 = vor.u32 %v6735_v31, %v5047_v35  ;;  %v5306_v43 = vor.u32 %v6799_v36, %v5303_v29  ;;  %v4762_v56 = vor.u32 %v6663_v40, %v4759_v41  ;;  %v6703_v35 = vld [vmem:[%s10385_s4 + $0x2dc] sm:$0xf] }
 0x290   :  { %v6891_v50 = vld [vmem:[%s10385_s4 + $0x8b4] sm:$0xf0]  ;;  %v4919_v36 = vld [vmem:[%s10385_s4 + $0x2f8] sm:$0xf0] }
 0x291   :  { %v5909_v54 = vld [vmem:[%s10385_s4 + $0xa98] sm:$0xf]  ;;  %v5654_v63 = vor.u32 %v6891_v50, %v5653_v44  ;;  %3733 = vmatpush.bf16.msra.mxu0 %v5142_v60  ;;  %v5015_v50 = vld [vmem:[%s10385_s4 + $0x3b8] sm:$0xf0] }
 0x292   :  { %v6955_v55 = vld [vmem:[%s10385_s4 + $0xab4] sm:$0xf0]  ;;  %v6655_v60 = vld [vmem:[%s10385_s4 + $0x15c] sm:$0xf] }
 0x293   :  { %v5365_v61 = vld [vmem:[%s10385_s4 + $0x658] sm:$0xf]  ;;  %v5910_v0 = vor.u32 %v6955_v55, %v5909_v54  ;;  %3759 = vmatpush.bf16.msra.mxu2 %v5654_v63  ;;  %v6791_v54 = vld [vmem:[%s10385_s4 + $0x59c] sm:$0xf] }
 0x294   :  { %v6819_v62 = vld [vmem:[%s10385_s4 + $0x674] sm:$0xf0]  ;;  %v5271_v55 = vld [vmem:[%s10385_s4 + $0x5b8] sm:$0xf0] }
 0x295   :  { %v5109_v1 = vld [vmem:[%s10385_s4 + $0x458] sm:$0xf]  ;;  %v5366_v6 = vor.u32 %v6819_v62, %v5365_v61  ;;  %3772 = vmatpush.bf16.msra.mxu3 %v5910_v0  ;;  %v4727_v61 = vld [vmem:[%s10385_s4 + $0x178] sm:$0xf0]  ;;  %v5018_v62 = vor.u32 %v6727_v48, %v5015_v50  ;;  %v5274_v63 = vor.u32 %v6791_v54, %v5271_v55  ;;  %v3555_v48 = vpop.f32.mrf.mxu2 }
 0x296   :  { %v6755_v2 = vld [vmem:[%s10385_s4 + $0x474] sm:$0xf0]  ;;  %v6767_v29 = vld [vmem:[%s10385_s4 + $0x4dc] sm:$0xf] }
 0x297   :  { %v5621_v58 = vld [vmem:[%s10385_s4 + $0x858] sm:$0xf]  ;;  %v5110_v51 = vor.u32 %v6755_v2, %v5109_v1  ;;  %3747 = vmatpush.bf16.msra.mxu1 %v5366_v6  ;;  %v6719_v2 = vld [vmem:[%s10385_s4 + $0x35c] sm:$0xf] }
 0x298   :  { %v6883_v3 = vld [vmem:[%s10385_s4 + $0x874] sm:$0xf0]  ;;  %v6631_v41 = vld [vmem:[%s10385_s4 + $0x9c] sm:$0xf] }
 0x299   :  { %v5877_v4 = vld [vmem:[%s10385_s4 + $0xa58] sm:$0xf]  ;;  %v5622_v19 = vor.u32 %v6883_v3, %v5621_v58  ;;  %3734 = vmatpush.bf16.msra.mxu0 %v5110_v51  ;;  %v4983_v58 = vld [vmem:[%s10385_s4 + $0x378] sm:$0xf0] }
 0x29a   :  { %v6947_v5 = vld [vmem:[%s10385_s4 + $0xa74] sm:$0xf0]  ;;  %v6783_v3 = vld [vmem:[%s10385_s4 + $0x55c] sm:$0xf]  ;;  %v4986_v11 = vor.u32 %v6719_v2, %v4983_v58 }
 0x29b   :  { %v5333_v7 = vld [vmem:[%s10385_s4 + $0x618] sm:$0xf]  ;;  %v5878_v49 = vor.u32 %v6947_v5, %v5877_v4  ;;  %3760 = vmatpush.bf16.msra.mxu2 %v5622_v19  ;;  %v5239_v4 = vld [vmem:[%s10385_s4 + $0x578] sm:$0xf0]  ;;  %v4730_v5 = vor.u32 %v6655_v60, %v4727_v61  ;;  %v3542_v19 = vpop.f32.mrf.mxu1 }
 0x29c   :  { %v6811_v9 = vld [vmem:[%s10385_s4 + $0x634] sm:$0xf0]  ;;  %v4695_v51 = vld [vmem:[%s10385_s4 + $0x138] sm:$0xf0]  ;;  %v5242_v14 = vor.u32 %v6783_v3, %v5239_v4 }
 0x29d   :  { %v5077_v20 = vld [vmem:[%s10385_s4 + $0x418] sm:$0xf]  ;;  %v5334_v53 = vor.u32 %v6811_v9, %v5333_v7  ;;  %3773 = vmatpush.bf16.msra.mxu3 %v5878_v49  ;;  %v6647_v7 = vld [vmem:[%s10385_s4 + $0x11c] sm:$0xf]  ;;  %v904_v9 = vperm.slane %v9446_v10, 4 }
 0x29e   :  { %v6747_v21 = vld [vmem:[%s10385_s4 + $0x434] sm:$0xf0]  ;;  %v4951_v10 = vld [vmem:[%s10385_s4 + $0x338] sm:$0xf0]  ;;  %v4698_v24 = vor.u32 %v6647_v7, %v4695_v51 }
 0x29f   :  { %v5589_v47 = vld [vmem:[%s10385_s4 + $0x818] sm:$0xf]  ;;  %v5078_v34 = vor.u32 %v6747_v21, %v5077_v20  ;;  %3748 = vmatpush.bf16.msra.mxu1 %v5334_v53  ;;  %v6711_v20 = vld [vmem:[%s10385_s4 + $0x31c] sm:$0xf] }
 0x2a0   :  { %v6875_v25 = vld [vmem:[%s10385_s4 + $0x834] sm:$0xf0]  ;;  %v6775_v21 = vld [vmem:[%s10385_s4 + $0x51c] sm:$0xf] }
 0x2a1   :  { %v5845_v26 = vld [vmem:[%s10385_s4 + $0xa18] sm:$0xf]  ;;  %v5590_v37 = vor.u32 %v6875_v25, %v5589_v47  ;;  %3735 = vmatpush.bf16.msra.mxu0 %v5078_v34  ;;  %v5207_v47 = vld [vmem:[%s10385_s4 + $0x538] sm:$0xf0]  ;;  %v3529_v25 = vpop.f32.mrf.mxu0 }
 0x2a2   :  { %v6939_v27 = vld [vmem:[%s10385_s4 + $0xa34] sm:$0xf0]  ;;  %3749 = vmatmul.bf16.vlgmr.msra.gmra.mxu1 %v7760_v18  ;;  %v6639_v53 = vld [vmem:[%s10385_s4 + $0xdc] sm:$0xf]  ;;  %v5210_v31 = vor.u32 %v6775_v21, %v5207_v47 }
 0x2a3   :  { %v6325_v28 = vld [vmem:[%s10385_s4 + $0xdd8] sm:$0xf]  ;;  %v5846_v38 = vor.u32 %v6939_v27, %v5845_v26  ;;  %3793 = vmatpush.bf16.msrb.mxu1 %v4794_v33  ;;  %3761 = vmatpush.bf16.msra.mxu2 %v5590_v37  ;;  %v3530_v26 = vadd.f32 %v3529_v25, %v904_v9  ;;  %v5175_v37 = vld [vmem:[%s10385_s4 + $0x4f8] sm:$0xf0]  ;;  %v3557_v25 = vpop.f32.mrf.mxu2 }
 0x2a4   :  { %v7059_v30 = vld [vmem:[%s10385_s4 + $0xdf4] sm:$0xf0]  ;;  %3736 = vmatmul.bf16.vlgmr.msra.gmra.mxu0 %v7758_v17  ;;  %v6695_v55 = vld [vmem:[%s10385_s4 + $0x29c] sm:$0xf] }
 0x2a5   :  { %v6326_v39 = vor.u32 %v7059_v30, %v6325_v28  ;;  %v6293_v44 = vld [vmem:[%s10385_s4 + $0xd98] sm:$0xf]  ;;  %3774 = vmatpush.bf16.msra.mxu3 %v5846_v38  ;;  %v4663_v28 = vld [vmem:[%s10385_s4 + $0xf8] sm:$0xf0]  ;;  %v4954_v30 = vor.u32 %v6711_v20, %v4951_v10  ;;  %v3543_v38 = vadd.f32 %v3542_v19, %v3530_v26 }
 0x2a6   :  { %v7051_v45 = vld [vmem:[%s10385_s4 + $0xdb4] sm:$0xf0]  ;;  %3762 = vmatmul.bf16.vlgmr.msra.gmra.mxu2 %v7877_v15  ;;  %v4887_v60 = vld [vmem:[%s10385_s4 + $0x2b8] sm:$0xf0] }
 0x2a7   :  { %3780 = vmatpush.bf16.msrb.mxu0 %v6326_v39  ;;  %v6294_v57 = vor.u32 %v7051_v45, %v6293_v44  ;;  %3806 = vmatpush.bf16.msrb.mxu2 %v5050_v42  ;;  %v6261_v0 = vld [vmem:[%s10385_s4 + $0xd58] sm:$0xf]  ;;  %v4666_v39 = vor.u32 %v6639_v53, %v4663_v28  ;;  %v4631_v42 = vld [vmem:[%s10385_s4 + $0xb8] sm:$0xf0]  ;;  %v5178_v44 = vor.u32 %v6767_v29, %v5175_v37  ;;  %v3544_v45 = vpop.f32.mrf.mxu1 }
 0x2a8   :  { %v7043_v1 = vld [vmem:[%s10385_s4 + $0xd74] sm:$0xf0]  ;;  %3775 = vmatmul.bf16.vlgmr.msra.gmra.mxu3 %v7869_v12  ;;  %3794 = vmatpush.bf16.msrb.mxu1 %v4762_v56  ;;  %v3556_v56 = vadd.f32 %v3555_v48, %v3543_v38  ;;  %v6759_v61 = vld [vmem:[%s10385_s4 + $0x49c] sm:$0xf]  ;;  %v4890_v4 = vor.u32 %v6695_v55, %v4887_v60 }
 0x2a9   :  { %3819 = vmatpush.bf16.msrb.mxu3 %v5306_v43  ;;  %v6262_v6 = vor.u32 %v7043_v1, %v6261_v0  ;;  %v6229_v49 = vld [vmem:[%s10385_s4 + $0xd18] sm:$0xf]  ;;  %v4922_v43 = vor.u32 %v6703_v35, %v4919_v36  ;;  %v3531_v0 = vpop.f32.mrf.mxu0  ;;  %v6623_v58 = vld [vmem:[%s10385_s4 + $0x5c] sm:$0xf] }
 0x2aa   :  { %v7035_v46 = vld [vmem:[%s10385_s4 + $0xd34] sm:$0xf0]  ;;  %v4599_v3 = vld [vmem:[%s10385_s4 + $0x78] sm:$0xf0] }
 0x2ab   :  { %3781 = vmatpush.bf16.msrb.mxu0 %v6294_v57  ;;  %3807 = vmatpush.bf16.msrb.mxu2 %v5018_v62  ;;  %v6230_v27 = vor.u32 %v7035_v46, %v6229_v49  ;;  %v6197_v33 = vld [vmem:[%s10385_s4 + $0xcd8] sm:$0xf]  ;;  %v3568_v57 = vpop.f32.mrf.mxu3  ;;  %v5143_v62 = vld [vmem:[%s10385_s4 + $0x4b8] sm:$0xf0]  ;;  %v4602_v19 = vor.u32 %v6623_v58, %v4599_v3 }
 0x2ac   :  { %3795 = vmatpush.bf16.msrb.mxu1 %v4730_v5  ;;  %v7027_v34 = vld [vmem:[%s10385_s4 + $0xcf4] sm:$0xf0]  ;;  %v9898_v1 = vadd.f32 %v3568_v57, %v3556_v56  ;;  %v5146_v5 = vor.u32 %v6759_v61, %v5143_v62  ;;  %v6687_v51 = vld [vmem:[%s10385_s4 + $0x25c] sm:$0xf] }
 0x2ad   :  { %3820 = vmatpush.bf16.msrb.mxu3 %v5274_v63  ;;  %v6198_v40 = vor.u32 %v7027_v34, %v6197_v33  ;;  %v6165_v50 = vld [vmem:[%s10385_s4 + $0xc98] sm:$0xf]  ;;  %v4634_v63 = vor.u32 %v6631_v41, %v4631_v42  ;;  %v4855_v9 = vld [vmem:[%s10385_s4 + $0x278] sm:$0xf0] }
 0x2ae   :  { %v7019_v54 = vld [vmem:[%s10385_s4 + $0xcb4] sm:$0xf0]  ;;  %v6615_v49 = vld [vmem:[%s10385_s4 + $0x1c] sm:$0xf]  ;;  %v4858_v47 = vor.u32 %v6687_v51, %v4855_v9 }
 0x2af   :  { %3782 = vmatpush.bf16.msrb.mxu0 %v6262_v6  ;;  %3808 = vmatpush.bf16.msrb.mxu2 %v4986_v11  ;;  %v6166_v2 = vor.u32 %v7019_v54, %v6165_v50  ;;  %v6133_v6 = vld [vmem:[%s10385_s4 + $0xc58] sm:$0xf]  ;;  %v6751_v11 = vld [vmem:[%s10385_s4 + $0x45c] sm:$0xf] }
 0x2b0   :  { %3796 = vmatpush.bf16.msrb.mxu1 %v4698_v24  ;;  %v7011_v7 = vld [vmem:[%s10385_s4 + $0xc74] sm:$0xf0]  ;;  %v4567_v20 = vld [vmem:[%s10385_s4 + $0x38] sm:$0xf0] }
 0x2b1   :  { %3821 = vmatpush.bf16.msrb.mxu3 %v5242_v14  ;;  %v5111_v14 = vld [vmem:[%s10385_s4 + $0x478] sm:$0xf0]  ;;  %v6134_v46 = vor.u32 %v7011_v7, %v6133_v6  ;;  %v6101_v26 = vld [vmem:[%s10385_s4 + $0xc18] sm:$0xf]  ;;  %v4570_v34 = vor.u32 %v6615_v49, %v4567_v20  ;;  %v3594_v20 = vpop.f32.mrf.mxu1 }
 0x2b2   :  { %v6927_v10 = vld [vmem:[%s10385_s4 + $0x9dc] sm:$0xf]  ;;  %v5114_v24 = vor.u32 %v6751_v11, %v5111_v14 }
 0x2b3   :  { %3783 = vmatpush.bf16.msrb.mxu0 %v6230_v27  ;;  %3809 = vmatpush.bf16.msrb.mxu2 %v4954_v30  ;;  %v5815_v21 = vld [vmem:[%s10385_s4 + $0x9f8] sm:$0xf0]  ;;  %v7003_v27 = vld [vmem:[%s10385_s4 + $0xc34] sm:$0xf0]  ;;  %v3570_v28 = vpop.f32.mrf.mxu3 }
 0x2b4   :  { %3797 = vmatpush.bf16.msrb.mxu1 %v4666_v39  ;;  %v6679_v53 = vld [vmem:[%s10385_s4 + $0x21c] sm:$0xf]  ;;  %v5818_v37 = vor.u32 %v6927_v10, %v5815_v21  ;;  %v6102_v38 = vor.u32 %v7003_v27, %v6101_v26  ;;  %v3581_v27 = vpop.f32.mrf.mxu0 }
 0x2b5   :  { %3822 = vmatpush.bf16.msrb.mxu3 %v5210_v31  ;;  %v4823_v30 = vld [vmem:[%s10385_s4 + $0x238] sm:$0xf0] }
 0x2b6   :  { %v6743_v31 = vld [vmem:[%s10385_s4 + $0x41c] sm:$0xf]  ;;  %v4826_v42 = vor.u32 %v6679_v53, %v4823_v30  ;;  %v3582_v53 = vadd.f32 %v3581_v27, %v9898_v1 }
 0x2b7   :  { %3784 = vmatpush.bf16.msrb.mxu0 %v6198_v40  ;;  %3810 = vmatpush.bf16.msrb.mxu2 %v4922_v43  ;;  %v5079_v33 = vld [vmem:[%s10385_s4 + $0x438] sm:$0xf0] }
 0x2b8   :  { %3798 = vmatpush.bf16.msrb.mxu1 %v4634_v63  ;;  %v6863_v35 = vld [vmem:[%s10385_s4 + $0x7dc] sm:$0xf]  ;;  %v5082_v43 = vor.u32 %v6743_v31, %v5079_v33 }
 0x2b9   :  { %3823 = vmatpush.bf16.msrb.mxu3 %v5178_v44  ;;  %v5559_v36 = vld [vmem:[%s10385_s4 + $0x7f8] sm:$0xf0] }
 0x2ba   :  { %v6991_v29 = vld [vmem:[%s10385_s4 + $0xbdc] sm:$0xf]  ;;  %v5562_v44 = vor.u32 %v6863_v35, %v5559_v36 }
 0x2bb   :  { %3785 = vmatpush.bf16.msrb.mxu0 %v6166_v2  ;;  %3811 = vmatpush.bf16.msrb.mxu2 %v4890_v4  ;;  %v6071_v39 = vld [vmem:[%s10385_s4 + $0xbf8] sm:$0xf0] }
 0x2bc   :  { %3799 = vmatpush.bf16.msrb.mxu1 %v4602_v19  ;;  %v7055_v40 = vld [vmem:[%s10385_s4 + $0xddc] sm:$0xf]  ;;  %v6074_v50 = vor.u32 %v6991_v29, %v6071_v39  ;;  %v3595_v39 = vadd.f32 %v3594_v20, %v3582_v53 }
 0x2bd   :  { %3824 = vmatpush.bf16.msrb.mxu3 %v5146_v5  ;;  %v6327_v41 = vld [vmem:[%s10385_s4 + $0xdf8] sm:$0xf0] }
 0x2be   :  { %v6919_v45 = vld [vmem:[%s10385_s4 + $0x99c] sm:$0xf]  ;;  %v6330_v54 = vor.u32 %v7055_v40, %v6327_v41 }
 0x2bf   :  { %3786 = vmatpush.bf16.msrb.mxu0 %v6134_v46  ;;  %3812 = vmatpush.bf16.msrb.mxu2 %v4858_v47  ;;  %v5783_v48 = vld [vmem:[%s10385_s4 + $0x9b8] sm:$0xf0] }
 0x2c0   :  { %3800 = vmatpush.bf16.msrb.mxu1 %v4570_v34  ;;  %v6855_v55 = vld [vmem:[%s10385_s4 + $0x79c] sm:$0xf]  ;;  %v5786_v63 = vor.u32 %v6919_v45, %v5783_v48  ;;  %v3596_v48 = vpop.f32.mrf.mxu1 }
 0x2c1   :  { %3825 = vmatpush.bf16.msrb.mxu3 %v5114_v24  ;;  %v5527_v56 = vld [vmem:[%s10385_s4 + $0x7b8] sm:$0xf0] }
 0x2c2   :  { %v6983_v57 = vld [vmem:[%s10385_s4 + $0xb9c] sm:$0xf]  ;;  %v5530_v0 = vor.u32 %v6855_v55, %v5527_v56 }
 0x2c3   :  { %3787 = vmatpush.bf16.msrb.mxu0 %v6102_v38  ;;  %v6039_v60 = vld [vmem:[%s10385_s4 + $0xbb8] sm:$0xf0]  ;;  %3813 = vmatpush.bf16.msrb.mxu2 %v4826_v42 }
 0x2c4   :  { %3845 = vmatpush.bf16.msra.mxu1 %v5818_v37  ;;  %v7047_v61 = vld [vmem:[%s10385_s4 + $0xd9c] sm:$0xf]  ;;  %v6042_v3 = vor.u32 %v6983_v57, %v6039_v60  ;;  %v10090_v60 = vpop.f32.mrf.mxu3 }
 0x2c5   :  { %v6295_v62 = vld [vmem:[%s10385_s4 + $0xdb8] sm:$0xf0]  ;;  %3826 = vmatpush.bf16.msrb.mxu3 %v5082_v43  ;;  %3801 = vmatmul.bf16.vlgmr.msrb.gmra.mxu1 %v7756_v16 }
 0x2c6   :  { %v6911_v2 = vld [vmem:[%s10385_s4 + $0x95c] sm:$0xf]  ;;  %v6298_v4 = vor.u32 %v7047_v61, %v6295_v62  ;;  %3788 = vmatmul.bf16.vlgmr.msrb.gmra.mxu0 %v7883_v22  ;;  %3814 = vmatmul.bf16.vlgmr.msrb.gmra.mxu2 %v7743_v8 }
 0x2c7   :  { %3832 = vmatpush.bf16.msra.mxu0 %v5562_v44  ;;  %v5751_v58 = vld [vmem:[%s10385_s4 + $0x978] sm:$0xf0]  ;;  %3858 = vmatpush.bf16.msra.mxu2 %v6074_v50  ;;  %v3607_v50 = vpop.f32.mrf.mxu2 }
 0x2c8   :  { %v6847_v5 = vld [vmem:[%s10385_s4 + $0x75c] sm:$0xf]  ;;  %3827 = vmatmul.bf16.vlgmr.msrb.gmra.mxu3 %v7758_v17  ;;  %3846 = vmatpush.bf16.msra.mxu1 %v5786_v63  ;;  %v5754_v11 = vor.u32 %v6911_v2, %v5751_v58  ;;  %v10088_v57 = vadd.f32 %v3607_v50, %v3595_v39  ;;  %v3583_v2 = vpop.f32.mrf.mxu0  ;;  %v7090_v39 = vld [vmem:[%s10387_s6 + $0xf0] sm:$0xff] }
 0x2c9   :  { %3871 = vmatpush.bf16.msra.mxu3 %v6330_v54  ;;  %v5495_v16 = vld [vmem:[%s10385_s4 + $0x778] sm:$0xf0]  ;;  %v7062_v2 = vld [vmem:[%s10387_s6 + $0x10] sm:$0xff] }
 0x2ca   :  { %v6975_v6 = vld [vmem:[%s10385_s4 + $0xb5c] sm:$0xf]  ;;  %v5498_v14 = vor.u32 %v6847_v5, %v5495_v16 }
 0x2cb   :  { %v6007_v7 = vld [vmem:[%s10385_s4 + $0xb78] sm:$0xf0]  ;;  %3833 = vmatpush.bf16.msra.mxu0 %v5530_v0  ;;  %3859 = vmatpush.bf16.msra.mxu2 %v6042_v3 }
 0x2cc   :  { %v7039_v51 = vld [vmem:[%s10385_s4 + $0xd5c] sm:$0xf]  ;;  %v6010_v49 = vor.u32 %v6975_v6, %v6007_v7  ;;  %3847 = vmatpush.bf16.msra.mxu1 %v5754_v11 }
 0x2cd   :  { %v6263_v9 = vld [vmem:[%s10385_s4 + $0xd78] sm:$0xf0]  ;;  %3872 = vmatpush.bf16.msra.mxu3 %v6298_v4 }
 0x2ce   :  { %v6903_v8 = vld [vmem:[%s10385_s4 + $0x91c] sm:$0xf]  ;;  %v6266_v46 = vor.u32 %v7039_v51, %v6263_v9 }
 0x2cf   :  { %v5719_v19 = vld [vmem:[%s10385_s4 + $0x938] sm:$0xf0]  ;;  %3834 = vmatpush.bf16.msra.mxu0 %v5498_v14  ;;  %3860 = vmatpush.bf16.msra.mxu2 %v6010_v49 }
 0x2d0   :  { %v6839_v17 = vld [vmem:[%s10385_s4 + $0x71c] sm:$0xf]  ;;  %v5722_v26 = vor.u32 %v6903_v8, %v5719_v19 }
 0x2d1   :  { %v5463_v10 = vld [vmem:[%s10385_s4 + $0x738] sm:$0xf0]  ;;  %3873 = vmatpush.bf16.msra.mxu3 %v6266_v46 }
 0x2d2   :  { %v6967_v21 = vld [vmem:[%s10385_s4 + $0xb1c] sm:$0xf]  ;;  %v5466_v28 = vor.u32 %v6839_v17, %v5463_v10  ;;  %3848 = vmatpush.bf16.msra.mxu1 %v5722_v26  ;;  %v3609_v10 = vpop.f32.mrf.mxu2 }
 0x2d3   :  { %v5975_v47 = vld [vmem:[%s10385_s4 + $0xb38] sm:$0xf0]  ;;  %v10270_v10 = vld [vmem:[%s10386_s5] sm:$0xff] }
 0x2d4   :  { %v7031_v24 = vld [vmem:[%s10385_s4 + $0xd1c] sm:$0xf]  ;;  %v5978_v33 = vor.u32 %v6967_v21, %v5975_v47  ;;  %3835 = vmatpush.bf16.msra.mxu0 %v5466_v28 }
 0x2d5   :  { %v6231_v25 = vld [vmem:[%s10385_s4 + $0xd38] sm:$0xf0] }
 0x2d6   :  { %v6895_v30 = vld [vmem:[%s10385_s4 + $0x8dc] sm:$0xf]  ;;  %v6234_v34 = vor.u32 %v7031_v24, %v6231_v25  ;;  %3861 = vmatpush.bf16.msra.mxu2 %v5978_v33  ;;  %v3622_v25 = vpop.f32.mrf.mxu3 }
 0x2d7   :  { %v5687_v31 = vld [vmem:[%s10385_s4 + $0x8f8] sm:$0xf0]  ;;  %v7098_v25 = vld [vmem:[%s10387_s6 + $0x130] sm:$0xff] }
 0x2d8   :  { %v6831_v35 = vld [vmem:[%s10385_s4 + $0x6dc] sm:$0xf]  ;;  %v5690_v40 = vor.u32 %v6895_v30, %v5687_v31  ;;  %3874 = vmatpush.bf16.msra.mxu3 %v6234_v34 }
 0x2d9   :  { %v5431_v1 = vld [vmem:[%s10385_s4 + $0x6f8] sm:$0xf0] }
 0x2da   :  { %v6959_v36 = vld [vmem:[%s10385_s4 + $0xadc] sm:$0xf]  ;;  %v5434_v41 = vor.u32 %v6831_v35, %v5431_v1  ;;  %3849 = vmatpush.bf16.msra.mxu1 %v5690_v40  ;;  %v7065_v40 = vld [vmem:[%s10387_s6 + $0x28] sm:$0xff] }
 0x2db   :  { %v5943_v29 = vld [vmem:[%s10385_s4 + $0xaf8] sm:$0xf0] }
 0x2dc   :  { %v7023_v37 = vld [vmem:[%s10385_s4 + $0xcdc] sm:$0xf]  ;;  %v5946_v44 = vor.u32 %v6959_v36, %v5943_v29  ;;  %3836 = vmatpush.bf16.msra.mxu0 %v5434_v41  ;;  %v7074_v29 = vld [vmem:[%s10387_s6 + $0x70] sm:$0xff]  ;;  %v7072_v41 = vld [vmem:[%s10387_s6 + $0x60] sm:$0xff] }
 0x2dd   :  { %v6199_v38 = vld [vmem:[%s10385_s4 + $0xcf8] sm:$0xf0] }
 0x2de   :  { %v6887_v42 = vld [vmem:[%s10385_s4 + $0x89c] sm:$0xf]  ;;  %v6202_v45 = vor.u32 %v7023_v37, %v6199_v38  ;;  %3862 = vmatpush.bf16.msra.mxu2 %v5946_v44  ;;  %v7066_v37 = vld [vmem:[%s10387_s6 + $0x30] sm:$0xff]  ;;  %v7080_v44 = vld [vmem:[%s10387_s6 + $0xa0] sm:$0xff] }
 0x2df   :  { %v5655_v43 = vld [vmem:[%s10385_s4 + $0x8b8] sm:$0xf0]  ;;  %v7082_v38 = vld [vmem:[%s10387_s6 + $0xb0] sm:$0xff] }
 0x2e0   :  { %v6823_v54 = vld [vmem:[%s10385_s4 + $0x69c] sm:$0xf]  ;;  %v5658_v0 = vor.u32 %v6887_v42, %v5655_v43  ;;  %3875 = vmatpush.bf16.msra.mxu3 %v6202_v45  ;;  %v10194_v42 = vpop.f32.mrf.mxu0  ;;  %v7064_v43 = vld [vmem:[%s10387_s6 + $0x20] sm:$0xff] }
 0x2e1   :  { %v5399_v55 = vld [vmem:[%s10385_s4 + $0x6b8] sm:$0xf0]  ;;  %v7088_v45 = vld [vmem:[%s10387_s6 + $0xe0] sm:$0xff] }
 0x2e2   :  { %v6951_v56 = vld [vmem:[%s10385_s4 + $0xa9c] sm:$0xf]  ;;  %v5402_v58 = vor.u32 %v6823_v54, %v5399_v55  ;;  %3850 = vmatpush.bf16.msra.mxu1 %v5658_v0 }
 0x2e3   :  { %v5911_v61 = vld [vmem:[%s10385_s4 + $0xab8] sm:$0xf0] }
 0x2e4   :  { %v7015_v62 = vld [vmem:[%s10385_s4 + $0xc9c] sm:$0xf]  ;;  %v5914_v5 = vor.u32 %v6951_v56, %v5911_v61  ;;  %3837 = vmatpush.bf16.msra.mxu0 %v5402_v58  ;;  %v10217_v61 = vpop.f32.mrf.mxu2  ;;  %v7078_v58 = vld [vmem:[%s10387_s6 + $0x90] sm:$0xff] }
 0x2e5   :  { %v6167_v63 = vld [vmem:[%s10385_s4 + $0xcb8] sm:$0xf0] }
 0x2e6   :  { %v6879_v3 = vld [vmem:[%s10385_s4 + $0x85c] sm:$0xf]  ;;  %v6170_v16 = vor.u32 %v7015_v62, %v6167_v63  ;;  %3863 = vmatpush.bf16.msra.mxu2 %v5914_v5  ;;  %v10219_v62 = vpop.f32.mrf.mxu3  ;;  %v7070_v63 = vld [vmem:[%s10387_s6 + $0x50] sm:$0xff]  ;;  %v7061_v5 = vld [vmem:[%s10387_s6 + $0x8] sm:$0xff] }
 0x2e7   :  { %v5623_v4 = vld [vmem:[%s10385_s4 + $0x878] sm:$0xf0] }
 0x2e8   :  { %v6815_v6 = vld [vmem:[%s10385_s4 + $0x65c] sm:$0xf]  ;;  %v5626_v8 = vor.u32 %v6879_v3, %v5623_v4  ;;  %3876 = vmatpush.bf16.msra.mxu3 %v6170_v16  ;;  %v3635_v0 = vpop.f32.mrf.mxu0  ;;  %v7086_v3 = vld [vmem:[%s10387_s6 + $0xd0] sm:$0xff]  ;;  %v7069_v4 = vld [vmem:[%s10387_s6 + $0x48] sm:$0xff] }
 0x2e9   :  { %v5367_v7 = vld [vmem:[%s10385_s4 + $0x678] sm:$0xf0]  ;;  %v7077_v16 = vld [vmem:[%s10387_s6 + $0x88] sm:$0xff] }
 0x2ea   :  { %v6943_v51 = vld [vmem:[%s10385_s4 + $0xa5c] sm:$0xf]  ;;  %v5370_v19 = vor.u32 %v6815_v6, %v5367_v7  ;;  %3851 = vmatpush.bf16.msra.mxu1 %v5626_v8  ;;  %v7085_v6 = vld [vmem:[%s10387_s6 + $0xc8] sm:$0xff]  ;;  %v7060_v8 = vld [vmem:[%s10387_s6] sm:$0xff] }
 0x2eb   :  { %v5879_v9 = vld [vmem:[%s10385_s4 + $0xa78] sm:$0xf0] }
 0x2ec   :  { %v7007_v11 = vld [vmem:[%s10385_s4 + $0xc5c] sm:$0xf]  ;;  %v5882_v20 = vor.u32 %v6943_v51, %v5879_v9  ;;  %3838 = vmatpush.bf16.msra.mxu0 %v5370_v19  ;;  %v3661_v7 = vpop.f32.mrf.mxu2  ;;  %v7068_v9 = vld [vmem:[%s10387_s6 + $0x40] sm:$0xff]  ;;  %v3884_v19 = vmax.f32 %v8780_v32, 0.0 }
 0x2ed   :  { %v6135_v14 = vld [vmem:[%s10385_s4 + $0xc78] sm:$0xf0] }
 0x2ee   :  { %v6871_v49 = vld [vmem:[%s10385_s4 + $0x81c] sm:$0xf]  ;;  %v6138_v17 = vor.u32 %v7007_v11, %v6135_v14  ;;  %3864 = vmatpush.bf16.msra.mxu2 %v5882_v20  ;;  %v3674_v51 = vpop.f32.mrf.mxu3  ;;  %v3885_v11 = vmax.f32 %v9061_v23, 0.0  ;;  %v7084_v23 = vld [vmem:[%s10387_s6 + $0xc0] sm:$0xff]  ;;  %v3887_v20 = vmax.f32 %v9699_v59, 0.0 }
 0x2ef   :  { %v5591_v46 = vld [vmem:[%s10385_s4 + $0x838] sm:$0xf0] }
 0x2f0   :  { %v6807_v21 = vld [vmem:[%s10385_s4 + $0x61c] sm:$0xf]  ;;  %v5594_v28 = vor.u32 %v6871_v49, %v5591_v46  ;;  %3877 = vmatpush.bf16.msra.mxu3 %v6138_v17  ;;  %v7076_v49 = vld [vmem:[%s10387_s6 + $0x80] sm:$0xff]  ;;  %v3886_v46 = vmax.f32 %v9450_v13, 0.0  ;;  %v3893_v32 = vpack.c.bf16 %v3885_v11, %v3885_v11  ;;  %v7106_v13 = vld [vmem:[%s10387_s6 + $0x170] sm:$0xff]  ;;  %v906_v11 = vperm.slane %v10270_v10, 6 }
 0x2f1   :  { %v5335_v47 = vld [vmem:[%s10385_s4 + $0x638] sm:$0xf0] }
 0x2f2   :  { %v6935_v24 = vld [vmem:[%s10385_s4 + $0xa1c] sm:$0xf]  ;;  %v5338_v31 = vor.u32 %v6807_v21, %v5335_v47  ;;  %3852 = vmatpush.bf16.msra.mxu1 %v5594_v28  ;;  %v905_v21 = vperm.slane %v10270_v10, 5  ;;  %v3892_v47 = vpack.c.bf16 %v3884_v19, %v3884_v19  ;;  %v3894_v59 = vpack.c.bf16 %v3886_v46, %v3886_v46  ;;  %v7097_v28 = vld [vmem:[%s10387_s6 + $0x128] sm:$0xff] }
 0x2f3   :  { %v5847_v26 = vld [vmem:[%s10385_s4 + $0xa38] sm:$0xf0] }
 0x2f4   :  { %v6999_v27 = vld [vmem:[%s10385_s4 + $0xc1c] sm:$0xf]  ;;  %v5850_v33 = vor.u32 %v6935_v24, %v5847_v26  ;;  %3839 = vmatpush.bf16.msra.mxu0 %v5338_v31  ;;  %v3895_v24 = vpack.c.bf16 %v3887_v20, %v3887_v20  ;;  %v3621_v26 = vadd.f32 %v10090_v60, %v905_v21  ;;  %v7104_v60 = vld [vmem:[%s10387_s6 + $0x160] sm:$0xff] }
 0x2f5   :  { %v6103_v53 = vld [vmem:[%s10385_s4 + $0xc38] sm:$0xf0]  ;;  %3853 = vmatmul.bf16.vlgmr.msra.gmra.mxu1 %v7877_v15  ;;  %v7073_v15 = vld [vmem:[%s10387_s6 + $0x68] sm:$0xff] }
 0x2f6   :  { %v7075_v30 = vld [vmem:[%s10387_s6 + $0x78] sm:$0xff]  ;;  %v6106_v34 = vor.u32 %v6999_v27, %v6103_v53  ;;  %3865 = vmatpush.bf16.msra.mxu2 %v5850_v33  ;;  %v7105_v27 = vld [vmem:[%s10387_s6 + $0x168] sm:$0xff]  ;;  %v3634_v53 = vadd.f32 %v10194_v42, %v3621_v26  ;;  %v3685_v33 = vpop.f32.mrf.mxu0 }
 0x2f7   :  { %v7067_v35 = vld [vmem:[%s10387_s6 + $0x38] sm:$0xff]  ;;  %4300 = vmatpush.bf16.msrb.mxu1 %v7075_v30  ;;  %3840 = vmatmul.bf16.vlgmr.msra.gmra.mxu0 %v7760_v18  ;;  %v7081_v18 = vld [vmem:[%s10387_s6 + $0xa8] sm:$0xff] }
 0x2f8   :  { %v7083_v1 = vld [vmem:[%s10387_s6 + $0xb8] sm:$0xff]  ;;  %3878 = vmatpush.bf16.msra.mxu3 %v6106_v34  ;;  %4287 = vmatpush.bf16.msrb.mxu0 %v7067_v35  ;;  %v7096_v35 = vld [vmem:[%s10387_s6 + $0x120] sm:$0xff]  ;;  %v7113_v42 = vld [vmem:[%s10387_s6 + $0x1a8] sm:$0xff] }
 0x2f9   :  { %v7091_v36 = vld [vmem:[%s10387_s6 + $0xf8] sm:$0xff]  ;;  %3866 = vmatmul.bf16.vlgmr.msra.gmra.mxu2 %v7869_v12  ;;  %v7089_v12 = vld [vmem:[%s10387_s6 + $0xe8] sm:$0xff] }
 0x2fa   :  { %4313 = vmatpush.bf16.msrb.mxu2 %v7083_v1  ;;  %v7071_v48 = vld [vmem:[%s10387_s6 + $0x58] sm:$0xff] }
 0x2fb   :  { %3879 = vmatmul.bf16.vlgmr.msra.gmra.mxu3 %v7883_v22  ;;  %4301 = vmatpush.bf16.msrb.mxu1 %v7074_v29  ;;  %v10189_v22 = vpop.f32.mrf.mxu1  ;;  %v7063_v50 = vld [vmem:[%s10387_s6 + $0x18] sm:$0xff] }
 0x2fc   :  { %4326 = vmatpush.bf16.msrb.mxu3 %v7091_v36  ;;  %4288 = vmatpush.bf16.msrb.mxu0 %v7066_v37  ;;  %v7079_v54 = vld [vmem:[%s10387_s6 + $0x98] sm:$0xff]  ;;  %v3647_v34 = vadd.f32 %v10189_v22, %v3634_v53 }
 0x2fd   :  { %v7087_v55 = vld [vmem:[%s10387_s6 + $0xd8] sm:$0xff] }
 0x2fe   :  { %4314 = vmatpush.bf16.msrb.mxu2 %v7082_v38  ;;  %v7107_v14 = vld [vmem:[%s10387_s6 + $0x178] sm:$0xff]  ;;  %v3660_v1 = vadd.f32 %v10217_v61, %v3647_v34  ;;  %v3711_v38 = vpop.f32.mrf.mxu2  ;;  %v7092_v61 = vld [vmem:[%s10387_s6 + $0x100] sm:$0xff] }
 0x2ff   :  { %4302 = vmatpush.bf16.msrb.mxu1 %v7073_v15  ;;  %v7099_v17 = vld [vmem:[%s10387_s6 + $0x138] sm:$0xff]  ;;  %v3724_v15 = vpop.f32.mrf.mxu3  ;;  %v7116_v34 = vld [vmem:[%s10387_s6 + $0x1c0] sm:$0xff] }
 0x300   :  { %4327 = vmatpush.bf16.msrb.mxu3 %v7090_v39  ;;  %4289 = vmatpush.bf16.msrb.mxu0 %v7065_v40  ;;  %v7115_v31 = vld [vmem:[%s10387_s6 + $0x1b8] sm:$0xff]  ;;  %v3673_v39 = vadd.f32 %v10219_v62, %v3660_v1  ;;  %v7114_v40 = vld [vmem:[%s10387_s6 + $0x1b0] sm:$0xff] }
 0x301   :  { %v7103_v36 = vld [vmem:[%s10387_s6 + $0x158] sm:$0xff] }
 0x302   :  { %4315 = vmatpush.bf16.msrb.mxu2 %v7081_v18  ;;  %v7095_v29 = vld [vmem:[%s10387_s6 + $0x118] sm:$0xff]  ;;  %v7102_v18 = vld [vmem:[%s10387_s6 + $0x150] sm:$0xff]  ;;  %v3686_v22 = vadd.f32 %v3685_v33, %v3673_v39 }
 0x303   :  { %4303 = vmatpush.bf16.msrb.mxu1 %v7072_v41  ;;  %v3648_v56 = vpop.f32.mrf.mxu1  ;;  %v7094_v41 = vld [vmem:[%s10387_s6 + $0x110] sm:$0xff]  ;;  %v7111_v62 = vld [vmem:[%s10387_s6 + $0x198] sm:$0xff] }
 0x304   :  { %4328 = vmatpush.bf16.msrb.mxu3 %v7089_v12  ;;  %4290 = vmatpush.bf16.msrb.mxu0 %v7064_v43  ;;  %v3687_v12 = vpop.f32.mrf.mxu0  ;;  %v7101_v43 = vld [vmem:[%s10387_s6 + $0x148] sm:$0xff]  ;;  %v7123_v51 = vld [vmem:[%s10387_s6 + $0x1f8] sm:$0xff] }
 0x306   :  { %4316 = vmatpush.bf16.msrb.mxu2 %v7080_v44 }
 0x307   :  { %4304 = vmatpush.bf16.msrb.mxu1 %v7071_v48  ;;  %v7112_v48 = vld [vmem:[%s10387_s6 + $0x1a0] sm:$0xff] }
 0x308   :  { %4329 = vmatpush.bf16.msrb.mxu3 %v7088_v45  ;;  %4291 = vmatpush.bf16.msrb.mxu0 %v7063_v50  ;;  %v7093_v45 = vld [vmem:[%s10387_s6 + $0x108] sm:$0xff]  ;;  %v3713_v50 = vpop.f32.mrf.mxu2 }
 0x30a   :  { %4317 = vmatpush.bf16.msrb.mxu2 %v7079_v54  ;;  %v3726_v54 = vpop.f32.mrf.mxu3 }
 0x30b   :  { %4305 = vmatpush.bf16.msrb.mxu1 %v7070_v63  ;;  %v3698_v30 = vpop.f32.mrf.mxu1  ;;  %v3888_v63 = vmax.f32 %v10088_v57, 0.0  ;;  %v7108_v57 = vld [vmem:[%s10387_s6 + $0x180] sm:$0xff] }
 0x30c   :  { %4330 = vmatpush.bf16.msrb.mxu3 %v7087_v55  ;;  %4292 = vmatpush.bf16.msrb.mxu0 %v7062_v2  ;;  %v3699_v44 = vadd.f32 %v3698_v30, %v3686_v22  ;;  %v7100_v55 = vld [vmem:[%s10387_s6 + $0x140] sm:$0xff]  ;;  %v7110_v2 = vld [vmem:[%s10387_s6 + $0x190] sm:$0xff] }
 0x30e   :  { %4318 = vmatpush.bf16.msrb.mxu2 %v7078_v58  ;;  %v3889_v56 = vmax.f32 %v3699_v44, 0.0  ;;  %v3896_v58 = vpack.c.bf16 %v3888_v63, %v3888_v63 }
 0x30f   :  { %4306 = vmatpush.bf16.msrb.mxu1 %v7069_v4  ;;  %v7109_v4 = vld [vmem:[%s10387_s6 + $0x188] sm:$0xff] }
 0x310   :  { %4331 = vmatpush.bf16.msrb.mxu3 %v7086_v3  ;;  %4293 = vmatpush.bf16.msrb.mxu0 %v7061_v5  ;;  %v3897_v0 = vpack.c.bf16 %v3889_v56, %v3889_v56 }
 0x312   :  { %4319 = vmatpush.bf16.msrb.mxu2 %v7077_v16 }
 0x313   :  { %4307 = vmatpush.bf16.msrb.mxu1 %v7068_v9  ;;  %v3700_v37 = vpop.f32.mrf.mxu1 }
 0x314   :  { %4332 = vmatpush.bf16.msrb.mxu3 %v7085_v6  ;;  %4294 = vmatpush.bf16.msrb.mxu0 %v7060_v8  ;;  %v7122_v8 = vld [vmem:[%s10387_s6 + $0x1f0] sm:$0xff] }
 0x316   :  { %4320 = vmatpush.bf16.msrb.mxu2 %v7076_v49  ;;  %4308 = vmatmul.bf16.vlgmr.msrb.gmra.mxu1 %v3893_v32 }
 0x317   :  { %4352 = vmatpush.bf16.msra.mxu1 %v7107_v14  ;;  %4295 = vmatmul.bf16.vlgmr.msrb.gmra.mxu0 %v3892_v47  ;;  %v3712_v14 = vadd.f32 %v3711_v38, %v906_v11 }
 0x318   :  { %4333 = vmatpush.bf16.msrb.mxu3 %v7084_v23  ;;  %4339 = vmatpush.bf16.msra.mxu0 %v7099_v17  ;;  %v7121_v23 = vld [vmem:[%s10387_s6 + $0x1e8] sm:$0xff]  ;;  %v7120_v17 = vld [vmem:[%s10387_s6 + $0x1e0] sm:$0xff] }
 0x319   :  { %4321 = vmatmul.bf16.vlgmr.msrb.gmra.mxu2 %v3894_v59  ;;  %v3725_v46 = vadd.f32 %v3724_v15, %v3712_v14 }
 0x31a   :  { %4365 = vmatpush.bf16.msra.mxu2 %v7115_v31  ;;  %v7117_v31 = vld [vmem:[%s10387_s6 + $0x1c8] sm:$0xff] }
 0x31b   :  { %4334 = vmatmul.bf16.vlgmr.msrb.gmra.mxu3 %v3895_v24  ;;  %4353 = vmatpush.bf16.msra.mxu1 %v7106_v13  ;;  %v7119_v13 = vld [vmem:[%s10387_s6 + $0x1d8] sm:$0xff] }
 0x31c   :  { %4340 = vmatpush.bf16.msra.mxu0 %v7098_v25  ;;  %4378 = vmatpush.bf16.msra.mxu3 %v7123_v51  ;;  %v7118_v25 = vld [vmem:[%s10387_s6 + $0x1d0] sm:$0xff] }
 0x31e   :  { %4366 = vmatpush.bf16.msra.mxu2 %v7114_v40 }
 0x31f   :  { %4354 = vmatpush.bf16.msra.mxu1 %v7105_v27  ;;  %v3750_v3 = vpop.f32.mrf.mxu1 }
 0x320   :  { %4341 = vmatpush.bf16.msra.mxu0 %v7097_v28  ;;  %4379 = vmatpush.bf16.msra.mxu3 %v7122_v8 }
 0x321   :  { %v3737_v5 = vpop.f32.mrf.mxu0 }
 0x322   :  { %4367 = vmatpush.bf16.msra.mxu2 %v7113_v42  ;;  %v3738_v20 = vadd.f32 %v3737_v5, %v3725_v46 }
 0x323   :  { %4355 = vmatpush.bf16.msra.mxu1 %v7104_v60 }
 0x324   :  { %4342 = vmatpush.bf16.msra.mxu0 %v7096_v35  ;;  %4380 = vmatpush.bf16.msra.mxu3 %v7121_v23  ;;  %v3751_v32 = vadd.f32 %v3750_v3, %v3738_v20 }
 0x326   :  { %4368 = vmatpush.bf16.msra.mxu2 %v7112_v48 }
 0x327   :  { %4356 = vmatpush.bf16.msra.mxu1 %v7103_v36  ;;  %v3752_v16 = vpop.f32.mrf.mxu1  ;;  %v907_v36 = vperm.slane %v10270_v10, 7  ;;  %v7128_v10 = vld [vmem:[%s10388_s7] ss:$0 sm:$0xff] }
 0x328   :  { %4343 = vmatpush.bf16.msra.mxu0 %v7095_v29  ;;  %4381 = vmatpush.bf16.msra.mxu3 %v7120_v17 }
 0x329   :  { %v3763_v6 = vpop.f32.mrf.mxu2  ;;  %v3739_v9 = vpop.f32.mrf.mxu0 }
 0x32a   :  { %4369 = vmatpush.bf16.msra.mxu2 %v7111_v62  ;;  %v3764_v21 = vadd.f32 %v3763_v6, %v3751_v32 }
 0x32b   :  { %4357 = vmatpush.bf16.msra.mxu1 %v7102_v18  ;;  %v3776_v7 = vpop.f32.mrf.mxu3 }
 0x32c   :  { %4344 = vmatpush.bf16.msra.mxu0 %v7094_v41  ;;  %v3777_v59 = vadd.f32 %v3776_v7, %v3764_v21  ;;  %4382 = vmatpush.bf16.msra.mxu3 %v7119_v13 }
 0x32e   :  { %4370 = vmatpush.bf16.msra.mxu2 %v7110_v2 }
 0x32f   :  { %4358 = vmatpush.bf16.msra.mxu1 %v7101_v43 }
 0x330   :  { %4345 = vmatpush.bf16.msra.mxu0 %v7093_v45  ;;  %4383 = vmatpush.bf16.msra.mxu3 %v7118_v25 }
 0x331   :  { %v3765_v19 = vpop.f32.mrf.mxu2 }
 0x332   :  { %4371 = vmatpush.bf16.msra.mxu2 %v7109_v4 }
 0x333   :  { %4359 = vmatpush.bf16.msra.mxu1 %v7100_v55  ;;  %v3778_v49 = vpop.f32.mrf.mxu3 }
 0x334   :  { %4346 = vmatpush.bf16.msra.mxu0 %v7092_v61  ;;  %4384 = vmatpush.bf16.msra.mxu3 %v7117_v31 }
 0x336   :  { %4360 = vmatmul.bf16.vlgmr.msra.gmra.mxu1 %v3897_v0  ;;  %4372 = vmatpush.bf16.msra.mxu2 %v7108_v57 }
 0x337   :  { %4347 = vmatmul.bf16.vlgmr.msra.gmra.mxu0 %v3896_v58 }
 0x338   :  { %4385 = vmatpush.bf16.msra.mxu3 %v7116_v34 }
 0x342   :  { %v3802_v47 = vpop.f32.mrf.mxu1 }
 0x343   :  { %v3789_v24 = vpop.f32.mrf.mxu0  ;;  %v3803_v29 = vadd.f32 %v3802_v47, %v907_v36 }
 0x344   :  { %v3790_v26 = vadd.f32 %v3789_v24, %v3777_v59 }
 0x346   :  { %v3890_v27 = vmax.f32 %v3790_v26, 0.0 }
 0x348   :  { %v3898_v53 = vpack.c.bf16 %v3890_v27, %v3890_v27 }
 0x349   :  { %v3815_v30 = vpop.f32.mrf.mxu2 }
 0x34a   :  { %v3804_v28 = vpop.f32.mrf.mxu1  ;;  %4373 = vmatmul.bf16.vlgmr.msra.gmra.mxu2 %v3898_v53  ;;  %v3816_v37 = vadd.f32 %v3815_v30, %v3803_v29 }
 0x34b   :  { %v3828_v60 = vpop.f32.mrf.mxu3  ;;  %v3791_v33 = vpop.f32.mrf.mxu0 }
 0x34c   :  { %v3829_v39 = vadd.f32 %v3828_v60, %v3816_v37 }
 0x351   :  { %v3817_v35 = vpop.f32.mrf.mxu2 }
 0x353   :  { %v3830_v1 = vpop.f32.mrf.mxu3 }
 0x372   :  { %v3854_v38 = vpop.f32.mrf.mxu1 }
 0x374   :  { %v3841_v15 = vpop.f32.mrf.mxu0 }
 0x375   :  { %v3842_v40 = vadd.f32 %v3841_v15, %v3829_v39 }
 0x377   :  { %v3855_v18 = vadd.f32 %v3854_v38, %v3842_v40 }
 0x37a   :  { %v3856_v12 = vpop.f32.mrf.mxu1 }
 0x37c   :  { %v3867_v22 = vpop.f32.mrf.mxu2  ;;  %v3843_v43 = vpop.f32.mrf.mxu0 }
 0x37d   :  { %v3868_v41 = vadd.f32 %v3867_v22, %v3855_v18 }
 0x37e   :  { %v3880_v42 = vpop.f32.mrf.mxu3 }
 0x37f   :  { %v3881_v44 = vadd.f32 %v3880_v42, %v3868_v41 }
 0x381   :  { %v3891_v45 = vmax.f32 %v3881_v44, 0.0 }
 0x383   :  { %v3899_v48 = vpack.c.bf16 %v3891_v45, %v3891_v45 }
 0x384   :  { %v3869_v50 = vpop.f32.mrf.mxu2 }
 0x385   :  { %4386 = vmatmul.bf16.vlgmr.msra.gmra.mxu3 %v3899_v48 }
 0x386   :  { %v3882_v54 = vpop.f32.mrf.mxu3 }
 0x393   :  { %v4309_v55 = vpop.f32.mrf.mxu1 }
 0x394   :  { %v4296_v56 = vpop.f32.mrf.mxu0 }
 0x395   :  { %v4297_v61 = vadd.f32 %v7128_v10, %v4296_v56 }
 0x397   :  { %v4310_v62 = vadd.f32 %v4309_v55, %v4297_v61 }
 0x39b   :  { %v4311_v63 = vpop.f32.mrf.mxu1 }
 0x39c   :  { %v4322_v0 = vpop.f32.mrf.mxu2  ;;  %v4298_v3 = vpop.f32.mrf.mxu0 }
 0x39d   :  { %v4323_v2 = vadd.f32 %v4322_v0, %v4310_v62 }
 0x39e   :  { %v4335_v58 = vpop.f32.mrf.mxu3 }
 0x39f   :  { %v4336_v4 = vadd.f32 %v4335_v58, %v4323_v2 }
 0x3a4   :  { %v4324_v5 = vpop.f32.mrf.mxu2 }
 0x3a6   :  { %v4337_v57 = vpop.f32.mrf.mxu3 }
 0x3b3   :  { %v4361_v16 = vpop.f32.mrf.mxu1 }
 0x3b4   :  { %v4348_v6 = vpop.f32.mrf.mxu0 }
 0x3b5   :  { %v4349_v7 = vadd.f32 %v4348_v6, %v4336_v4 }
 0x3b7   :  { %v4362_v51 = vadd.f32 %v4361_v16, %v4349_v7 }
 0x3bb   :  { %v4363_v9 = vpop.f32.mrf.mxu1 }
 0x3bc   :  { %v4350_v11 = vpop.f32.mrf.mxu0 }
 0x3cd   :  { %v4374_v14 = vpop.f32.mrf.mxu2 }
 0x3ce   :  { %v4375_v19 = vadd.f32 %v4374_v14, %v4362_v51 }
 0x3d5   :  { %v4376_v8 = vpop.f32.mrf.mxu2 }
 0x408   :  { %v4387_v49 = vpop.f32.mrf.mxu3 }
 0x409   :  { %v4388_v23 = vadd.f32 %v4387_v49, %v4375_v19 }
 0x40b   :  { %4391 = vst [vmem:[%s10390_s9] sm:$0x3] %v4388_v23  ;;  %v4396_v46 = vsub.f32 %v4388_v23, %v7829_v52  ;;  %s4424_s9 = sshll.u32 %s10391_s10, 4  ;;  %s4425_s9 = int_to_ptr.hbm [resolvable:$true] %s4424_s9 }
 0x40d   :  { %v4397_v20 = vmul.f32 %v4396_v46, %v4396_v46 }
 0x40f   :  { %v4399_v17 = vsel %vm4398_vm2, %v4397_v20, 0.0 }
 0x410   :  { %v4389_v32 = vpop.f32.mrf.mxu3  ;;  %4400 = vadd.xlane.f32.xlu0 %v4399_v17 }
 0x483   :  { %v4401_v21 = vpop.xlane.xlu0 %4400 }
 0x484   :  { %v4402_v47 = vrot.slane %v4401_v21, 4 }
 0x486   :  { %v4403_v13 = vadd.f32 %v4402_v47, %v4401_v21 }
 0x488   :  { %v4404_v59 = vrot.slane %v4403_v13, 2 }
 0x48a   :  { %v4405_v24 = vadd.f32 %v4404_v59, %v4403_v13 }
 0x48c   :  { %v4406_v25 = vrot.slane %v4405_v24, 1 }
 0x48e   :  { %v4407_v26 = vadd.f32 %v4406_v25, %v4405_v24 }
 0x490   :  { %7124 = vpush %v4407_v26 }
 0x4c1   :  { %s7125_s8 = spop %7124 }
 0x4c2   :  { %s4409_s19 = smul.f32 0.00390625, %s7125_s8 }
 0x4c4   :  { %v4410_v52 = vstv %s4409_s19 }
 0x4c5   :  { %4412 = vst.msk [vmem:[#allocation2] sm:$0x1] %vm4411_vm3, %v4410_v52 }
 0x4c6   :  { %4427 = dma.vmem_to_hbm [thread:$0]  %s4423_s0, 16, %s4425_s9, [#allocation3]  }
 0x4c7   :  { %7155 = dma.done.wait [#allocation3], 16  }
 0x4c8   :  { %7156 = vsyncadd [#allocation3], 4294967280 }
 0x4c9   :  { %4436 = vsyncpa [#allocation3], 1 }

</bundles_post_ra>
